<compile_context>
chip_gen: v7x
topology: tpu7x:2x2x1
jax: 0.10.0
libtpu: 0.0.40
codegen_flags: <defaults>
</compile_context>

<pallas_src>
import jax
import jax.numpy as jnp
from jax.experimental import pallas as pl
from jax.experimental.pallas import tpu as pltpu

ATTENTION_HEADS = 4
DENSE_DIM = 16
GCN_FEATURE_DIM = 118
GCN_FEATURE_DIM_PADDED = 128
GCN_HIDDEN_DIM = 256
GCN_OUTPUT_DIM = 64
NUM_CLASSES = 1
LN_EPS = 1e-5
LEAKY_SLOPE = 0.2


def _layernorm(h, gamma, beta):
    # Two-pass statistics E[(h-mu)^2]: avoids the cancellation-prone E[h^2]-E[h]^2 form.
    mu = jnp.mean(h, axis=-1, keepdims=True)
    d = h - mu
    var = jnp.mean(d * d, axis=-1, keepdims=True)
    return d * jax.lax.rsqrt(var + LN_EPS) * gamma + beta


def _leaky_relu(h, slope=LEAKY_SLOPE):
    return jnp.where(h >= 0, h, slope * h)


def model_kernel(x_ref, adj_ref, w1_ref, w2_ref, wa1_ref, wa2_ref,
                 p1_ref, p2_ref, pc_ref, out_ref):
    bf16 = jnp.bfloat16
    Bt, N, Fp = x_ref.shape
    R = Bt * N  # flattened node-row count for the weight matmuls

    # ---- unpack fused parameters (static slices of VMEM-resident blocks) ----
    b1, g1, be1 = p1_ref[0:1, :], p1_ref[1:2, :], p1_ref[2:3, :]             # (1, 256) each
    b2, g2, be2, wf = p2_ref[0:1, :], p2_ref[1:2, :], p2_ref[2:3, :], p2_ref[3:4, :]  # (1, 64)
    ba1 = pc_ref[:, 0:DENSE_DIM]                                              # (1, 16)
    ba2 = pc_ref[:, DENSE_DIM:DENSE_DIM + ATTENTION_HEADS]                    # (1, 4)
    bfc = pc_ref[:, DENSE_DIM + ATTENTION_HEADS:DENSE_DIM + ATTENTION_HEADS + 1]  # (1, 1)

    adj = adj_ref[...]                          # (Bt, N, N)   bf16
    x_flat = x_ref[...].reshape(R, Fp)          # (Bt*N, 128)  bf16 (features zero-padded)

    # ---- GCN layer 1 (original order): support = x @ W1 flattened, then per-graph adj @ support ----
    s1 = jnp.dot(x_flat, w1_ref[...], preferred_element_type=jnp.float32)     # (R, 256) f32
    h1 = jnp.einsum('bij,bjf->bif', adj,
                    s1.reshape(Bt, N, GCN_HIDDEN_DIM).astype(bf16),
                    preferred_element_type=jnp.float32)                       # (Bt, N, 256) f32
    h1 = h1.reshape(R, GCN_HIDDEN_DIM) + b1
    h1 = _leaky_relu(_layernorm(h1, g1, be1))                                 # (R, 256) f32

    # ---- GCN layer 2 ----
    s2 = jnp.dot(h1.astype(bf16), w2_ref[...], preferred_element_type=jnp.float32)  # (R, 64)
    h2 = jnp.einsum('bij,bjf->bif', adj,
                    s2.reshape(Bt, N, GCN_OUTPUT_DIM).astype(bf16),
                    preferred_element_type=jnp.float32)                       # (Bt, N, 64) f32
    h2 = h2.reshape(R, GCN_OUTPUT_DIM) + b2
    h2 = _leaky_relu(_layernorm(h2, g2, be2))                                 # (R, 64) f32

    # ---- Attention: scores = fc2(tanh(fc1(h2))), softmax over the node axis (per graph) ----
    a = jnp.tanh(jnp.dot(h2.astype(bf16), wa1_ref[...],
                         preferred_element_type=jnp.float32) + ba1)           # (R, 16) f32
    sc = jnp.dot(a.astype(bf16), wa2_ref[...],
                 preferred_element_type=jnp.float32) + ba2                    # (R, H) f32
    sc = sc.reshape(Bt, N, ATTENTION_HEADS)
    m = jnp.max(sc, axis=1, keepdims=True)                                    # (Bt, 1, H)
    e = jnp.exp(sc - m)
    att = e * pl.reciprocal(jnp.sum(e, axis=1, keepdims=True), approx=True)   # (Bt, N, H)

    # ---- Pooled head, equivalent to mean_h(att^T @ h2) @ wf + bf:
    #      p = h2 @ wf (VPU row-dot), logit = sum_n sum_h att * p / H + bf
    p = jnp.sum(h2 * wf, axis=-1, keepdims=True).reshape(Bt, N, 1)            # (Bt, N, 1)
    t = jnp.sum(att * p, axis=1)                                              # (Bt, H)
    logit = jnp.sum(t, axis=-1, keepdims=True) * (1.0 / ATTENTION_HEADS) + bfc  # (Bt, 1)
    out_ref[...] = jax.nn.sigmoid(logit)


def model_forward(xp, adjb, params, *, block_batch=8):
    """xp: (B, N, 128) bf16 (padded), adjb: (B, N, N) bf16. Returns (B, NUM_CLASSES) f32."""
    B, N, Fp = xp.shape
    assert Fp == GCN_FEATURE_DIM_PADDED
    Bt = min(block_batch, B)
    assert B % Bt == 0, "batch must divide evenly into block_batch-sized groups"
    # out block is (Bt, 1): second-minor dim must be a multiple of 8 or equal the full extent.
    assert Bt % 8 == 0 or Bt == B, "block_batch must be a multiple of 8 (or == B)"
    num_steps = B // Bt

    w1, w2, wa1, wa2, p1, p2, pc = params

    def weight_spec(shape):
        # Constant block index across grid steps -> parameters DMA'd once, VMEM-resident.
        return pl.BlockSpec(shape, lambda g: (0, 0))

    grid_spec = pltpu.PrefetchScalarGridSpec(
        num_scalar_prefetch=0,
        grid=(num_steps,),
        in_specs=[
            pl.BlockSpec((Bt, N, Fp), lambda g: (g, 0, 0)),   # x
            pl.BlockSpec((Bt, N, N), lambda g: (g, 0, 0)),    # adj
            weight_spec(w1.shape),
            weight_spec(w2.shape),
            weight_spec(wa1.shape),
            weight_spec(wa2.shape),
            weight_spec(p1.shape),
            weight_spec(p2.shape),
            weight_spec(pc.shape),
        ],
        out_specs=pl.BlockSpec((Bt, NUM_CLASSES), lambda g: (g, 0)),
    )

    out = pl.pallas_call(
        model_kernel,
        out_shape=jax.ShapeDtypeStruct((B, NUM_CLASSES), jnp.float32),
        grid_spec=grid_spec,
        compiler_params=pltpu.CompilerParams(
            dimension_semantics=("parallel",),   # grid>=2 -> both v7x TensorCores used
            vmem_limit_bytes=32 * 1024 * 1024,
        ),
    )(xp, adjb, *params)
    return out


def prepare_inputs(x, adj):
    """One-time (outside the hot path) pad 118->128 and cast MXU operands to bf16."""
    B, N, F = x.shape
    assert F == GCN_FEATURE_DIM
    pad = GCN_FEATURE_DIM_PADDED - F
    xp = jnp.pad(x.astype(jnp.float32), ((0, 0), (0, 0), (0, pad))).astype(jnp.bfloat16)
    adjb = adj.astype(jnp.bfloat16)
    return xp, adjb


def init_params(key):
    """Deterministic synthetic f32 parameters, shapes matching the PyTorch module."""
    ks = jax.random.split(key, 10)

    def uni(k, shape, scale):
        return jax.random.uniform(k, shape, jnp.float32, -scale, scale)

    stdv1 = 1.0 / (GCN_HIDDEN_DIM ** 0.5)
    w1 = uni(ks[0], (GCN_FEATURE_DIM, GCN_HIDDEN_DIM), stdv1)
    b1 = uni(ks[1], (1, GCN_HIDDEN_DIM), stdv1)
    g1 = jnp.ones((1, GCN_HIDDEN_DIM), jnp.float32)
    be1 = jnp.zeros((1, GCN_HIDDEN_DIM), jnp.float32)

    stdv2 = 1.0 / (GCN_OUTPUT_DIM ** 0.5)
    w2 = uni(ks[2], (GCN_HIDDEN_DIM, GCN_OUTPUT_DIM), stdv2)
    b2 = uni(ks[3], (1, GCN_OUTPUT_DIM), stdv2)
    g2 = jnp.ones((1, GCN_OUTPUT_DIM), jnp.float32)
    be2 = jnp.zeros((1, GCN_OUTPUT_DIM), jnp.float32)

    sa1 = 1.0 / (GCN_OUTPUT_DIM ** 0.5)
    wa1 = uni(ks[4], (GCN_OUTPUT_DIM, DENSE_DIM), sa1)
    ba1 = uni(ks[5], (1, DENSE_DIM), sa1)
    sa2 = 1.0 / (DENSE_DIM ** 0.5)
    wa2 = uni(ks[6], (DENSE_DIM, ATTENTION_HEADS), sa2)
    ba2 = uni(ks[7], (1, ATTENTION_HEADS), sa2)

    wf = uni(ks[8], (GCN_OUTPUT_DIM, NUM_CLASSES), sa1)
    bf = uni(ks[9], (1, NUM_CLASSES), sa1)

    return (w1, b1, g1, be1, w2, b2, g2, be2, wa1, ba1, wa2, ba2, wf, bf)


def prepare_params(raw):
    """Kernel-ready layout: pad W1 rows 118->128, bf16 matmul weights, fuse 14 params into 7 blocks."""
    (w1, b1, g1, be1, w2, b2, g2, be2, wa1, ba1, wa2, ba2, wf, bf) = raw
    w1p = jnp.pad(w1, ((0, GCN_FEATURE_DIM_PADDED - GCN_FEATURE_DIM), (0, 0))).astype(jnp.bfloat16)
    p1 = jnp.concatenate([b1, g1, be1], axis=0)                   # (3, 256) f32
    p2 = jnp.concatenate([b2, g2, be2, wf.T], axis=0)             # (4, 64)  f32 (wf as a row)
    pad_cols = 32 - (DENSE_DIM + ATTENTION_HEADS + NUM_CLASSES)
    pc = jnp.concatenate([ba1, ba2, bf, jnp.zeros((1, pad_cols), jnp.float32)], axis=1)  # (1, 32)
    return (w1p,
            w2.astype(jnp.bfloat16),
            wa1.astype(jnp.bfloat16),
            wa2.astype(jnp.bfloat16),
            p1, p2, pc)


def reference_forward(x, adj, raw):
    """Pure-JAX f32 reference in the original PyTorch operation order."""
    (w1, b1, g1, be1, w2, b2, g2, be2, wa1, ba1, wa2, ba2, wf, bf) = raw

    def ln(h, g, b):
        mu = jnp.mean(h, -1, keepdims=True)
        var = jnp.mean((h - mu) ** 2, -1, keepdims=True)
        return (h - mu) / jnp.sqrt(var + LN_EPS) * g + b

    def lrelu(h):
        return jnp.where(h >= 0, h, LEAKY_SLOPE * h)

    def one(xg, ag):
        h = ag @ (xg @ w1) + b1
        h = lrelu(ln(h, g1, be1))
        h = ag @ (h @ w2) + b2
        h = lrelu(ln(h, g2, be2))
        a = jnp.tanh(h @ wa1 + ba1)
        s = a @ wa2 + ba2
        att = jax.nn.softmax(s, axis=0)                 # softmax over the node axis
        emb = att.T @ h                                 # (H, 64)
        avg = jnp.sum(emb, axis=0, keepdims=True) / ATTENTION_HEADS
        return jax.nn.sigmoid(avg @ wf + bf)[0]         # (1,)

    return jax.vmap(one)(x, adj)                        # (B, 1)


if __name__ == "__main__":
    key = jax.random.PRNGKey(0)
    k_x, k_adj, k_p = jax.random.split(key, 3)

    # B=16 graphs, N=16 nodes: Bt=8 -> grid=(2,), 128 rows per flattened weight matmul.
    B, N = 16, 16
    x = jax.random.normal(k_x, (B, N, GCN_FEATURE_DIM), jnp.float32)
    adj = jax.random.uniform(k_adj, (B, N, N), jnp.float32)  # dense synthetic adjacency

    raw = init_params(k_p)
    params = prepare_params(raw)
    xp, adjb = prepare_inputs(x, adj)   # pad/cast once, outside the per-call hot path

    out = jax.block_until_ready(model_forward(xp, adjb, params, block_batch=8))

    assert out.shape == (B, NUM_CLASSES), out.shape
    assert bool(jnp.all(jnp.isfinite(out)))
    assert bool(jnp.all((out >= 0.0) & (out <= 1.0)))  # sigmoid range

    ref = reference_forward(x, adj, raw)
    max_err = float(jnp.max(jnp.abs(out - ref)))
    assert max_err < 5e-2, f"max |kernel - reference| = {max_err}"

    print("KERNEL_OK")
</pallas_src>

<mosaic_0001>
module attributes {stable_mosaic.version = 11 : i64} {
  func.func @model_kernel(%arg0: i32, %arg1: memref<8x16x128xbf16, #tpu.memory_space<vmem>>, %arg2: memref<8x16x16xbf16, #tpu.memory_space<vmem>>, %arg3: memref<128x256xbf16, #tpu.memory_space<vmem>>, %arg4: memref<256x64xbf16, #tpu.memory_space<vmem>>, %arg5: memref<64x16xbf16, #tpu.memory_space<vmem>>, %arg6: memref<16x4xbf16, #tpu.memory_space<vmem>>, %arg7: memref<3x256xf32, #tpu.memory_space<vmem>>, %arg8: memref<4x64xf32, #tpu.memory_space<vmem>>, %arg9: memref<1x32xf32, #tpu.memory_space<vmem>>, %arg10: memref<8x1xf32, #tpu.memory_space<vmem>>) attributes {dimension_semantics = [#tpu.dimension_semantics<parallel>], iteration_bounds = array<i64: 2>, scalar_prefetch = 0 : i64, scratch_operands = 0 : i64, tpu.core_type = #tpu.core_type<tc>, window_params = [{transform_indices = @transform_0, window_bounds = array<i64: 8, 16, 128>}, {transform_indices = @transform_1, window_bounds = array<i64: 8, 16, 16>}, {pipeline_mode = #tpu.pipeline_mode<synchronous>, transform_indices = @transform_2, window_bounds = array<i64: 128, 256>}, {pipeline_mode = #tpu.pipeline_mode<synchronous>, transform_indices = @transform_3, window_bounds = array<i64: 256, 64>}, {pipeline_mode = #tpu.pipeline_mode<synchronous>, transform_indices = @transform_4, window_bounds = array<i64: 64, 16>}, {pipeline_mode = #tpu.pipeline_mode<synchronous>, transform_indices = @transform_5, window_bounds = array<i64: 16, 4>}, {pipeline_mode = #tpu.pipeline_mode<synchronous>, transform_indices = @transform_6, window_bounds = array<i64: 3, 256>}, {pipeline_mode = #tpu.pipeline_mode<synchronous>, transform_indices = @transform_7, window_bounds = array<i64: 4, 64>}, {pipeline_mode = #tpu.pipeline_mode<synchronous>, transform_indices = @transform_8, window_bounds = array<i64: 1, 32>}, {transform_indices = @transform_9, window_bounds = array<i64: 8, 1>}]} {
    %c0 = arith.constant 0 : index
    %c0_0 = arith.constant 0 : index
    %0 = vector.load %arg7[%c0, %c0_0] : memref<3x256xf32, #tpu.memory_space<vmem>>, vector<1x256xf32>
    %c1 = arith.constant 1 : index
    %c0_1 = arith.constant 0 : index
    %1 = vector.load %arg7[%c1, %c0_1] : memref<3x256xf32, #tpu.memory_space<vmem>>, vector<1x256xf32>
    %c2 = arith.constant 2 : index
    %c0_2 = arith.constant 0 : index
    %2 = vector.load %arg7[%c2, %c0_2] : memref<3x256xf32, #tpu.memory_space<vmem>>, vector<1x256xf32>
    %c0_3 = arith.constant 0 : index
    %c0_4 = arith.constant 0 : index
    %3 = vector.load %arg8[%c0_3, %c0_4] : memref<4x64xf32, #tpu.memory_space<vmem>>, vector<1x64xf32>
    %c1_5 = arith.constant 1 : index
    %c0_6 = arith.constant 0 : index
    %4 = vector.load %arg8[%c1_5, %c0_6] : memref<4x64xf32, #tpu.memory_space<vmem>>, vector<1x64xf32>
    %c2_7 = arith.constant 2 : index
    %c0_8 = arith.constant 0 : index
    %5 = vector.load %arg8[%c2_7, %c0_8] : memref<4x64xf32, #tpu.memory_space<vmem>>, vector<1x64xf32>
    %c3 = arith.constant 3 : index
    %c0_9 = arith.constant 0 : index
    %6 = vector.load %arg8[%c3, %c0_9] : memref<4x64xf32, #tpu.memory_space<vmem>>, vector<1x64xf32>
    %c0_10 = arith.constant 0 : index
    %c0_11 = arith.constant 0 : index
    %7 = vector.load %arg9[%c0_10, %c0_11] : memref<1x32xf32, #tpu.memory_space<vmem>>, vector<1x16xf32>
    %c0_12 = arith.constant 0 : index
    %c16 = arith.constant 16 : index
    %8 = vector.load %arg9[%c0_12, %c16] : memref<1x32xf32, #tpu.memory_space<vmem>>, vector<1x4xf32>
    %c0_13 = arith.constant 0 : index
    %c20 = arith.constant 20 : index
    %9 = vector.load %arg9[%c0_13, %c20] : memref<1x32xf32, #tpu.memory_space<vmem>>, vector<1x1xf32>
    %c0_14 = arith.constant 0 : index
    %c0_15 = arith.constant 0 : index
    %c0_16 = arith.constant 0 : index
    %10 = vector.load %arg2[%c0_14, %c0_15, %c0_16] : memref<8x16x16xbf16, #tpu.memory_space<vmem>>, vector<8x16x16xbf16>
    %c0_17 = arith.constant 0 : index
    %c0_18 = arith.constant 0 : index
    %c0_19 = arith.constant 0 : index
    %11 = vector.load %arg1[%c0_17, %c0_18, %c0_19] : memref<8x16x128xbf16, #tpu.memory_space<vmem>>, vector<8x16x128xbf16>
    %12 = vector.shape_cast %11 : vector<8x16x128xbf16> to vector<128x128xbf16>
    %c0_20 = arith.constant 0 : index
    %c0_21 = arith.constant 0 : index
    %13 = vector.load %arg3[%c0_20, %c0_21] : memref<128x256xbf16, #tpu.memory_space<vmem>>, vector<128x256xbf16>
    %cst = arith.constant dense<0.000000e+00> : vector<128x256xf32>
    %14 = tpu.matmul %12, %13, %cst {dimension_numbers = #tpu.dot_dimension_numbers<[1], [0], [0], [1], [0, 0, 1, 1], [], []>} : vector<128x128xbf16>, vector<128x256xbf16>, vector<128x256xf32> -> vector<128x256xf32>
    %15 = vector.shape_cast %14 : vector<128x256xf32> to vector<8x16x256xf32>
    %16 = arith.truncf %15 : vector<8x16x256xf32> to vector<8x16x256xbf16>
    "tpu.trace_start"() <{level = 10 : i32, message = "bij,bjf->bif"}> : () -> ()
    %cst_22 = arith.constant dense<0.000000e+00> : vector<8x16x256xf32>
    %17 = tpu.matmul %10, %16, %cst_22 {dimension_numbers = #tpu.dot_dimension_numbers<[2], [1], [1], [2], [0, 0, 0, 1, 1, 2], [0], [0]>} : vector<8x16x16xbf16>, vector<8x16x256xbf16>, vector<8x16x256xf32> -> vector<8x16x256xf32>
    "tpu.trace_stop"() : () -> ()
    %18 = vector.shape_cast %17 : vector<8x16x256xf32> to vector<128x256xf32>
    %19 = vector.broadcast %0 : vector<1x256xf32> to vector<128x256xf32>
    %20 = arith.addf %18, %19 : vector<128x256xf32>
    %cst_23 = arith.constant dense<0.000000e+00> : vector<128xf32>
    %21 = vector.multi_reduction <add>, %20, %cst_23 [1] : vector<128x256xf32> to vector<128xf32>
    %22 = vector.shape_cast %21 : vector<128xf32> to vector<128x1xf32>
    %cst_24 = arith.constant 2.560000e+02 : f32
    %23 = vector.broadcast %cst_24 : f32 to vector<128x1xf32>
    %24 = arith.divf %22, %23 : vector<128x1xf32>
    %25 = vector.broadcast %24 : vector<128x1xf32> to vector<128x256xf32>
    %26 = arith.subf %20, %25 : vector<128x256xf32>
    %27 = arith.mulf %26, %26 : vector<128x256xf32>
    %cst_25 = arith.constant dense<0.000000e+00> : vector<128xf32>
    %28 = vector.multi_reduction <add>, %27, %cst_25 [1] : vector<128x256xf32> to vector<128xf32>
    %29 = vector.shape_cast %28 : vector<128xf32> to vector<128x1xf32>
    %cst_26 = arith.constant 2.560000e+02 : f32
    %30 = vector.broadcast %cst_26 : f32 to vector<128x1xf32>
    %31 = arith.divf %29, %30 : vector<128x1xf32>
    %cst_27 = arith.constant 9.99999974E-6 : f32
    %32 = vector.broadcast %cst_27 : f32 to vector<128x1xf32>
    %33 = arith.addf %31, %32 : vector<128x1xf32>
    %34 = math.rsqrt %33 : vector<128x1xf32>
    %35 = vector.broadcast %34 : vector<128x1xf32> to vector<128x256xf32>
    %36 = arith.mulf %26, %35 : vector<128x256xf32>
    %37 = vector.broadcast %1 : vector<1x256xf32> to vector<128x256xf32>
    %38 = arith.mulf %36, %37 : vector<128x256xf32>
    %39 = vector.broadcast %2 : vector<1x256xf32> to vector<128x256xf32>
    %40 = arith.addf %38, %39 : vector<128x256xf32>
    %cst_28 = arith.constant 0.000000e+00 : f32
    %41 = vector.broadcast %cst_28 : f32 to vector<128x256xf32>
    %42 = arith.cmpf oge, %40, %41 : vector<128x256xf32>
    %cst_29 = arith.constant 2.000000e-01 : f32
    %43 = vector.broadcast %cst_29 : f32 to vector<128x256xf32>
    %44 = arith.mulf %43, %40 : vector<128x256xf32>
    %45 = arith.select %42, %40, %44 : vector<128x256xi1>, vector<128x256xf32>
    %46 = arith.truncf %45 : vector<128x256xf32> to vector<128x256xbf16>
    %c0_30 = arith.constant 0 : index
    %c0_31 = arith.constant 0 : index
    %47 = vector.load %arg4[%c0_30, %c0_31] : memref<256x64xbf16, #tpu.memory_space<vmem>>, vector<256x64xbf16>
    %cst_32 = arith.constant dense<0.000000e+00> : vector<128x64xf32>
    %48 = tpu.matmul %46, %47, %cst_32 {dimension_numbers = #tpu.dot_dimension_numbers<[1], [0], [0], [1], [0, 0, 1, 1], [], []>} : vector<128x256xbf16>, vector<256x64xbf16>, vector<128x64xf32> -> vector<128x64xf32>
    %49 = vector.shape_cast %48 : vector<128x64xf32> to vector<8x16x64xf32>
    %50 = arith.truncf %49 : vector<8x16x64xf32> to vector<8x16x64xbf16>
    "tpu.trace_start"() <{level = 10 : i32, message = "bij,bjf->bif"}> : () -> ()
    %cst_33 = arith.constant dense<0.000000e+00> : vector<8x16x64xf32>
    %51 = tpu.matmul %10, %50, %cst_33 {dimension_numbers = #tpu.dot_dimension_numbers<[2], [1], [1], [2], [0, 0, 0, 1, 1, 2], [0], [0]>} : vector<8x16x16xbf16>, vector<8x16x64xbf16>, vector<8x16x64xf32> -> vector<8x16x64xf32>
    "tpu.trace_stop"() : () -> ()
    %52 = vector.shape_cast %51 : vector<8x16x64xf32> to vector<128x64xf32>
    %53 = vector.broadcast %3 : vector<1x64xf32> to vector<128x64xf32>
    %54 = arith.addf %52, %53 : vector<128x64xf32>
    %cst_34 = arith.constant dense<0.000000e+00> : vector<128xf32>
    %55 = vector.multi_reduction <add>, %54, %cst_34 [1] : vector<128x64xf32> to vector<128xf32>
    %56 = vector.shape_cast %55 : vector<128xf32> to vector<128x1xf32>
    %cst_35 = arith.constant 6.400000e+01 : f32
    %57 = vector.broadcast %cst_35 : f32 to vector<128x1xf32>
    %58 = arith.divf %56, %57 : vector<128x1xf32>
    %59 = vector.broadcast %58 : vector<128x1xf32> to vector<128x64xf32>
    %60 = arith.subf %54, %59 : vector<128x64xf32>
    %61 = arith.mulf %60, %60 : vector<128x64xf32>
    %cst_36 = arith.constant dense<0.000000e+00> : vector<128xf32>
    %62 = vector.multi_reduction <add>, %61, %cst_36 [1] : vector<128x64xf32> to vector<128xf32>
    %63 = vector.shape_cast %62 : vector<128xf32> to vector<128x1xf32>
    %cst_37 = arith.constant 6.400000e+01 : f32
    %64 = vector.broadcast %cst_37 : f32 to vector<128x1xf32>
    %65 = arith.divf %63, %64 : vector<128x1xf32>
    %cst_38 = arith.constant 9.99999974E-6 : f32
    %66 = vector.broadcast %cst_38 : f32 to vector<128x1xf32>
    %67 = arith.addf %65, %66 : vector<128x1xf32>
    %68 = math.rsqrt %67 : vector<128x1xf32>
    %69 = vector.broadcast %68 : vector<128x1xf32> to vector<128x64xf32>
    %70 = arith.mulf %60, %69 : vector<128x64xf32>
    %71 = vector.broadcast %4 : vector<1x64xf32> to vector<128x64xf32>
    %72 = arith.mulf %70, %71 : vector<128x64xf32>
    %73 = vector.broadcast %5 : vector<1x64xf32> to vector<128x64xf32>
    %74 = arith.addf %72, %73 : vector<128x64xf32>
    %cst_39 = arith.constant 0.000000e+00 : f32
    %75 = vector.broadcast %cst_39 : f32 to vector<128x64xf32>
    %76 = arith.cmpf oge, %74, %75 : vector<128x64xf32>
    %cst_40 = arith.constant 2.000000e-01 : f32
    %77 = vector.broadcast %cst_40 : f32 to vector<128x64xf32>
    %78 = arith.mulf %77, %74 : vector<128x64xf32>
    %79 = arith.select %76, %74, %78 : vector<128x64xi1>, vector<128x64xf32>
    %80 = arith.truncf %79 : vector<128x64xf32> to vector<128x64xbf16>
    %c0_41 = arith.constant 0 : index
    %c0_42 = arith.constant 0 : index
    %81 = vector.load %arg5[%c0_41, %c0_42] : memref<64x16xbf16, #tpu.memory_space<vmem>>, vector<64x16xbf16>
    %cst_43 = arith.constant dense<0.000000e+00> : vector<128x16xf32>
    %82 = tpu.matmul %80, %81, %cst_43 {dimension_numbers = #tpu.dot_dimension_numbers<[1], [0], [0], [1], [0, 0, 1, 1], [], []>} : vector<128x64xbf16>, vector<64x16xbf16>, vector<128x16xf32> -> vector<128x16xf32>
    %83 = vector.broadcast %7 : vector<1x16xf32> to vector<128x16xf32>
    %84 = arith.addf %82, %83 : vector<128x16xf32>
    %85 = math.tanh %84 : vector<128x16xf32>
    %86 = arith.truncf %85 : vector<128x16xf32> to vector<128x16xbf16>
    %c0_44 = arith.constant 0 : index
    %c0_45 = arith.constant 0 : index
    %87 = vector.load %arg6[%c0_44, %c0_45] : memref<16x4xbf16, #tpu.memory_space<vmem>>, vector<16x4xbf16>
    %cst_46 = arith.constant dense<0.000000e+00> : vector<128x4xf32>
    %88 = tpu.matmul %86, %87, %cst_46 {dimension_numbers = #tpu.dot_dimension_numbers<[1], [0], [0], [1], [0, 0, 1, 1], [], []>} : vector<128x16xbf16>, vector<16x4xbf16>, vector<128x4xf32> -> vector<128x4xf32>
    %89 = vector.broadcast %8 : vector<1x4xf32> to vector<128x4xf32>
    %90 = arith.addf %88, %89 : vector<128x4xf32>
    %91 = vector.shape_cast %90 : vector<128x4xf32> to vector<8x16x4xf32>
    %cst_47 = arith.constant dense<0xFF800000> : vector<8x4xf32>
    %92 = vector.multi_reduction <maximumf>, %91, %cst_47 [1] : vector<8x16x4xf32> to vector<8x4xf32>
    %93 = vector.shape_cast %92 : vector<8x4xf32> to vector<8x1x4xf32>
    %94 = vector.broadcast %93 : vector<8x1x4xf32> to vector<8x16x4xf32>
    %95 = arith.subf %91, %94 : vector<8x16x4xf32>
    %96 = math.exp %95 : vector<8x16x4xf32>
    %cst_48 = arith.constant dense<0.000000e+00> : vector<8x4xf32>
    %97 = vector.multi_reduction <add>, %96, %cst_48 [1] : vector<8x16x4xf32> to vector<8x4xf32>
    %98 = vector.shape_cast %97 : vector<8x4xf32> to vector<8x1x4xf32>
    %99 = tpu.reciprocal %98 {approx = true} : vector<8x1x4xf32> -> vector<8x1x4xf32>
    %100 = vector.broadcast %99 : vector<8x1x4xf32> to vector<8x16x4xf32>
    %101 = arith.mulf %96, %100 : vector<8x16x4xf32>
    %102 = vector.broadcast %6 : vector<1x64xf32> to vector<128x64xf32>
    %103 = arith.mulf %79, %102 : vector<128x64xf32>
    %cst_49 = arith.constant dense<0.000000e+00> : vector<128xf32>
    %104 = vector.multi_reduction <add>, %103, %cst_49 [1] : vector<128x64xf32> to vector<128xf32>
    %105 = vector.shape_cast %104 : vector<128xf32> to vector<128x1xf32>
    %106 = vector.shape_cast %105 : vector<128x1xf32> to vector<8x16x1xf32>
    %107 = vector.broadcast %106 : vector<8x16x1xf32> to vector<8x16x4xf32>
    %108 = arith.mulf %101, %107 : vector<8x16x4xf32>
    %cst_50 = arith.constant dense<0.000000e+00> : vector<8x4xf32>
    %109 = vector.multi_reduction <add>, %108, %cst_50 [1] : vector<8x16x4xf32> to vector<8x4xf32>
    %cst_51 = arith.constant dense<0.000000e+00> : vector<8xf32>
    %110 = vector.multi_reduction <add>, %109, %cst_51 [1] : vector<8x4xf32> to vector<8xf32>
    %111 = vector.shape_cast %110 : vector<8xf32> to vector<8x1xf32>
    %cst_52 = arith.constant 2.500000e-01 : f32
    %112 = vector.broadcast %cst_52 : f32 to vector<8x1xf32>
    %113 = arith.mulf %111, %112 : vector<8x1xf32>
    %114 = vector.broadcast %9 : vector<1x1xf32> to vector<8x1xf32>
    %115 = arith.addf %113, %114 : vector<8x1xf32>
    %116 = arith.negf %115 : vector<8x1xf32>
    %117 = math.exp %116 : vector<8x1xf32>
    %cst_53 = arith.constant 1.000000e+00 : f32
    %118 = vector.broadcast %cst_53 : f32 to vector<8x1xf32>
    %119 = arith.addf %118, %117 : vector<8x1xf32>
    %120 = arith.divf %118, %119 : vector<8x1xf32>
    %c0_54 = arith.constant 0 : index
    %c0_55 = arith.constant 0 : index
    %121 = vector.load %arg10[%c0_54, %c0_55] : memref<8x1xf32, #tpu.memory_space<vmem>>, vector<8x1xf32>
    tpu.vector_store %arg10[%c0_54, %c0_55], %120 {strides = array<i32>} : memref<8x1xf32, #tpu.memory_space<vmem>>, vector<8x1xf32>,
    return
  }
  func.func @transform_0(%arg0: i32) -> (i32, i32, i32) {
    %c0_i32 = arith.constant 0 : i32
    %c0_i32_0 = arith.constant 0 : i32
    %c0_i32_1 = arith.constant 0 : i32
    return %arg0, %c0_i32, %c0_i32_0 : i32, i32, i32
  }
  func.func @transform_1(%arg0: i32) -> (i32, i32, i32) {
    %c0_i32 = arith.constant 0 : i32
    %c0_i32_0 = arith.constant 0 : i32
    %c0_i32_1 = arith.constant 0 : i32
    return %arg0, %c0_i32, %c0_i32_0 : i32, i32, i32
  }
  func.func @transform_2(%arg0: i32) -> (i32, i32) {
    %c0_i32 = arith.constant 0 : i32
    %c0_i32_0 = arith.constant 0 : i32
    %c0_i32_1 = arith.constant 0 : i32
    return %c0_i32, %c0_i32_0 : i32, i32
  }
  func.func @transform_3(%arg0: i32) -> (i32, i32) {
    %c0_i32 = arith.constant 0 : i32
    %c0_i32_0 = arith.constant 0 : i32
    %c0_i32_1 = arith.constant 0 : i32
    return %c0_i32, %c0_i32_0 : i32, i32
  }
  func.func @transform_4(%arg0: i32) -> (i32, i32) {
    %c0_i32 = arith.constant 0 : i32
    %c0_i32_0 = arith.constant 0 : i32
    %c0_i32_1 = arith.constant 0 : i32
    return %c0_i32, %c0_i32_0 : i32, i32
  }
  func.func @transform_5(%arg0: i32) -> (i32, i32) {
    %c0_i32 = arith.constant 0 : i32
    %c0_i32_0 = arith.constant 0 : i32
    %c0_i32_1 = arith.constant 0 : i32
    return %c0_i32, %c0_i32_0 : i32, i32
  }
  func.func @transform_6(%arg0: i32) -> (i32, i32) {
    %c0_i32 = arith.constant 0 : i32
    %c0_i32_0 = arith.constant 0 : i32
    %c0_i32_1 = arith.constant 0 : i32
    return %c0_i32, %c0_i32_0 : i32, i32
  }
  func.func @transform_7(%arg0: i32) -> (i32, i32) {
    %c0_i32 = arith.constant 0 : i32
    %c0_i32_0 = arith.constant 0 : i32
    %c0_i32_1 = arith.constant 0 : i32
    return %c0_i32, %c0_i32_0 : i32, i32
  }
  func.func @transform_8(%arg0: i32) -> (i32, i32) {
    %c0_i32 = arith.constant 0 : i32
    %c0_i32_0 = arith.constant 0 : i32
    %c0_i32_1 = arith.constant 0 : i32
    return %c0_i32, %c0_i32_0 : i32, i32
  }
  func.func @transform_9(%arg0: i32) -> (i32, i32) {
    %c0_i32 = arith.constant 0 : i32
    %c0_i32_0 = arith.constant 0 : i32
    return %arg0, %c0_i32 : i32, i32
  }
}

</mosaic_0001>

<bundles_post_ra>
// kernel: tpu_custom_call.1
= control target key start
LH: loop header
LB: loop body
LE: loop exit
PB: predicated region body
PF: predicated region fallthrough
CT: control target
= control target key end

     0   :  { %14 = vsyncpa [#allocation3], 0  ;;  %s5259_s0 = inlined_call_operand.vmem [shape: bf16[16,16,128], index: 0, kind: input, shape index: {}]   ;;  %s5260_s1 = inlined_call_operand.hbm [shape: bf16[16,16,16], index: 1, kind: input, shape index: {}]   ;;  %s5261_s2 = inlined_call_operand.hbm [shape: bf16[128,256], index: 2, kind: input, shape index: {}]   ;;  %s5262_s3 = inlined_call_operand.vmem [shape: bf16[256,64], index: 3, kind: input, shape index: {}]   ;;  %s5263_s4 = inlined_call_operand.vmem [shape: bf16[64,16], index: 4, kind: input, shape index: {}]   ;;  %s5264_s5 = inlined_call_operand.vmem [shape: bf16[16,4], index: 5, kind: input, shape index: {}]   ;;  %s5265_s6 = inlined_call_operand.vmem [shape: f32[3,256], index: 6, kind: input, shape index: {}]   ;;  %s5266_s7 = inlined_call_operand.vmem [shape: f32[4,64], index: 7, kind: input, shape index: {}]   ;;  %s5267_s8 = inlined_call_operand.vmem [shape: f32[1,32], index: 8, kind: input, shape index: {}]   ;;  %s5268_s9 = inlined_call_operand.vmem [shape: f32[16,1], index: 9, kind: output, shape index: {}]  }
   0x1   :  { %16 = vsyncpa [#allocation3 + $0x1], 0 }
   0x2   :  { %17 = vsyncpa [#allocation5], 0  ;;  %s4058_s30 = smov 0   ;;  %s4060_s10 = smov 0  }
   0x3   :  { %s4062_s11 = smov 0   ;;  %s4064_s12 = smov 0  }
   0x4 LB: > { %s4077_s13 = sadd.s32 4294967295, %s3995_s12   ;;  %p69_p0 = scmp.ne.s32.totalorder %s3987_s10, %s3983_s30  ;;  %s3995_s12 = sphi %s4064_s12, %s5283_s12   ;;  %s3991_s11 = sphi %s4062_s11, %s5286_s11   ;;  %s3987_s10 = sphi %s4060_s10, %s5285_s10   ;;  %s3983_s30 = sphi %s4058_s30, %s5284_s30  }
   0x5   : > { %p5269_p1 = scmp.eq.s32.totalorder %s4077_s13, 0  ;;  %p3319_p2 = scmp.ge.s32.totalorder %s3995_s12, 1 }
   0x6   : > { %p253_p3 = scmp.lt.s32.totalorder %s3995_s12, 3  ;;  %s3997_s16 = smov [#allocation4]  }
   0x7   : > { %p4085_p4 = por %p5269_p1, %p69_p0  ;;  %s265_s17 = sshll.u32 %s3997_s16, 4  ;;  %s266_s17 = int_to_ptr.vmem [resolvable:$true] %s265_s17 }
   0x8   : > { %p4089_p5 = pnand %p3319_p2, %p253_p3  ;;  %s4102_s19 = sadd.s32 1, %s3995_s12  }
   0x9   : > { %s5274_s14 = scalar_select %p4085_p4, 1, 0 }
   0xa   : > { %s5275_s15 = scalar_select %p4089_p5, 1, 0 }
   0xb   : > { %p3628_p6 = pneg %p4089_p5  ;;  %5277 = sst [smem:[#allocation8_spill]] %s4102_s19 }
   0xc   : > { %s56_s20 = sadd.s32 1, %s3991_s11  ;;  %s53_s21 = ssub.s32 %s3995_s12, %s4102_s19 }
   0xd   : > { %p4097_p7 = pnand %p3628_p6, %p5269_p1  ;;  %s3899_s24 = scalar_lea.hbm %s5261_s2, 2048 }
   0xe   : > { %p3900_p8 = scmp.ne.s32.totalorder %s5261_s2, %s3899_s24  ;;  %p3906_p12 = scmp.lt.u32.totalorder %s3899_s24, %s5261_s2 }
   0xf   : > { %p3901_p9 = pneg %p4097_p7 }
  0x11   : > { %p3902_p10 = pnand %p3901_p9, %p3900_p8 }
  0x13   : > { %p3903_p11 = pneg %p3902_p10 }
  0x15   : > { %p3908_p13 = pnand %p3906_p12, %p3903_p11 }
  0x17   : > { %3911 = shalt.err (!%p3908_p13)
}
  0x18   : > { %s3912_s29 = scalar_lea.vmem %s266_s17, 2048  ;;  %p3920_p6 = scmp.lt.s32.totalorder %s266_s17, %s266_s17 }
  0x19   : > { %p3913_p0 = scmp.ne.s32.totalorder %s266_s17, %s3912_s29  ;;  %p3921_p1 = scmp.lt.s32.totalorder %s3912_s29, %s3912_s29 }
  0x1b   : > { %p3915_p2 = pnand %p3913_p0, %p3901_p9  ;;  %p3922_p4 = por %p3921_p1, %p3920_p6 }
  0x1d   : > { %p3916_p3 = pneg %p3915_p2 }
  0x1f   : > { %p3923_p5 = pnand %p3922_p4, %p3916_p3 }
  0x21   : > { %3926 = shalt.err (!%p3923_p5)
}
  0x22   : > { %s3998_s30 = smov 128   ;;  %s3999_s16 = smov 8  }
  0x23   : > { %3631 = dma.hbm_to_vmem [thread:$0]  (!%p4097_p7), %s5261_s2, 2048, %s266_s17, [#allocation5], %s3998_s30, %s3998_s30, %s3999_s16  }
  0x24   : > { %p54_p8 = scmp.eq.s32.totalorder %s53_s21, 0  ;;  %p63_p9 = scmp.ne.s32.totalorder %s3991_s11, %s3987_s10 }
  0x25   : > { %p64_p1 = scmp.eq.s32.totalorder %s3995_s12, 0  ;;  %p3637_p4 = scmp.lt.s32.totalorder %s3995_s12, 2 }
  0x26   : > { %s4128_s24 = scalar_select %p54_p8, %s3991_s11, %s56_s20  }
  0x27   : > { %p65_p5 = por %p64_p1, %p63_p9  ;;  %s307_s25 = sand.u32 1, %s3991_s11  }
  0x28   : > { %s3322_s26 = sshll.u32 %s307_s25, 6  ;;  %s3429_s27 = sshll.u32 %s3995_s12, 10 }
  0x29   : > { %s4135_s19 = scalar_lea.hbm %s5260_s1, %s3429_s27  ;;  %s311_s17 = scalar_lea.vmem [#allocation2], %s3322_s26 }
  0x2a   : > { %s319_s18 = sshll.u32 %s311_s17, 4  ;;  %p4139_p7 = pnand %p3637_p4, %p65_p5  ;;  %s4137_s18 = int_to_ptr.vmem [resolvable:$true] %s319_s18 }
  0x2b   : > { %s4143_s12 = scalar_lea.sflag [#allocation3], %s307_s25  ;;  %s3927_s21 = scalar_lea.hbm %s4135_s19, 1024 }
  0x2c   : > { %p3928_p10 = scmp.ne.s32.totalorder %s4135_s19, %s3927_s21  ;;  %p3929_p11 = pneg %p4139_p7 }
  0x2d   : > { %s3932_s22 = scalar_lea.hbm %s5260_s1, 2048  ;;  %p3933_p0 = scmp.lt.u32.totalorder %s4135_s19, %s5260_s1 }
  0x2e   : > { %p3930_p12 = pnand %p3929_p11, %p3928_p10  ;;  %p3934_p2 = scmp.lt.u32.totalorder %s3932_s22, %s3927_s21 }
  0x2f   : > { %p3936_p6 = scmp.lt.u32.totalorder %s3927_s21, %s4135_s19 }
  0x30   : > { %p3931_p13 = pneg %p3930_p12  ;;  %p3935_p3 = por %p3934_p2, %p3933_p0 }
  0x32   : > { %p3937_p8 = por %p3936_p6, %p3935_p3 }
  0x34   : > { %p3938_p9 = pnand %p3937_p8, %p3931_p13 }
  0x36   : > { %3941 = shalt.err (!%p3938_p9)
}
  0x37   : > { %s3942_s25 = scalar_lea.vmem %s4137_s18, 1024  ;;  %s4000_s27 = smov [#allocation2]  }
  0x38   : > { %p3943_p1 = scmp.ne.s32.totalorder %s4137_s18, %s3942_s25  ;;  %s3947_s28 = sshll.u32 %s4000_s27, 4  ;;  %s3948_s28 = int_to_ptr.vmem [resolvable:$false] %s3947_s28 }
  0x39   : > { %s3949_s29 = scalar_lea.vmem %s3948_s28, 2048  ;;  %p3950_p10 = scmp.lt.s32.totalorder %s4137_s18, %s3948_s28 }
  0x3a   : > { %p3945_p4 = pnand %p3943_p1, %p3929_p11  ;;  %p3951_p12 = scmp.lt.s32.totalorder %s3949_s29, %s3942_s25 }
  0x3c   : > { %p3946_p5 = pneg %p3945_p4  ;;  %p3952_p0 = por %p3951_p12, %p3950_p10 }
  0x3e   : > { %p3953_p2 = pnand %p3952_p0, %p3946_p5 }
  0x40   : > { %3956 = shalt.err (!%p3953_p2)
}
  0x41   : > { %s4001_s17 = smov 64   ;;  %s4002_s21 = smov 4  }
  0x42   : > { %3635 = dma.hbm_to_vmem [thread:$0]  (!%p4139_p7), %s4135_s19, 1024, %s4137_s18, %s4143_s12, %s4001_s17, %s4001_s17, %s4002_s21  }
  0x43   : > { %p5279_p11 = scmp.ne.s32.totalorder %s5275_s15, 0 }
  0x44   : > { %s333_s30 = sand.u32 (!%p5279_p11), 1, %s3987_s10   ;;  %p5280_p13 = scmp.ne.s32.totalorder (!%p5279_p11), %s5274_s14, 0 }
  0x45   : > { %331 = sbr.rel (%p5279_p11) target bundleno = 2514 (0x9d2), region = 56  ;;  %s3327_s16 = sshll.u32 (!%p5279_p11), %s333_s30, 6 }
  0x46   : > { %s334_s22 = scalar_lea.sflag (!%p5279_p11), [#allocation3], %s333_s30  ;;  %s4174_s23 = scalar_lea.vmem (!%p5279_p11), [#allocation2], %s3327_s16 }
  0x4c   : > { %3974 = dma.done.wait (%p5280_p13), %s334_s22, 1024  }
  0x4d   : > { %3976 = vsyncadd (%p5280_p13), %s334_s22, 4294966272  ;;  %p5281_p3 = scmp.eq.s32.totalorder %s4077_s13, 0 }
  0x4f   : > { %3978 = dma.done.wait (%p5281_p3), [#allocation5], 2048   ;;  %p5282_p7 = pmov %p5281_p3 }
  0x50   : > { %v4003_v0 = vmov 0   ;;  %s3329_s15 = sshll.u32 %s4077_s13, 3  ;;  %v3681_v1 = vld [vmem:[#allocation4 + $0x4] ss:$8 sps:$4 sm:$0xff]   ;;  %v3683_v2 = vld [vmem:[#allocation4] ss:$8 sps:$4 sm:$0xff]  }
  0x51   : > { %3980 = vsyncadd (%p5282_p7), [#allocation5], 4294965248  ;;  %612 = vmatprep.mubr.bf16.mxu0 %v4003_v0  ;;  %750 = vmatprep.mubr.bf16.mxu1 %v4003_v0  ;;  %p382_p6 = scmp.lt.s32.totalorder %s3329_s15, 15  ;;  %v3684_v3 = vld [vmem:[#allocation4 + $0x14] ss:$8 sps:$4 sm:$0xff]   ;;  %v3713_v31 = vld [vmem:[%s4174_s23] sm:$0xff]  }
  0x52   : > { %580 = vmatprep.subr.bf16.mxu0 %v3681_v1  ;;  %v3686_v4 = vld [vmem:[#allocation4 + $0x10] ss:$8 sps:$4 sm:$0xff]   ;;  %v3687_v5 = vld [vmem:[#allocation4 + $0x24] ss:$8 sps:$4 sm:$0xff]   ;;  %v3689_v6 = vld [vmem:[#allocation4 + $0x20] ss:$8 sps:$4 sm:$0xff]  }
  0x53   : > { %s5288_s15 = smov (!%p382_p6, %s3329_s15), 15  ;;  %581 = vmatpush1.bf16.msra.mxu0 %v3683_v2  ;;  %v3690_v7 = vld [vmem:[#allocation4 + $0x34] ss:$8 sps:$4 sm:$0xff]   ;;  %v3692_v8 = vld [vmem:[#allocation4 + $0x30] ss:$8 sps:$4 sm:$0xff]   ;;  %vm714_vm0 = vcmask 130048  }
  0x54   : > { %582 = vmatprep.subr.bf16.mxu0 %v3684_v3  ;;  %s3430_s14 = sshll.u32 %s5288_s15, 3  ;;  %v3693_v9 = vld [vmem:[#allocation4 + $0x44] ss:$8 sps:$4 sm:$0xff]   ;;  %v3695_v10 = vld [vmem:[#allocation4 + $0x40] ss:$8 sps:$4 sm:$0xff]   ;;  %v3715_v45 = vld [vmem:[%s4174_s23 + $0x10] sm:$0xff]  }
  0x55   : > { %s4190_s20 = scalar_lea.vmem %s5259_s0, %s3430_s14  ;;  %v3696_v11 = vld [vmem:[#allocation4 + $0x54] ss:$8 sps:$4 sm:$0xff]   ;;  %v3698_v12 = vld [vmem:[#allocation4 + $0x50] ss:$8 sps:$4 sm:$0xff]   ;;  %v3699_v13 = vld [vmem:[#allocation4 + $0x64] ss:$8 sps:$4 sm:$0xff]  }
  0x56   : > { %v3701_v14 = vld [vmem:[#allocation4 + $0x60] ss:$8 sps:$4 sm:$0xff]   ;;  %v3702_v15 = vld [vmem:[#allocation4 + $0x74] ss:$8 sps:$4 sm:$0xff]   ;;  %v3704_v16 = vld [vmem:[#allocation4 + $0x70] ss:$8 sps:$4 sm:$0xff]  }
  0x57   : > { %583 = vmatpush1.bf16.msra.mxu0 %v3686_v4  ;;  %v3705_v17 = vld [vmem:[%s4190_s20] sm:$0xff]   ;;  %v3706_v18 = vld [vmem:[%s4190_s20 + $0x8] sm:$0xff]   ;;  %v3707_v19 = vld [vmem:[%s4190_s20 + $0x10] sm:$0xff]   ;;  %s4006_s26 = smov 112   ;;  %s4007_s15 = smov 108  }
  0x58   : > { %584 = vmatprep.subr.bf16.mxu0 %v3687_v5  ;;  %v3708_v20 = vld [vmem:[%s4190_s20 + $0x18] sm:$0xff]   ;;  %v3709_v21 = vld [vmem:[%s4190_s20 + $0x20] sm:$0xff]   ;;  %v3710_v22 = vld [vmem:[%s4190_s20 + $0x28] sm:$0xff]   ;;  %p389_p8 = scmp.lt.s32.totalorder %s4077_s13, 1 }
  0x59   : > { %v3711_v23 = vld [vmem:[%s4190_s20 + $0x30] sm:$0xff]   ;;  %v3712_v24 = vld [vmem:[%s4190_s20 + $0x38] sm:$0xff]   ;;  %v3714_v38 = vld [vmem:[%s4174_s23 + $0x8] sm:$0xff]  }
  0x5a   : > { %v3716_v52 = vld [vmem:[%s4174_s23 + $0x18] sm:$0xff]   ;;  %v3717_v59 = vld [vmem:[%s4174_s23 + $0x20] sm:$0xff]   ;;  %v3718_v3 = vld [vmem:[%s4174_s23 + $0x28] sm:$0xff]   ;;  %s5290_s13 = smov (!%p389_p8, %s4077_s13), 1 }
  0x5b   : > { %585 = vmatpush1.bf16.msra.mxu0 %v3689_v6  ;;  %s3332_s14 = sshll.u32 %s5290_s13, 3 }
  0x5c   : > { %586 = vmatprep.subr.bf16.mxu0 %v3690_v7  ;;  %s392_s20 = scalar_lea.vmem %s5268_s9, %s3332_s14 }
  0x5f   : > { %587 = vmatpush1.bf16.msra.mxu0 %v3692_v8 }
  0x60   : > { %588 = vmatprep.subr.bf16.mxu0 %v3693_v9 }
  0x63   : > { %589 = vmatpush1.bf16.msra.mxu0 %v3695_v10  ;;  %v3719_v10 = vld [vmem:[%s4174_s23 + $0x30] sm:$0xff]  }
  0x64   : > { %590 = vmatprep.subr.bf16.mxu0 %v3696_v11 }
  0x67   : > { %591 = vmatpush1.bf16.msra.mxu0 %v3698_v12 }
  0x68   : > { %592 = vmatprep.subr.bf16.mxu0 %v3699_v13 }
  0x6b   : > { %593 = vmatpush1.bf16.msra.mxu0 %v3701_v14 }
  0x6c   : > { %594 = vmatprep.subr.bf16.mxu0 %v3702_v15 }
  0x6f   : > { %595 = vmatpush1.bf16.msra.mxu0 %v3704_v16 }
  0x72   : > { %613 = vmatmul.mubr.bf16.vlgmr.msra.gmra.mrb[0].mxu0 %v3705_v17  ;;  %v3720_v17 = vld [vmem:[%s4174_s23 + $0x38] sm:$0xff]  }
  0x73   : > { %622 = vmatprep.mubr.bf16.mxu0 %v4003_v0 }
  0x7a   : > { %623 = vmatmul.mubr.bf16.gmra.mrb[4].mxu0 %v3706_v18  ;;  %v1119_v18 = vlaneseq }
  0x7b   : > { %632 = vmatprep.mubr.bf16.mxu0 %v4003_v0 }
  0x82   : > { %633 = vmatmul.mubr.bf16.gmra.mrb[8].mxu0 %v3707_v19  ;;  %v1120_v19 = vshrl.u32 %v1119_v18, 7 }
  0x83   : > { %642 = vmatprep.mubr.bf16.mxu0 %v4003_v0 }
  0x8a   : > { %643 = vmatmul.mubr.bf16.gmra.mrb[12].mxu0 %v3708_v20  ;;  %v4230_v20 = vsub.s32 0, %v1120_v19 }
  0x8b   : > { %652 = vmatprep.mubr.bf16.mxu0 %v4003_v0 }
  0x92   : > { %653 = vmatmul.mubr.bf16.gmra.mrb[16].mxu0 %v3709_v21  ;;  %v394_v21 = vld [vmem:[%s5265_s6] ss:$4 sm:$0x3] }
  0x93   : > { %662 = vmatprep.mubr.bf16.mxu0 %v4003_v0 }
  0x9a   : > { %663 = vmatmul.mubr.bf16.gmra.mrb[20].mxu0 %v3710_v22  ;;  %v4235_v22 = vsub.s32 1, %v1120_v19 }
  0x9b   : > { %672 = vmatprep.mubr.bf16.mxu0 %v4003_v0 }
  0xa2   : > { %673 = vmatmul.mubr.bf16.gmra.mrb[24].mxu0 %v3711_v23  ;;  %v4238_v23 = vrot.slane %v394_v21, %v4230_v20 }
  0xa3   : > { %682 = vmatprep.mubr.bf16.mxu0 %v4003_v0 }
  0xaa   : > { %683 = vmatmul.mubr.bf16.gmra.mrb[28].mxu0 %v3712_v24 }
 0x145   : > { %v614_v25 = vpop.f32.mrb[0].mxu0 }
 0x146   : > { %v616_v26 = vpop.f32.mrb[1].mxu0 }
 0x147   : > { %v618_v27 = vpop.f32.mrb[2].mxu0 }
 0x148   : > { %v693_v28 = vpack.c.bf16 %v618_v27, %v614_v25  ;;  %v620_v29 = vpop.f32.mrb[3].mxu0 }
 0x149   : > { %v694_v30 = vpack.c.bf16 %v620_v29, %v616_v26 }
 0x14b   : > { %718 = vmatprep.subr.bf16.mxu1 %v694_v30 }
 0x14c   : > { %719 = vmatpush1.bf16.msra.mxu1 %v693_v28 }
 0x14d   : > { %v624_v32 = vpop.f32.mrb[4].mxu0 }
 0x14e   : > { %v626_v33 = vpop.f32.mrb[5].mxu0 }
 0x14f   : > { %v628_v34 = vpop.f32.mrb[6].mxu0  ;;  %3360 = vmatmul.mubr.msk.bf16.vlgmr.msra.gmra.mrb[0].mxu1 %vm714_vm0, %v3713_v31 }
 0x150   : > { %v695_v35 = vpack.c.bf16 %v628_v34, %v624_v32  ;;  %v630_v36 = vpop.f32.mrb[7].mxu0  ;;  %801 = vmatprep.mubr.bf16.mxu1 %v4003_v0 }
 0x151   : > { %v696_v37 = vpack.c.bf16 %v630_v36, %v626_v33 }
 0x153   : > { %769 = vmatprep.subr.bf16.mxu1 %v696_v37 }
 0x154   : > { %770 = vmatpush1.bf16.msra.mxu1 %v695_v35 }
 0x155   : > { %v634_v39 = vpop.f32.mrb[8].mxu0 }
 0x156   : > { %v636_v40 = vpop.f32.mrb[9].mxu0 }
 0x157   : > { %v638_v41 = vpop.f32.mrb[10].mxu0  ;;  %3362 = vmatmul.mubr.msk.bf16.vlgmr.msra.gmra.mrb[4].mxu1 %vm714_vm0, %v3714_v38 }
 0x158   : > { %v697_v42 = vpack.c.bf16 %v638_v41, %v634_v39  ;;  %v640_v43 = vpop.f32.mrb[11].mxu0  ;;  %852 = vmatprep.mubr.bf16.mxu1 %v4003_v0 }
 0x159   : > { %v698_v44 = vpack.c.bf16 %v640_v43, %v636_v40 }
 0x15b   : > { %820 = vmatprep.subr.bf16.mxu1 %v698_v44 }
 0x15c   : > { %821 = vmatpush1.bf16.msra.mxu1 %v697_v42 }
 0x15d   : > { %v644_v46 = vpop.f32.mrb[12].mxu0 }
 0x15e   : > { %v646_v47 = vpop.f32.mrb[13].mxu0 }
 0x15f   : > { %v648_v48 = vpop.f32.mrb[14].mxu0  ;;  %3364 = vmatmul.mubr.msk.bf16.vlgmr.msra.gmra.mrb[8].mxu1 %vm714_vm0, %v3715_v45 }
 0x160   : > { %v699_v49 = vpack.c.bf16 %v648_v48, %v644_v46  ;;  %v650_v50 = vpop.f32.mrb[15].mxu0  ;;  %903 = vmatprep.mubr.bf16.mxu1 %v4003_v0 }
 0x161   : > { %v700_v51 = vpack.c.bf16 %v650_v50, %v646_v47 }
 0x163   : > { %871 = vmatprep.subr.bf16.mxu1 %v700_v51 }
 0x164   : > { %872 = vmatpush1.bf16.msra.mxu1 %v699_v49 }
 0x165   : > { %v654_v53 = vpop.f32.mrb[16].mxu0 }
 0x166   : > { %v656_v54 = vpop.f32.mrb[17].mxu0 }
 0x167   : > { %v658_v55 = vpop.f32.mrb[18].mxu0  ;;  %3366 = vmatmul.mubr.msk.bf16.vlgmr.msra.gmra.mrb[12].mxu1 %vm714_vm0, %v3716_v52 }
 0x168   : > { %v701_v56 = vpack.c.bf16 %v658_v55, %v654_v53  ;;  %v660_v57 = vpop.f32.mrb[19].mxu0  ;;  %954 = vmatprep.mubr.bf16.mxu1 %v4003_v0 }
 0x169   : > { %v702_v58 = vpack.c.bf16 %v660_v57, %v656_v54 }
 0x16b   : > { %922 = vmatprep.subr.bf16.mxu1 %v702_v58 }
 0x16c   : > { %923 = vmatpush1.bf16.msra.mxu1 %v701_v56 }
 0x16d   : > { %v664_v60 = vpop.f32.mrb[20].mxu0 }
 0x16e   : > { %v666_v61 = vpop.f32.mrb[21].mxu0 }
 0x16f   : > { %v668_v62 = vpop.f32.mrb[22].mxu0  ;;  %3368 = vmatmul.mubr.msk.bf16.vlgmr.msra.gmra.mrb[16].mxu1 %vm714_vm0, %v3717_v59 }
 0x170   : > { %v703_v63 = vpack.c.bf16 %v668_v62, %v664_v60  ;;  %v670_v1 = vpop.f32.mrb[23].mxu0  ;;  %1005 = vmatprep.mubr.bf16.mxu1 %v4003_v0 }
 0x171   : > { %v704_v2 = vpack.c.bf16 %v670_v1, %v666_v61 }
 0x173   : > { %973 = vmatprep.subr.bf16.mxu1 %v704_v2 }
 0x174   : > { %974 = vmatpush1.bf16.msra.mxu1 %v703_v63 }
 0x175   : > { %v674_v4 = vpop.f32.mrb[24].mxu0 }
 0x176   : > { %v676_v5 = vpop.f32.mrb[25].mxu0 }
 0x177   : > { %v678_v6 = vpop.f32.mrb[26].mxu0  ;;  %3370 = vmatmul.mubr.msk.bf16.vlgmr.msra.gmra.mrb[20].mxu1 %vm714_vm0, %v3718_v3 }
 0x178   : > { %v705_v7 = vpack.c.bf16 %v678_v6, %v674_v4  ;;  %v680_v8 = vpop.f32.mrb[27].mxu0  ;;  %1056 = vmatprep.mubr.bf16.mxu1 %v4003_v0 }
 0x179   : > { %v706_v9 = vpack.c.bf16 %v680_v8, %v676_v5 }
 0x17b   : > { %1024 = vmatprep.subr.bf16.mxu1 %v706_v9 }
 0x17c   : > { %1025 = vmatpush1.bf16.msra.mxu1 %v705_v7 }
 0x17d   : > { %v684_v11 = vpop.f32.mrb[28].mxu0 }
 0x17e   : > { %v686_v12 = vpop.f32.mrb[29].mxu0 }
 0x17f   : > { %v688_v13 = vpop.f32.mrb[30].mxu0  ;;  %3372 = vmatmul.mubr.msk.bf16.vlgmr.msra.gmra.mrb[24].mxu1 %vm714_vm0, %v3719_v10 }
 0x180   : > { %v707_v14 = vpack.c.bf16 %v688_v13, %v684_v11  ;;  %v690_v15 = vpop.f32.mrb[31].mxu0  ;;  %1107 = vmatprep.mubr.bf16.mxu1 %v4003_v0  ;;  %v4241_v0 = vrot.slane %v394_v21, %v4235_v22 }
 0x181   : > { %v708_v16 = vpack.c.bf16 %v690_v15, %v686_v12 }
 0x183   : > { %1075 = vmatprep.subr.bf16.mxu1 %v708_v16 }
 0x184   : > { %1076 = vmatpush1.bf16.msra.mxu1 %v707_v14 }
 0x187   : > { %3374 = vmatmul.mubr.msk.bf16.vlgmr.msra.gmra.mrb[28].mxu1 %vm714_vm0, %v3720_v17 }
 0x222   : > { %v752_v24 = vpop.f32.mrb[0].mxu1 }
 0x223   : > { %v4244_v25 = vadd.f32 %v4238_v23, %v752_v24  ;;  %v754_v26 = vpop.f32.mrb[1].mxu1 }
 0x224   : > { %v4247_v27 = vadd.f32 %v4241_v0, %v754_v26  ;;  %v756_v28 = vpop.f32.mrb[2].mxu1 }
 0x225   : > { %v758_v29 = vpop.f32.mrb[3].mxu1  ;;  %v4250_v30 = vadd.f32 %v4238_v23, %v756_v28 }
 0x226   : > { %v4253_v31 = vadd.f32 %v4241_v0, %v758_v29  ;;  %v1161_v32 = vadd.f32 %v4247_v27, %v4244_v25 }
 0x228   : > { %1162 = vadd.xlane.f32.xlu0 %v1161_v32  ;;  %v1164_v34 = vadd.f32 %v4253_v31, %v4250_v30 }
 0x22a   : > { %v803_v33 = vpop.f32.mrb[4].mxu1 }
 0x22b   : > { %v4260_v35 = vadd.f32 %v4238_v23, %v803_v33  ;;  %v805_v36 = vpop.f32.mrb[5].mxu1 }
 0x22c   : > { %v4263_v37 = vadd.f32 %v4241_v0, %v805_v36  ;;  %1165 = vadd.xlane.f32.xlu0 %v1164_v34  ;;  %v807_v38 = vpop.f32.mrb[6].mxu1 }
 0x22d   : > { %v809_v39 = vpop.f32.mrb[7].mxu1  ;;  %v4266_v40 = vadd.f32 %v4238_v23, %v807_v38 }
 0x22e   : > { %v4269_v41 = vadd.f32 %v4241_v0, %v809_v39  ;;  %v1167_v42 = vadd.f32 %v4263_v37, %v4260_v35 }
 0x230   : > { %1168 = vadd.xlane.f32.xlu1 %v1167_v42  ;;  %v1170_v44 = vadd.f32 %v4269_v41, %v4266_v40 }
 0x232   : > { %v854_v43 = vpop.f32.mrb[8].mxu1 }
 0x233   : > { %v4276_v45 = vadd.f32 %v4238_v23, %v854_v43  ;;  %v856_v46 = vpop.f32.mrb[9].mxu1 }
 0x234   : > { %v4279_v47 = vadd.f32 %v4241_v0, %v856_v46  ;;  %v858_v48 = vpop.f32.mrb[10].mxu1  ;;  %1171 = vadd.xlane.f32.xlu1 %v1170_v44 }
 0x235   : > { %v4282_v49 = vadd.f32 %v4238_v23, %v858_v48  ;;  %v860_v50 = vpop.f32.mrb[11].mxu1 }
 0x236   : > { %v4285_v51 = vadd.f32 %v4241_v0, %v860_v50  ;;  %v1173_v52 = vadd.f32 %v4279_v47, %v4276_v45 }
 0x238   : > { %1174 = vadd.xlane.f32.xlu0 %v1173_v52  ;;  %v1176_v53 = vadd.f32 %v4285_v51, %v4282_v49 }
 0x23a   : > { %v905_v54 = vpop.f32.mrb[12].mxu1  ;;  %1177 = vadd.xlane.f32.xlu1 %v1176_v53 }
 0x23b   : > { %v4292_v55 = vadd.f32 %v4238_v23, %v905_v54  ;;  %v907_v56 = vpop.f32.mrb[13].mxu1 }
 0x23c   : > { %v4295_v57 = vadd.f32 %v4241_v0, %v907_v56  ;;  %v909_v58 = vpop.f32.mrb[14].mxu1 }
 0x23d   : > { %v4298_v59 = vadd.f32 %v4238_v23, %v909_v58  ;;  %v911_v60 = vpop.f32.mrb[15].mxu1  ;;  %v3721_v58 = vld [vmem:[%s5262_s3 + $0x40] sm:$0xff]  }
 0x23e   : > { %v4301_v61 = vadd.f32 %v4241_v0, %v911_v60  ;;  %v1179_v62 = vadd.f32 %v4295_v57, %v4292_v55  ;;  %3431 = vmatprep.subr.bf16.mxu1 %v3721_v58 }
 0x240   : > { %1180 = vadd.xlane.f32.xlu0 %v1179_v62  ;;  %v1182_v63 = vadd.f32 %v4301_v61, %v4298_v59 }
 0x242   : > { %v956_v1 = vpop.f32.mrb[16].mxu1  ;;  %1183 = vadd.xlane.f32.xlu1 %v1182_v63 }
 0x243   : > { %v4308_v2 = vadd.f32 %v4238_v23, %v956_v1  ;;  %v958_v3 = vpop.f32.mrb[17].mxu1 }
 0x244   : > { %v4311_v4 = vadd.f32 %v4241_v0, %v958_v3  ;;  %v960_v5 = vpop.f32.mrb[18].mxu1 }
 0x245   : > { %v4314_v6 = vadd.f32 %v4238_v23, %v960_v5  ;;  %v962_v7 = vpop.f32.mrb[19].mxu1 }
 0x246   : > { %v4317_v8 = vadd.f32 %v4241_v0, %v962_v7  ;;  %v1185_v9 = vadd.f32 %v4311_v4, %v4308_v2 }
 0x248   : > { %1186 = vadd.xlane.f32.xlu0 %v1185_v9  ;;  %v1188_v10 = vadd.f32 %v4317_v8, %v4314_v6 }
 0x24a   : > { %v1007_v11 = vpop.f32.mrb[20].mxu1  ;;  %1189 = vadd.xlane.f32.xlu1 %v1188_v10 }
 0x24b   : > { %v4324_v12 = vadd.f32 %v4238_v23, %v1007_v11  ;;  %v1009_v13 = vpop.f32.mrb[21].mxu1 }
 0x24c   : > { %v4327_v14 = vadd.f32 %v4241_v0, %v1009_v13  ;;  %v1011_v15 = vpop.f32.mrb[22].mxu1 }
 0x24d   : > { %v4330_v16 = vadd.f32 %v4238_v23, %v1011_v15  ;;  %v1013_v17 = vpop.f32.mrb[23].mxu1 }
 0x24e   : > { %v4333_v18 = vadd.f32 %v4241_v0, %v1013_v17  ;;  %v1191_v19 = vadd.f32 %v4327_v14, %v4324_v12 }
 0x250   : > { %1192 = vadd.xlane.f32.xlu0 %v1191_v19  ;;  %v1194_v21 = vadd.f32 %v4333_v18, %v4330_v16 }
 0x252   : > { %v1058_v24 = vpop.f32.mrb[24].mxu1  ;;  %1195 = vadd.xlane.f32.xlu1 %v1194_v21 }
 0x253   : > { %v4340_v26 = vadd.f32 %v4238_v23, %v1058_v24  ;;  %v1060_v28 = vpop.f32.mrb[25].mxu1 }
 0x254   : > { %v4343_v29 = vadd.f32 %v4241_v0, %v1060_v28  ;;  %v1062_v32 = vpop.f32.mrb[26].mxu1 }
 0x255   : > { %v4346_v33 = vadd.f32 %v4238_v23, %v1062_v32  ;;  %v1064_v34 = vpop.f32.mrb[27].mxu1 }
 0x256   : > { %v4349_v36 = vadd.f32 %v4241_v0, %v1064_v34  ;;  %v1197_v38 = vadd.f32 %v4343_v29, %v4340_v26 }
 0x258   : > { %1198 = vadd.xlane.f32.xlu0 %v1197_v38  ;;  %v1200_v39 = vadd.f32 %v4349_v36, %v4346_v33 }
 0x25a   : > { %v1109_v42 = vpop.f32.mrb[28].mxu1  ;;  %1201 = vadd.xlane.f32.xlu1 %v1200_v39 }
 0x25b   : > { %v4356_v43 = vadd.f32 %v4238_v23, %v1109_v42  ;;  %v1111_v44 = vpop.f32.mrb[29].mxu1 }
 0x25c   : > { %v4359_v46 = vadd.f32 %v4241_v0, %v1111_v44  ;;  %v1113_v48 = vpop.f32.mrb[30].mxu1 }
 0x25d   : > { %v4362_v50 = vadd.f32 %v4238_v23, %v1113_v48  ;;  %v1115_v52 = vpop.f32.mrb[31].mxu1 }
 0x25e   : > { %v4365_v53 = vadd.f32 %v4241_v0, %v1115_v52  ;;  %v1203_v54 = vadd.f32 %v4359_v46, %v4356_v43 }
 0x260   : > { %1204 = vadd.xlane.f32.xlu0 %v1203_v54  ;;  %v1206_v56 = vadd.f32 %v4365_v53, %v4362_v50 }
 0x262   : > { %1207 = vadd.xlane.f32.xlu1 %v1206_v56 }
 0x2b5   : > { %v1163_v60 = vpop.xlane.xlu0 %1162 }
 0x2b6   : > { %v1210_v23 = vmul.f32 0.00390625, %v1163_v60 }
 0x2b8   : > { %v4375_v62 = vsub.f32 %v4244_v25, %v1210_v23  ;;  %v4378_v0 = vsub.f32 %v4247_v27, %v1210_v23  ;;  %v3723_v23 = vld [vmem:[%s5262_s3 + $0x48] sm:$0xff]  }
 0x2b9   : > { %v1166_v63 = vpop.xlane.xlu0 %1165 }
 0x2ba   : > { %v1211_v1 = vmul.f32 0.00390625, %v1166_v63  ;;  %v1258_v3 = vmul.f32 %v4375_v62, %v4375_v62  ;;  %v1259_v5 = vmul.f32 %v4378_v0, %v4378_v0 }
 0x2bc   : > { %v4385_v7 = vsub.f32 %v4250_v30, %v1211_v1  ;;  %v4388_v9 = vsub.f32 %v4253_v31, %v1211_v1  ;;  %v1290_v10 = vadd.f32 %v1259_v5, %v1258_v3  ;;  %v3724_v3 = vld [vmem:[%s5262_s3 + $0x8] sm:$0xff]  }
 0x2bd   : > { %v1169_v25 = vpop.xlane.xlu1 %1168 }
 0x2be   : > { %v1212_v11 = vmul.f32 0.00390625, %v1169_v25  ;;  %1291 = vadd.xlane.f32.xlu0 %v1290_v10  ;;  %v1260_v27 = vmul.f32 %v4385_v7, %v4385_v7  ;;  %v1261_v13 = vmul.f32 %v4388_v9, %v4388_v9 }
 0x2c0   : > { %v4395_v15 = vsub.f32 %v4260_v35, %v1212_v11  ;;  %v4398_v17 = vsub.f32 %v4263_v37, %v1212_v11  ;;  %v1293_v30 = vadd.f32 %v1261_v13, %v1260_v27  ;;  %v3725_v27 = vld [vmem:[%s5262_s3 + $0x50] sm:$0xff]  }
 0x2c1   : > { %v1172_v19 = vpop.xlane.xlu1 %1171 }
 0x2c2   : > { %v1213_v31 = vmul.f32 0.00390625, %v1172_v19  ;;  %1294 = vadd.xlane.f32.xlu1 %v1293_v30  ;;  %v1262_v21 = vmul.f32 %v4395_v15, %v4395_v15  ;;  %v1263_v24 = vmul.f32 %v4398_v17, %v4398_v17  ;;  %v3726_v19 = vld [vmem:[%s5262_s3 + $0x10] sm:$0xff]  }
 0x2c4   : > { %v4405_v28 = vsub.f32 %v4266_v40, %v1213_v31  ;;  %v4408_v32 = vsub.f32 %v4269_v41, %v1213_v31  ;;  %v1296_v35 = vadd.f32 %v1263_v24, %v1262_v21  ;;  %v3727_v24 = vld [vmem:[%s5262_s3 + $0x58] sm:$0xff]  }
 0x2c5   : > { %v1175_v34 = vpop.xlane.xlu0 %1174 }
 0x2c6   : > { %v1214_v37 = vmul.f32 0.00390625, %v1175_v34  ;;  %1297 = vadd.xlane.f32.xlu0 %v1296_v35  ;;  %v1264_v38 = vmul.f32 %v4405_v28, %v4405_v28  ;;  %v1265_v39 = vmul.f32 %v4408_v32, %v4408_v32 }
 0x2c7   : > { %v1178_v42 = vpop.xlane.xlu1 %1177 }
 0x2c8   : > { %v4415_v44 = vsub.f32 %v4276_v45, %v1214_v37  ;;  %v4418_v40 = vsub.f32 %v4279_v47, %v1214_v37  ;;  %v1215_v48 = vmul.f32 0.00390625, %v1178_v42  ;;  %v1299_v41 = vadd.f32 %v1265_v39, %v1264_v38  ;;  %v3722_v45 = vld [vmem:[%s5262_s3] sm:$0xff]   ;;  %v3728_v37 = vld [vmem:[%s5262_s3 + $0x18] sm:$0xff]  }
 0x2c9   : > { %3432 = vmatpush3.bf16.msra.mxu1 %v3722_v45  ;;  %v3730_v45 = vld [vmem:[%s5262_s3 + $0x20] sm:$0xff]  }
 0x2ca   : > { %v4421_v52 = vsub.f32 %v4282_v49, %v1215_v48  ;;  %v4424_v54 = vsub.f32 %v4285_v51, %v1215_v48  ;;  %1300 = vadd.xlane.f32.xlu1 %v1299_v41  ;;  %v1266_v56 = vmul.f32 %v4415_v44, %v4415_v44  ;;  %v1267_v58 = vmul.f32 %v4418_v40, %v4418_v40  ;;  %v3729_v41 = vld [vmem:[%s5262_s3 + $0x60] sm:$0xff]  }
 0x2cb   : > { %3433 = vmatprep.subr.bf16.mxu1 %v3723_v23 }
 0x2cc   : > { %v1302_v47 = vadd.f32 %v1267_v58, %v1266_v56  ;;  %v1268_v60 = vmul.f32 %v4421_v52, %v4421_v52  ;;  %v1269_v49 = vmul.f32 %v4424_v54, %v4424_v54 }
 0x2cd   : > { %v1181_v51 = vpop.xlane.xlu0 %1180  ;;  %3434 = vmatpush3.bf16.msra.mxu1 %v3724_v3 }
 0x2ce   : > { %v1216_v63 = vmul.f32 0.00390625, %v1181_v51  ;;  %1303 = vadd.xlane.f32.xlu0 %v1302_v47  ;;  %v1305_v1 = vadd.f32 %v1269_v49, %v1268_v60  ;;  %3435 = vmatprep.subr.bf16.mxu1 %v3725_v27  ;;  %v3731_v49 = vld [vmem:[%s5262_s3 + $0x68] sm:$0xff]   ;;  %v3733_v27 = vld [vmem:[%s5262_s3 + $0x70] sm:$0xff]  }
 0x2cf   : > { %v1184_v5 = vpop.xlane.xlu1 %1183 }
 0x2d0   : > { %v4444_v10 = vsub.f32 %v4292_v55, %v1216_v63  ;;  %v4447_v25 = vsub.f32 %v4295_v57, %v1216_v63  ;;  %v1217_v11 = vmul.f32 0.00390625, %v1184_v5  ;;  %1306 = vadd.xlane.f32.xlu1 %v1305_v1  ;;  %v3732_v63 = vld [vmem:[%s5262_s3 + $0x28] sm:$0xff]  }
 0x2d1   : > { %3436 = vmatpush3.bf16.msra.mxu1 %v3726_v19  ;;  %v3734_v19 = vld [vmem:[%s5262_s3 + $0x30] sm:$0xff]  }
 0x2d2   : > { %v4453_v13 = vsub.f32 %v4298_v59, %v1217_v11  ;;  %v4456_v30 = vsub.f32 %v4301_v61, %v1217_v11  ;;  %v1270_v55 = vmul.f32 %v4444_v10, %v4444_v10  ;;  %v1271_v57 = vmul.f32 %v4447_v25, %v4447_v25  ;;  %3437 = vmatprep.subr.bf16.mxu1 %v3727_v24 }
 0x2d4   : > { %v1308_v31 = vadd.f32 %v1271_v57, %v1270_v55  ;;  %v1272_v21 = vmul.f32 %v4453_v13, %v4453_v13  ;;  %v1273_v59 = vmul.f32 %v4456_v30, %v4456_v30 }
 0x2d5   : > { %v1187_v61 = vpop.xlane.xlu0 %1186  ;;  %3438 = vmatpush3.bf16.msra.mxu1 %v3728_v37 }
 0x2d6   : > { %v1218_v35 = vmul.f32 0.00390625, %v1187_v61  ;;  %1309 = vadd.xlane.f32.xlu0 %v1308_v31  ;;  %v1311_v34 = vadd.f32 %v1273_v59, %v1272_v21  ;;  %3439 = vmatprep.subr.bf16.mxu1 %v3729_v41  ;;  %v3735_v59 = vld [vmem:[%s5262_s3 + $0x78] sm:$0xff]  }
 0x2d7   : > { %v1190_v38 = vpop.xlane.xlu1 %1189 }
 0x2d8   : > { %v4476_v39 = vsub.f32 %v4308_v2, %v1218_v35  ;;  %v4479_v42 = vsub.f32 %v4311_v4, %v1218_v35  ;;  %v1219_v48 = vmul.f32 0.00390625, %v1190_v38  ;;  %1312 = vadd.xlane.f32.xlu1 %v1311_v34  ;;  %v3736_v35 = vld [vmem:[%s5262_s3 + $0x38] sm:$0xff]  }
 0x2d9   : > { %3440 = vmatpush3.bf16.msra.mxu1 %v3730_v45 }
 0x2da   : > { %v4485_v56 = vsub.f32 %v4314_v6, %v1219_v48  ;;  %v4488_v58 = vsub.f32 %v4317_v8, %v1219_v48  ;;  %v1274_v2 = vmul.f32 %v4476_v39, %v4476_v39  ;;  %v1275_v4 = vmul.f32 %v4479_v42, %v4479_v42  ;;  %3441 = vmatprep.subr.bf16.mxu1 %v3731_v49 }
 0x2dc   : > { %v1314_v47 = vadd.f32 %v1275_v4, %v1274_v2  ;;  %v1276_v60 = vmul.f32 %v4485_v56, %v4485_v56  ;;  %v1277_v6 = vmul.f32 %v4488_v58, %v4488_v58 }
 0x2dd   : > { %v1193_v8 = vpop.xlane.xlu0 %1192  ;;  %3442 = vmatpush3.bf16.msra.mxu1 %v3732_v63 }
 0x2de   : > { %v1220_v51 = vmul.f32 0.00390625, %v1193_v8  ;;  %1315 = vadd.xlane.f32.xlu0 %v1314_v47  ;;  %v1317_v23 = vadd.f32 %v1277_v6, %v1276_v60  ;;  %3443 = vmatprep.subr.bf16.mxu1 %v3733_v27 }
 0x2df   : > { %v1196_v1 = vpop.xlane.xlu1 %1195 }
 0x2e0   : > { %v4508_v3 = vsub.f32 %v4324_v12, %v1220_v51  ;;  %v4511_v5 = vsub.f32 %v4327_v14, %v1220_v51  ;;  %v1221_v11 = vmul.f32 0.00390625, %v1196_v1  ;;  %1318 = vadd.xlane.f32.xlu1 %v1317_v23 }
 0x2e1   : > { %3444 = vmatpush3.bf16.msra.mxu1 %v3734_v19 }
 0x2e2   : > { %v4517_v55 = vsub.f32 %v4330_v16, %v1221_v11  ;;  %v4520_v57 = vsub.f32 %v4333_v18, %v1221_v11  ;;  %v1278_v12 = vmul.f32 %v4508_v3, %v4508_v3  ;;  %v1279_v14 = vmul.f32 %v4511_v5, %v4511_v5  ;;  %3445 = vmatprep.subr.bf16.mxu1 %v3735_v59  ;;  %v3333_v59 = vld [vmem:[%s5265_s6 + $0x1] ss:$4 sm:$0x3] }
 0x2e4   : > { %v1320_v31 = vadd.f32 %v1279_v14, %v1278_v12  ;;  %v1280_v21 = vmul.f32 %v4517_v55, %v4517_v55  ;;  %v1281_v16 = vmul.f32 %v4520_v57, %v4520_v57 }
 0x2e5   : > { %v1199_v18 = vpop.xlane.xlu0 %1198  ;;  %3446 = vmatpush3.bf16.msra.mxu1 %v3736_v35  ;;  %v3334_v35 = vld [vmem:[%s5265_s6 + $0x2] ss:$4 sm:$0x3] }
 0x2e6   : > { %v1222_v61 = vmul.f32 0.00390625, %v1199_v18  ;;  %1321 = vadd.xlane.f32.xlu0 %v1320_v31  ;;  %v1323_v24 = vadd.f32 %v1281_v16, %v1280_v21 }
 0x2e7   : > { %v1202_v34 = vpop.xlane.xlu1 %1201 }
 0x2e8   : > { %v4540_v37 = vsub.f32 %v4340_v26, %v1222_v61  ;;  %v4543_v38 = vsub.f32 %v4343_v29, %v1222_v61  ;;  %v1223_v48 = vmul.f32 0.00390625, %v1202_v34  ;;  %1324 = vadd.xlane.f32.xlu1 %v1323_v24 }
 0x2ea   : > { %v4546_v41 = vsub.f32 %v4346_v33, %v1223_v48  ;;  %v4549_v2 = vsub.f32 %v4349_v36, %v1223_v48  ;;  %v1282_v4 = vmul.f32 %v4540_v37, %v4540_v37  ;;  %v1283_v45 = vmul.f32 %v4543_v38, %v4543_v38 }
 0x2eb   : > { %v4586_v48 = vrot.slane %v3333_v59, %v4230_v20 }
 0x2ec   : > { %v1326_v26 = vadd.f32 %v1283_v45, %v1282_v4  ;;  %v1284_v29 = vmul.f32 %v4546_v41, %v4546_v41  ;;  %v1285_v47 = vmul.f32 %v4549_v2, %v4549_v2  ;;  %v4589_v4 = vrot.slane %v3333_v59, %v4235_v22 }
 0x2ed   : > { %v1205_v60 = vpop.xlane.xlu0 %1204 }
 0x2ee   : > { %v1224_v6 = vmul.f32 0.00390625, %v1205_v60  ;;  %1327 = vadd.xlane.f32.xlu0 %v1326_v26  ;;  %v1329_v33 = vadd.f32 %v1285_v47, %v1284_v29  ;;  %v4592_v29 = vrot.slane %v3334_v35, %v4230_v20 }
 0x2ef   : > { %v1208_v8 = vpop.xlane.xlu1 %1207 }
 0x2f0   : > { %v4560_v36 = vsub.f32 %v4356_v43, %v1224_v6  ;;  %v4563_v49 = vsub.f32 %v4359_v46, %v1224_v6  ;;  %v1225_v51 = vmul.f32 0.00390625, %v1208_v8  ;;  %1330 = vadd.xlane.f32.xlu1 %v1329_v33  ;;  %v4597_v33 = vrot.slane %v3334_v35, %v4235_v22 }
 0x2f2   : > { %v4566_v23 = vsub.f32 %v4362_v50, %v1225_v51  ;;  %v4569_v63 = vsub.f32 %v4365_v53, %v1225_v51  ;;  %v1286_v1 = vmul.f32 %v4560_v36, %v4560_v36  ;;  %v1287_v11 = vmul.f32 %v4563_v49, %v4563_v49 }
 0x2f4   : > { %v1332_v27 = vadd.f32 %v1287_v11, %v1286_v1  ;;  %v1288_v43 = vmul.f32 %v4566_v23, %v4566_v23  ;;  %v1289_v46 = vmul.f32 %v4569_v63, %v4569_v63 }
 0x2f6   : > { %1333 = vadd.xlane.f32.xlu0 %v1332_v27  ;;  %v1335_v12 = vadd.f32 %v1289_v46, %v1288_v43 }
 0x2f8   : > { %1336 = vadd.xlane.f32.xlu1 %v1335_v12 }
 0x34b   : > { %v1292_v50 = vpop.xlane.xlu0 %1291 }
 0x34c   : > { %v1338_v14 = vmul.f32 0.00390625, %v1292_v50 }
 0x34e   : > { %v1354_v53 = vadd.f32 1e-05, %v1338_v14 }
 0x34f   : > { %v1295_v19 = vpop.xlane.xlu1 %1294 }
 0x350   : > { %3742 = vrsqrt.f32 %v1354_v53  ;;  %v1339_v31 = vmul.f32 0.00390625, %v1295_v19 }
 0x352   : > { %v1355_v21 = vadd.f32 1e-05, %v1339_v31 }
 0x353   : > { %v1298_v16 = vpop.xlane.xlu0 %1297 }
 0x354   : > { %3744 = vrsqrt.f32 %v1355_v21  ;;  %v1340_v18 = vmul.f32 0.00390625, %v1298_v16 }
 0x356   : > { %v1356_v61 = vadd.f32 1e-05, %v1340_v18 }
 0x357   : > { %v1301_v24 = vpop.xlane.xlu1 %1300 }
 0x358   : > { %3746 = vrsqrt.f32 %v1356_v61  ;;  %v1341_v34 = vmul.f32 0.00390625, %v1301_v24 }
 0x35a   : > { %v3743_v45 = vpop.eup %3742  ;;  %v1357_v26 = vadd.f32 1e-05, %v1341_v34 }
 0x35b   : > { %v1386_v47 = vmul.f32 %v3743_v45, %v4375_v62  ;;  %v1387_v60 = vmul.f32 %v3743_v45, %v4378_v0  ;;  %v1304_v6 = vpop.xlane.xlu0 %1303 }
 0x35c   : > { %3748 = vrsqrt.f32 %v1357_v26  ;;  %v1342_v8 = vmul.f32 0.00390625, %v1304_v6 }
 0x35d   : > { %v1429_v51 = vmul.f32 %v4586_v48, %v1386_v47  ;;  %v1307_v1 = vpop.xlane.xlu1 %1306  ;;  %v1430_v11 = vmul.f32 %v4589_v4, %v1387_v60 }
 0x35e   : > { %v3745_v27 = vpop.eup %3744  ;;  %v1358_v43 = vadd.f32 1e-05, %v1342_v8  ;;  %v1343_v46 = vmul.f32 0.00390625, %v1307_v1 }
 0x35f   : > { %v1388_v20 = vmul.f32 %v3745_v27, %v4385_v7  ;;  %v1389_v62 = vmul.f32 %v3745_v27, %v4388_v9  ;;  %v1473_v0 = vadd.f32 %v4597_v33, %v1430_v11  ;;  %v1472_v12 = vadd.f32 %v4592_v29, %v1429_v51 }
 0x360   : > { %3750 = vrsqrt.f32 %v1358_v43  ;;  %v1359_v22 = vadd.f32 1e-05, %v1343_v46 }
 0x361   : > { %v1431_v50 = vmul.f32 %v4586_v48, %v1388_v20  ;;  %v1432_v14 = vmul.f32 %v4589_v4, %v1389_v62  ;;  %vm1505_vm1 = vcmp.ge.f32.partialorder %v1473_v0, 0.0  ;;  %v1537_v53 = vmul.f32 0.2, %v1473_v0 }
 0x362   : > { %v3747_v19 = vpop.eup %3746  ;;  %3752 = vrsqrt.f32 %v1359_v22  ;;  %vm1504_vm2 = vcmp.ge.f32.partialorder %v1472_v12, 0.0  ;;  %v1536_v31 = vmul.f32 0.2, %v1472_v12 }
 0x363   : > { %v1390_v7 = vmul.f32 %v3747_v19, %v4395_v15  ;;  %v1391_v9 = vmul.f32 %v3747_v19, %v4398_v17  ;;  %v1310_v21 = vpop.xlane.xlu0 %1309  ;;  %v1475_v16 = vadd.f32 %v4597_v33, %v1432_v14  ;;  %v1569_v59 = vsel %vm1505_vm1, %v1473_v0, %v1537_v53 }
 0x364   : > { %v1344_v18 = vmul.f32 0.00390625, %v1310_v21  ;;  %v1474_v61 = vadd.f32 %v4592_v29, %v1431_v50  ;;  %v1568_v24 = vsel %vm1504_vm2, %v1472_v12, %v1536_v31 }
 0x365   : > { %v1313_v35 = vpop.xlane.xlu1 %1312  ;;  %vm1507_vm3 = vcmp.ge.f32.partialorder %v1475_v16, 0.0  ;;  %v1539_v34 = vmul.f32 0.2, %v1475_v16  ;;  %v1434_v45 = vmul.f32 %v4589_v4, %v1391_v9  ;;  %v1433_v26 = vmul.f32 %v4586_v48, %v1390_v7 }
 0x366   : > { %v3749_v47 = vpop.eup %3748  ;;  %v1360_v60 = vadd.f32 1e-05, %v1344_v18  ;;  %v1345_v15 = vmul.f32 0.00390625, %v1313_v35  ;;  %vm1506_vm4 = vcmp.ge.f32.partialorder %v1474_v61, 0.0  ;;  %v1538_v17 = vmul.f32 0.2, %v1474_v61 }
 0x367   : > { %v1392_v6 = vmul.f32 %v3749_v47, %v4405_v28  ;;  %v1393_v8 = vmul.f32 %v3749_v47, %v4408_v32  ;;  %v1571_v51 = vsel %vm1507_vm3, %v1475_v16, %v1539_v34  ;;  %v1477_v1 = vadd.f32 %v4597_v33, %v1434_v45 }
 0x368   : > { %3754 = vrsqrt.f32 %v1360_v60  ;;  %v1361_v11 = vadd.f32 1e-05, %v1345_v15  ;;  %v1601_v27 = vpack.c.bf16 %v1571_v51, %v1569_v59  ;;  %v1570_v43 = vsel %vm1506_vm4, %v1474_v61, %v1538_v17 }
 0x369   : > { %v1600_v46 = vpack.c.bf16 %v1570_v43, %v1568_v24  ;;  %v1436_v20 = vmul.f32 %v4589_v4, %v1393_v8  ;;  %vm1509_vm5 = vcmp.ge.f32.partialorder %v1477_v1, 0.0  ;;  %v1541_v62 = vmul.f32 0.2, %v1477_v1 }
 0x36a   : > { %v3751_v0 = vpop.eup %3750  ;;  %3756 = vrsqrt.f32 %v1361_v11  ;;  %1776 = vmatprep.mubr.bf16.mxu1 %v1601_v27  ;;  %v1435_v12 = vmul.f32 %v4586_v48, %v1392_v6  ;;  %v1476_v28 = vadd.f32 %v4592_v29, %v1433_v26 }
 0x36b   : > { %v1394_v32 = vmul.f32 %v3751_v0, %v4415_v44  ;;  %v1395_v22 = vmul.f32 %v3751_v0, %v4418_v40  ;;  %1777 = vmatmul.mubr.bf16.vlgmr.msra.gmra.mrb[32].mxu1 %v1600_v46  ;;  %v1316_v50 = vpop.xlane.xlu0 %1315  ;;  %v1479_v14 = vadd.f32 %v4597_v33, %v1436_v20  ;;  %v1573_v53 = vsel %vm1509_vm5, %v1477_v1, %v1541_v62 }
 0x36c   : > { %v3753_v19 = vpop.eup %3752  ;;  %v1346_v31 = vmul.f32 0.00390625, %v1316_v50  ;;  %v1478_v7 = vadd.f32 %v4592_v29, %v1435_v12  ;;  %vm1508_vm6 = vcmp.ge.f32.partialorder %v1476_v28, 0.0  ;;  %v1540_v9 = vmul.f32 0.2, %v1476_v28 }
 0x36d   : > { %v1396_v21 = vmul.f32 %v3753_v19, %v4421_v52  ;;  %v1397_v16 = vmul.f32 %v3753_v19, %v4424_v54  ;;  %v1319_v18 = vpop.xlane.xlu1 %1318  ;;  %vm1511_vm7 = vcmp.ge.f32.partialorder %v1479_v14, 0.0  ;;  %v1543_v44 = vmul.f32 0.2, %v1479_v14 }
 0x36e   : > { %v1362_v59 = vadd.f32 1e-05, %v1346_v31  ;;  %v1347_v40 = vmul.f32 0.00390625, %v1319_v18  ;;  %vm1510_vm8 = vcmp.ge.f32.partialorder %v1478_v7, 0.0  ;;  %v1542_v61 = vmul.f32 0.2, %v1478_v7 }
 0x36f   : > { %v1575_v24 = vsel %vm1511_vm7, %v1479_v14, %v1543_v44  ;;  %v1572_v35 = vsel %vm1508_vm6, %v1476_v28, %v1540_v9  ;;  %v1438_v34 = vmul.f32 %v4589_v4, %v1395_v22  ;;  %v1440_v45 = vmul.f32 %v4589_v4, %v1397_v16 }
 0x370   : > { %3758 = vrsqrt.f32 %v1362_v59  ;;  %v1363_v26 = vadd.f32 1e-05, %v1347_v40  ;;  %v1603_v47 = vpack.c.bf16 %v1575_v24, %v1573_v53  ;;  %v1574_v60 = vsel %vm1510_vm8, %v1478_v7, %v1542_v61 }
 0x371   : > { %v1602_v52 = vpack.c.bf16 %v1574_v60, %v1572_v35  ;;  %v1481_v54 = vadd.f32 %v4597_v33, %v1438_v34  ;;  %v1483_v15 = vadd.f32 %v4597_v33, %v1440_v45  ;;  %v1437_v17 = vmul.f32 %v4586_v48, %v1394_v32 }
 0x372   : > { %v3755_v6 = vpop.eup %3754  ;;  %3760 = vrsqrt.f32 %v1363_v26  ;;  %1784 = vmatprep.mubr.bf16.mxu1 %v1603_v47  ;;  %v1439_v8 = vmul.f32 %v4586_v48, %v1396_v21 }
 0x373   : > { %v1398_v51 = vmul.f32 %v3755_v6, %v4444_v10  ;;  %v1399_v1 = vmul.f32 %v3755_v6, %v4447_v25  ;;  %1785 = vmatmul.mubr.bf16.gmra.mrb[36].mxu1 %v1602_v52  ;;  %v1322_v11 = vpop.xlane.xlu0 %1321  ;;  %vm1513_vm9 = vcmp.ge.f32.partialorder %v1481_v54, 0.0  ;;  %vm1515_vm10 = vcmp.ge.f32.partialorder %v1483_v15, 0.0 }
 0x374   : > { %v3757_v27 = vpop.eup %3756  ;;  %v1348_v43 = vmul.f32 0.00390625, %v1322_v11  ;;  %v1545_v46 = vmul.f32 0.2, %v1481_v54  ;;  %v1547_v20 = vmul.f32 0.2, %v1483_v15  ;;  %v1480_v62 = vadd.f32 %v4592_v29, %v1437_v17 }
 0x375   : > { %v1400_v0 = vmul.f32 %v3757_v27, %v4453_v13  ;;  %v1401_v12 = vmul.f32 %v3757_v27, %v4456_v30  ;;  %v1325_v28 = vpop.xlane.xlu1 %1324  ;;  %v1482_v32 = vadd.f32 %v4592_v29, %v1439_v8  ;;  %v1442_v10 = vmul.f32 %v4589_v4, %v1399_v1 }
 0x376   : > { %v1364_v25 = vadd.f32 1e-05, %v1348_v43  ;;  %v1349_v22 = vmul.f32 0.00390625, %v1325_v28  ;;  %v1577_v50 = vsel %vm1513_vm9, %v1481_v54, %v1545_v46  ;;  %v1579_v14 = vsel %vm1515_vm10, %v1483_v15, %v1547_v20 }
 0x377   : > { %v1605_v53 = vpack.c.bf16 %v1579_v14, %v1577_v50  ;;  %vm1512_vm11 = vcmp.ge.f32.partialorder %v1480_v62, 0.0  ;;  %vm1514_vm12 = vcmp.ge.f32.partialorder %v1482_v32, 0.0  ;;  %v1544_v19 = vmul.f32 0.2, %v1480_v62 }
 0x378   : > { %3762 = vrsqrt.f32 %v1364_v25  ;;  %v1365_v31 = vadd.f32 1e-05, %v1349_v22  ;;  %v1546_v7 = vmul.f32 0.2, %v1482_v32  ;;  %v1444_v13 = vmul.f32 %v4589_v4, %v1401_v12 }
 0x379   : > { %1792 = vmatprep.mubr.bf16.mxu1 %v1605_v53  ;;  %v1485_v30 = vadd.f32 %v4597_v33, %v1442_v10  ;;  %v1441_v9 = vmul.f32 %v4586_v48, %v1398_v51  ;;  %v1443_v21 = vmul.f32 %v4586_v48, %v1400_v0  ;;  %v1576_v18 = vsel %vm1512_vm11, %v1480_v62, %v1544_v19 }
 0x37a   : > { %v3759_v16 = vpop.eup %3758  ;;  %3764 = vrsqrt.f32 %v1365_v31  ;;  %v1578_v44 = vsel %vm1514_vm12, %v1482_v32, %v1546_v7  ;;  %v1487_v59 = vadd.f32 %v4597_v33, %v1444_v13 }
 0x37b   : > { %v1402_v40 = vmul.f32 %v3759_v16, %v4476_v39  ;;  %v1403_v61 = vmul.f32 %v3759_v16, %v4479_v42  ;;  %v1604_v24 = vpack.c.bf16 %v1578_v44, %v1576_v18  ;;  %v1328_v35 = vpop.xlane.xlu0 %1327  ;;  %vm1517_vm13 = vcmp.ge.f32.partialorder %v1485_v30, 0.0 }
 0x37c   : > { %v3761_v34 = vpop.eup %3760  ;;  %v1350_v45 = vmul.f32 0.00390625, %v1328_v35  ;;  %vm1519_vm14 = vcmp.ge.f32.partialorder %v1487_v59, 0.0  ;;  %v1549_v26 = vmul.f32 0.2, %v1485_v30  ;;  %v1551_v47 = vmul.f32 0.2, %v1487_v59 }
 0x37d   : > { %v1404_v60 = vmul.f32 %v3761_v34, %v4485_v56  ;;  %v1405_v52 = vmul.f32 %v3761_v34, %v4488_v58  ;;  %1793 = vmatmul.mubr.bf16.gmra.mrb[40].mxu1 %v1604_v24  ;;  %v1331_v54 = vpop.xlane.xlu1 %1330  ;;  %v1484_v15 = vadd.f32 %v4592_v29, %v1441_v9  ;;  %v1486_v39 = vadd.f32 %v4592_v29, %v1443_v21 }
 0x37e   : > { %v1366_v17 = vadd.f32 1e-05, %v1350_v45  ;;  %v1351_v42 = vmul.f32 0.00390625, %v1331_v54  ;;  %v1581_v6 = vsel %vm1517_vm13, %v1485_v30, %v1549_v26  ;;  %v1583_v8 = vsel %vm1519_vm14, %v1487_v59, %v1551_v47 }
 0x37f   : > { %v1607_v51 = vpack.c.bf16 %v1583_v8, %v1581_v6  ;;  %vm1516_vm15 = vcmp.ge.f32.partialorder %v1484_v15, 0.0  ;;  %vm1518_vm1 = vcmp.ge.f32.partialorder %v1486_v39, 0.0  ;;  %v1548_v1 = vmul.f32 0.2, %v1484_v15 }
 0x380   : > { %3766 = vrsqrt.f32 %v1366_v17  ;;  %v1367_v11 = vadd.f32 1e-05, %v1351_v42  ;;  %v1550_v27 = vmul.f32 0.2, %v1486_v39  ;;  %v1446_v56 = vmul.f32 %v4589_v4, %v1403_v61 }
 0x381   : > { %1800 = vmatprep.mubr.bf16.mxu1 %v1607_v51  ;;  %v1580_v58 = vsel %vm1516_vm15, %v1484_v15, %v1548_v1  ;;  %v1448_v43 = vmul.f32 %v4589_v4, %v1405_v52  ;;  %v1445_v46 = vmul.f32 %v4586_v48, %v1402_v40  ;;  %v1447_v12 = vmul.f32 %v4586_v48, %v1404_v60 }
 0x382   : > { %v3763_v20 = vpop.eup %3762  ;;  %3768 = vrsqrt.f32 %v1367_v11  ;;  %v1582_v62 = vsel %vm1518_vm1, %v1486_v39, %v1550_v27  ;;  %v1489_v0 = vadd.f32 %v4597_v33, %v1446_v56 }
 0x383   : > { %v1406_v28 = vmul.f32 %v3763_v20, %v4508_v3  ;;  %v1407_v32 = vmul.f32 %v3763_v20, %v4511_v5  ;;  %v1606_v10 = vpack.c.bf16 %v1582_v62, %v1580_v58  ;;  %v1334_v25 = vpop.xlane.xlu0 %1333  ;;  %v1491_v22 = vadd.f32 %v4597_v33, %v1448_v43 }
 0x384   : > { %v3765_v50 = vpop.eup %3764  ;;  %v1352_v14 = vmul.f32 0.00390625, %v1334_v25  ;;  %vm1521_vm2 = vcmp.ge.f32.partialorder %v1489_v0, 0.0  ;;  %v1553_v53 = vmul.f32 0.2, %v1489_v0  ;;  %v1488_v19 = vadd.f32 %v4592_v29, %v1445_v46 }
 0x385   : > { %v1408_v31 = vmul.f32 %v3765_v50, %v4517_v55  ;;  %v1409_v7 = vmul.f32 %v3765_v50, %v4520_v57  ;;  %1801 = vmatmul.mubr.bf16.gmra.mrb[44].mxu1 %v1606_v10  ;;  %v1337_v13 = vpop.xlane.xlu1 %1336  ;;  %vm1523_vm3 = vcmp.ge.f32.partialorder %v1491_v22, 0.0  ;;  %v1555_v3 = vmul.f32 0.2, %v1491_v22 }
 0x386   : > { %v1368_v30 = vadd.f32 1e-05, %v1352_v14  ;;  %v1353_v5 = vmul.f32 0.00390625, %v1337_v13  ;;  %v1585_v9 = vsel %vm1521_vm2, %v1489_v0, %v1553_v53  ;;  %v1490_v21 = vadd.f32 %v4592_v29, %v1447_v12 }
 0x387   : > { %v1587_v16 = vsel %vm1523_vm3, %v1491_v22, %v1555_v3  ;;  %vm1520_vm4 = vcmp.ge.f32.partialorder %v1488_v19, 0.0  ;;  %v1552_v18 = vmul.f32 0.2, %v1488_v19  ;;  %v1450_v44 = vmul.f32 %v4589_v4, %v1407_v32 }
 0x388   : > { %3770 = vrsqrt.f32 %v1368_v30  ;;  %v1369_v59 = vadd.f32 1e-05, %v1353_v5  ;;  %v1609_v40 = vpack.c.bf16 %v1587_v16, %v1585_v9  ;;  %vm1522_vm5 = vcmp.ge.f32.partialorder %v1490_v21, 0.0 }
 0x389   : > { %v1554_v55 = vmul.f32 0.2, %v1490_v21  ;;  %v1452_v57 = vmul.f32 %v4589_v4, %v1409_v7  ;;  %v1493_v61 = vadd.f32 %v4597_v33, %v1450_v44  ;;  %v1584_v35 = vsel %vm1520_vm4, %v1488_v19, %v1552_v18 }
 0x38a   : > { %v3767_v24 = vpop.eup %3766  ;;  %3772 = vrsqrt.f32 %v1369_v59  ;;  %1808 = vmatprep.mubr.bf16.mxu1 %v1609_v40  ;;  %v1449_v34 = vmul.f32 %v4586_v48, %v1406_v28  ;;  %v1451_v45 = vmul.f32 %v4586_v48, %v1408_v31  ;;  %vm4005_vm3 = vmmov 0  }
 0x38b   : > { %v1410_v26 = vmul.f32 %v3767_v24, %v4540_v37  ;;  %v1411_v47 = vmul.f32 %v3767_v24, %v4543_v38  ;;  %v1586_v60 = vsel %vm1522_vm5, %v1490_v21, %v1554_v55  ;;  %v1495_v52 = vadd.f32 %v4597_v33, %v1452_v57 }
 0x38c   : > { %v3769_v54 = vpop.eup %3768  ;;  %v1608_v15 = vpack.c.bf16 %v1586_v60, %v1584_v35  ;;  %vm1525_vm6 = vcmp.ge.f32.partialorder %v1493_v61, 0.0  ;;  %v1557_v39 = vmul.f32 0.2, %v1493_v61  ;;  %v1492_v17 = vadd.f32 %v4592_v29, %v1449_v34 }
 0x38d   : > { %v1412_v42 = vmul.f32 %v3769_v54, %v4546_v41  ;;  %v1413_v6 = vmul.f32 %v3769_v54, %v4549_v2  ;;  %vm1527_vm7 = vcmp.ge.f32.partialorder %v1495_v52, 0.0  ;;  %v1559_v8 = vmul.f32 0.2, %v1495_v52 }
 0x38e   : > { %1809 = vmatmul.mubr.bf16.gmra.mrb[48].mxu1 %v1608_v15  ;;  %v1589_v51 = vsel %vm1525_vm6, %v1493_v61, %v1557_v39  ;;  %v1494_v37 = vadd.f32 %v4592_v29, %v1451_v45  ;;  %vm1524_vm8 = vcmp.ge.f32.partialorder %v1492_v17, 0.0  ;;  %v1556_v38 = vmul.f32 0.2, %v1492_v17 }
 0x38f   : > { %v1591_v1 = vsel %vm1527_vm7, %v1495_v52, %v1559_v8  ;;  %v1454_v11 = vmul.f32 %v4589_v4, %v1411_v47  ;;  %v1456_v27 = vmul.f32 %v4589_v4, %v1413_v6  ;;  %v1453_v56 = vmul.f32 %v4586_v48, %v1410_v26 }
 0x390   : > { %v1611_v58 = vpack.c.bf16 %v1591_v1, %v1589_v51  ;;  %vm1526_vm9 = vcmp.ge.f32.partialorder %v1494_v37, 0.0  ;;  %v1558_v41 = vmul.f32 0.2, %v1494_v37  ;;  %v1455_v46 = vmul.f32 %v4586_v48, %v1412_v42  ;;  %v3890_v51 = vld [vmem:[%s4174_s23] sm:$0xff]  }
 0x391   : > { %v1497_v2 = vadd.f32 %v4597_v33, %v1454_v11  ;;  %v1499_v43 = vadd.f32 %v4597_v33, %v1456_v27  ;;  %v1496_v20 = vadd.f32 %v4592_v29, %v1453_v56  ;;  %v1588_v0 = vsel %vm1524_vm8, %v1492_v17, %v1556_v38  ;;  %v3891_v27 = vld [vmem:[%s4174_s23 + $0x8] sm:$0xff]  }
 0x392   : > { %v3771_v62 = vpop.eup %3770  ;;  %1816 = vmatprep.mubr.bf16.mxu1 %v1611_v58  ;;  %v1590_v12 = vsel %vm1526_vm9, %v1494_v37, %v1558_v41  ;;  %v1498_v14 = vadd.f32 %v4592_v29, %v1455_v46  ;;  %v4004_v45 = vmov 0.0   ;;  %vm2197_vm4 = vcmask 523264  }
 0x393   : > { %v1414_v28 = vmul.f32 %v3771_v62, %v4560_v36  ;;  %v1415_v32 = vmul.f32 %v3771_v62, %v4563_v49  ;;  %v1610_v10 = vpack.c.bf16 %v1590_v12, %v1588_v0  ;;  %vm1529_vm10 = vcmp.ge.f32.partialorder %v1497_v2, 0.0  ;;  %3532 = vmatprep.subr.bf16.mxu0 %v4004_v45  ;;  %3534 = vmatprep.mubr.msk.bf16.mxu0 %vm4005_vm3, %v4004_v45 }
 0x394   : > { %v3773_v25 = vpop.eup %3772  ;;  %vm1531_vm11 = vcmp.ge.f32.partialorder %v1499_v43, 0.0  ;;  %v1561_v22 = vmul.f32 0.2, %v1497_v2  ;;  %v1563_v50 = vmul.f32 0.2, %v1499_v43  ;;  %vm1530_vm12 = vcmp.ge.f32.partialorder %v1498_v14, 0.0 }
 0x395   : > { %v1416_v53 = vmul.f32 %v3773_v25, %v4566_v23  ;;  %v1417_v19 = vmul.f32 %v3773_v25, %v4569_v63  ;;  %v1560_v31 = vmul.f32 0.2, %v1496_v20  ;;  %v1562_v36 = vmul.f32 0.2, %v1498_v14 }
 0x396   : > { %1817 = vmatmul.mubr.bf16.gmra.mrb[52].mxu1 %v1610_v10  ;;  %v1593_v7 = vsel %vm1529_vm10, %v1497_v2, %v1561_v22  ;;  %v1595_v13 = vsel %vm1531_vm11, %v1499_v43, %v1563_v50  ;;  %vm1528_vm13 = vcmp.ge.f32.partialorder %v1496_v20, 0.0  ;;  %v1458_v49 = vmul.f32 %v4589_v4, %v1415_v32 }
 0x397   : > { %v1613_v3 = vpack.c.bf16 %v1595_v13, %v1593_v7  ;;  %v1460_v30 = vmul.f32 %v4589_v4, %v1417_v19  ;;  %v1457_v5 = vmul.f32 %v4586_v48, %v1414_v28  ;;  %v1459_v9 = vmul.f32 %v4586_v48, %v1416_v53  ;;  %v3892_v28 = vld [vmem:[%s4174_s23 + $0x10] sm:$0xff]   ;;  %v3893_v53 = vld [vmem:[%s4174_s23 + $0x18] sm:$0xff]  }
 0x398   : > { %v1594_v23 = vsel %vm1530_vm12, %v1498_v14, %v1562_v36  ;;  %v1501_v63 = vadd.f32 %v4597_v33, %v1458_v49  ;;  %v1592_v16 = vsel %vm1528_vm13, %v1496_v20, %v1560_v31 }
 0x399   : > { %1824 = vmatprep.mubr.bf16.mxu1 %v1613_v3  ;;  %v1503_v21 = vadd.f32 %v4597_v33, %v1460_v30  ;;  %v1500_v18 = vadd.f32 %v4592_v29, %v1457_v5  ;;  %v1502_v44 = vadd.f32 %v4592_v29, %v1459_v9  ;;  %v1612_v4 = vpack.c.bf16 %v1594_v23, %v1592_v16  ;;  %v3894_v5 = vld [vmem:[%s4174_s23 + $0x20] sm:$0xff]  }
 0x39a   : > { %vm1533_vm14 = vcmp.ge.f32.partialorder %v1501_v63, 0.0  ;;  %v1565_v59 = vmul.f32 0.2, %v1501_v63 }
 0x39b   : > { %vm1535_vm15 = vcmp.ge.f32.partialorder %v1503_v21, 0.0  ;;  %v1567_v40 = vmul.f32 0.2, %v1503_v21  ;;  %v1566_v61 = vmul.f32 0.2, %v1502_v44  ;;  %vm1534_vm1 = vcmp.ge.f32.partialorder %v1502_v44, 0.0 }
 0x39c   : > { %v1597_v55 = vsel %vm1533_vm14, %v1501_v63, %v1565_v59  ;;  %v1564_v24 = vmul.f32 0.2, %v1500_v18  ;;  %vm1532_vm2 = vcmp.ge.f32.partialorder %v1500_v18, 0.0  ;;  %v3895_v59 = vld [vmem:[%s4174_s23 + $0x28] sm:$0xff]  }
 0x39d   : > { %v1599_v57 = vsel %vm1535_vm15, %v1503_v21, %v1567_v40  ;;  %v1598_v33 = vsel %vm1534_vm1, %v1502_v44, %v1566_v61 }
 0x39e   : > { %1825 = vmatmul.mubr.bf16.gmra.mrb[56].mxu1 %v1612_v4  ;;  %v1615_v48 = vpack.c.bf16 %v1599_v57, %v1597_v55  ;;  %v1596_v35 = vsel %vm1532_vm2, %v1500_v18, %v1564_v24 }
 0x39f   : > { %v1614_v34 = vpack.c.bf16 %v1598_v33, %v1596_v35  ;;  %v3896_v33 = vld [vmem:[%s4174_s23 + $0x30] sm:$0xff]  }
 0x3a0   : > { %1832 = vmatprep.mubr.bf16.mxu1 %v1615_v48 }
 0x3a6   : > { %1833 = vmatmul.mubr.bf16.gmra.mrb[60].mxu1 %v1614_v34 }
 0x43e   : > { %v3447_v29 = vpop.f32.mrb[32].mxu1 }
 0x43f   : > { %v3448_v26 = vpop.f32.mrb[33].mxu1 }
 0x440   : > { %v3449_v47 = vadd.f32 %v3448_v26, %v3447_v29  ;;  %v3450_v60 = vpop.f32.mrb[34].mxu1  ;;  %v3897_v29 = vld [vmem:[%s4174_s23 + $0x38] sm:$0xff]   ;;  %v4736_v26 = vld [vmem:[%s5266_s7] ss:$0 sm:$0xff] }
 0x441   : > { %v3451_v52 = vpop.f32.mrb[35].mxu1 }
 0x442   : > { %v3452_v54 = vadd.f32 %v3451_v52, %v3450_v60 }
 0x444   : > { %v1841_v15 = vpack.c.bf16 %v3452_v54, %v3449_v47 }
 0x446   : > { %v3453_v39 = vpop.f32.mrb[36].mxu1  ;;  %3533 = vmatpush3.bf16.msra.mxu0 %v1841_v15 }
 0x447   : > { %v3454_v17 = vpop.f32.mrb[37].mxu1  ;;  %3538 = vmatprep.subr.bf16.mxu0 %v4004_v45 }
 0x448   : > { %v3455_v42 = vadd.f32 %v3454_v17, %v3453_v39  ;;  %v3456_v6 = vpop.f32.mrb[38].mxu1 }
 0x449   : > { %v3457_v8 = vpop.f32.mrb[39].mxu1  ;;  %3535 = vmatmul.mubr.msk.bf16.vlgmr.msra.gmra.mrb[32].mxu0 %vm714_vm0, %v3890_v51 }
 0x44a   : > { %v3458_v37 = vadd.f32 %v3457_v8, %v3456_v6  ;;  %3540 = vmatprep.mubr.msk.bf16.mxu0 %vm4005_vm3, %v4004_v45 }
 0x44c   : > { %v1842_v38 = vpack.c.bf16 %v3458_v37, %v3455_v42 }
 0x44e   : > { %3539 = vmatpush3.bf16.msra.mxu0 %v1842_v38 }
 0x44f   : > { %3544 = vmatprep.subr.bf16.mxu0 %v4004_v45 }
 0x450   : > { %v3459_v1 = vpop.f32.mrb[40].mxu1 }
 0x451   : > { %v3460_v11 = vpop.f32.mrb[41].mxu1  ;;  %3541 = vmatmul.mubr.msk.bf16.vlgmr.msra.gmra.mrb[36].mxu0 %vm714_vm0, %v3891_v27 }
 0x452   : > { %v3461_v56 = vadd.f32 %v3460_v11, %v3459_v1  ;;  %v3462_v58 = vpop.f32.mrb[42].mxu1  ;;  %3546 = vmatprep.mubr.msk.bf16.mxu0 %vm4005_vm3, %v4004_v45 }
 0x453   : > { %v3463_v41 = vpop.f32.mrb[43].mxu1 }
 0x454   : > { %v3464_v2 = vadd.f32 %v3463_v41, %v3462_v58 }
 0x456   : > { %v1843_v43 = vpack.c.bf16 %v3464_v2, %v3461_v56 }
 0x458   : > { %v3465_v46 = vpop.f32.mrb[44].mxu1  ;;  %3545 = vmatpush3.bf16.msra.mxu0 %v1843_v43 }
 0x459   : > { %v3466_v20 = vpop.f32.mrb[45].mxu1  ;;  %3550 = vmatprep.subr.bf16.mxu0 %v4004_v45 }
 0x45a   : > { %v3467_v62 = vadd.f32 %v3466_v20, %v3465_v46  ;;  %v3468_v0 = vpop.f32.mrb[46].mxu1 }
 0x45b   : > { %v3469_v12 = vpop.f32.mrb[47].mxu1  ;;  %3547 = vmatmul.mubr.msk.bf16.vlgmr.msra.gmra.mrb[40].mxu0 %vm714_vm0, %v3892_v28 }
 0x45c   : > { %v3470_v32 = vadd.f32 %v3469_v12, %v3468_v0  ;;  %3552 = vmatprep.mubr.msk.bf16.mxu0 %vm4005_vm3, %v4004_v45 }
 0x45e   : > { %v1844_v10 = vpack.c.bf16 %v3470_v32, %v3467_v62 }
 0x460   : > { %3551 = vmatpush3.bf16.msra.mxu0 %v1844_v10 }
 0x461   : > { %v3471_v25 = vpop.f32.mrb[48].mxu1  ;;  %3556 = vmatprep.subr.bf16.mxu0 %v4004_v45 }
 0x462   : > { %v3472_v22 = vpop.f32.mrb[49].mxu1 }
 0x463   : > { %v3473_v50 = vadd.f32 %v3472_v22, %v3471_v25  ;;  %v3474_v14 = vpop.f32.mrb[50].mxu1  ;;  %3553 = vmatmul.mubr.msk.bf16.vlgmr.msra.gmra.mrb[44].mxu0 %vm714_vm0, %v3893_v53 }
 0x464   : > { %v3475_v19 = vpop.f32.mrb[51].mxu1  ;;  %3558 = vmatprep.mubr.msk.bf16.mxu0 %vm4005_vm3, %v4004_v45 }
 0x465   : > { %v3476_v31 = vadd.f32 %v3475_v19, %v3474_v14 }
 0x467   : > { %v1845_v7 = vpack.c.bf16 %v3476_v31, %v3473_v50 }
 0x469   : > { %v3477_v13 = vpop.f32.mrb[52].mxu1  ;;  %3557 = vmatpush3.bf16.msra.mxu0 %v1845_v7 }
 0x46a   : > { %v3478_v36 = vpop.f32.mrb[53].mxu1  ;;  %3562 = vmatprep.subr.bf16.mxu0 %v4004_v45 }
 0x46b   : > { %v3479_v3 = vadd.f32 %v3478_v36, %v3477_v13  ;;  %v3480_v49 = vpop.f32.mrb[54].mxu1 }
 0x46c   : > { %v3481_v30 = vpop.f32.mrb[55].mxu1  ;;  %3559 = vmatmul.mubr.msk.bf16.vlgmr.msra.gmra.mrb[48].mxu0 %vm714_vm0, %v3894_v5 }
 0x46d   : > { %v3482_v9 = vadd.f32 %v3481_v30, %v3480_v49  ;;  %3564 = vmatprep.mubr.msk.bf16.mxu0 %vm4005_vm3, %v4004_v45 }
 0x46f   : > { %v1846_v23 = vpack.c.bf16 %v3482_v9, %v3479_v3 }
 0x471   : > { %v3483_v63 = vpop.f32.mrb[56].mxu1  ;;  %3563 = vmatpush3.bf16.msra.mxu0 %v1846_v23 }
 0x472   : > { %v3484_v21 = vpop.f32.mrb[57].mxu1  ;;  %3568 = vmatprep.subr.bf16.mxu0 %v4004_v45 }
 0x473   : > { %v3485_v16 = vadd.f32 %v3484_v21, %v3483_v63  ;;  %v3486_v18 = vpop.f32.mrb[58].mxu1 }
 0x474   : > { %v3487_v44 = vpop.f32.mrb[59].mxu1  ;;  %3565 = vmatmul.mubr.msk.bf16.vlgmr.msra.gmra.mrb[52].mxu0 %vm714_vm0, %v3895_v59 }
 0x475   : > { %v3488_v40 = vadd.f32 %v3487_v44, %v3486_v18  ;;  %3570 = vmatprep.mubr.msk.bf16.mxu0 %vm4005_vm3, %v4004_v45 }
 0x477   : > { %v1847_v4 = vpack.c.bf16 %v3488_v40, %v3485_v16 }
 0x479   : > { %v3489_v55 = vpop.f32.mrb[60].mxu1  ;;  %3569 = vmatpush3.bf16.msra.mxu0 %v1847_v4 }
 0x47a   : > { %v3490_v57 = vpop.f32.mrb[61].mxu1  ;;  %3574 = vmatprep.subr.bf16.mxu0 %v4004_v45 }
 0x47b   : > { %v3491_v61 = vadd.f32 %v3490_v57, %v3489_v55  ;;  %v3492_v48 = vpop.f32.mrb[62].mxu1 }
 0x47c   : > { %v3493_v24 = vpop.f32.mrb[63].mxu1  ;;  %3571 = vmatmul.mubr.msk.bf16.vlgmr.msra.gmra.mrb[56].mxu0 %vm714_vm0, %v3896_v33 }
 0x47d   : > { %v3494_v35 = vadd.f32 %v3493_v24, %v3492_v48  ;;  %3576 = vmatprep.mubr.msk.bf16.mxu0 %vm4005_vm3, %v4004_v45 }
 0x47f   : > { %v1848_v34 = vpack.c.bf16 %v3494_v35, %v3491_v61 }
 0x481   : > { %3575 = vmatpush3.bf16.msra.mxu0 %v1848_v34 }
 0x484   : > { %3577 = vmatmul.mubr.msk.bf16.vlgmr.msra.gmra.mrb[60].mxu0 %vm714_vm0, %v3897_v29 }
 0x51c   : > { %v1883_v47 = vpop.f32.mrb[32].mxu0 }
 0x51d   : > { %v4739_v60 = vadd.f32 %v4736_v26, %v1883_v47  ;;  %v3536_v52 = vpop.f32.mrb[33].mxu0 }
 0x51e   : > { %v1886_v54 = vpop.f32.mrb[34].mxu0 }
 0x51f   : > { %v4742_v15 = vadd.f32 %v4736_v26, %v1886_v54  ;;  %v2198_v45 = vsel %vm2197_vm4, %v4739_v60, 0.0  ;;  %v3537_v39 = vpop.f32.mrb[35].mxu0 }
 0x520   : > { %2199 = vadd.xlane.f32.xlu0 %v2198_v45 }
 0x521   : > { %v2201_v17 = vsel %vm2197_vm4, %v4742_v15, 0.0 }
 0x522   : > { %2202 = vadd.xlane.f32.xlu1 %v2201_v17 }
 0x524   : > { %v1924_v42 = vpop.f32.mrb[36].mxu0 }
 0x525   : > { %v4749_v6 = vadd.f32 %v4736_v26, %v1924_v42  ;;  %v3542_v8 = vpop.f32.mrb[37].mxu0 }
 0x526   : > { %v1927_v51 = vpop.f32.mrb[38].mxu0 }
 0x527   : > { %v4752_v37 = vadd.f32 %v4736_v26, %v1927_v51  ;;  %v2204_v38 = vsel %vm2197_vm4, %v4749_v6, 0.0  ;;  %v3543_v1 = vpop.f32.mrb[39].mxu0 }
 0x528   : > { %2205 = vadd.xlane.f32.xlu0 %v2204_v38 }
 0x529   : > { %v2207_v11 = vsel %vm2197_vm4, %v4752_v37, 0.0 }
 0x52a   : > { %2208 = vadd.xlane.f32.xlu1 %v2207_v11 }
 0x52e   : > { %v1965_v27 = vpop.f32.mrb[40].mxu0 }
 0x52f   : > { %v4759_v56 = vadd.f32 %v4736_v26, %v1965_v27  ;;  %v3548_v58 = vpop.f32.mrb[41].mxu0 }
 0x530   : > { %v1968_v41 = vpop.f32.mrb[42].mxu0 }
 0x531   : > { %v4762_v2 = vadd.f32 %v4736_v26, %v1968_v41  ;;  %v2210_v43 = vsel %vm2197_vm4, %v4759_v56, 0.0  ;;  %v3549_v46 = vpop.f32.mrb[43].mxu0 }
 0x532   : > { %2211 = vadd.xlane.f32.xlu0 %v2210_v43 }
 0x533   : > { %v2213_v20 = vsel %vm2197_vm4, %v4762_v2, 0.0 }
 0x534   : > { %2214 = vadd.xlane.f32.xlu1 %v2213_v20 }
 0x536   : > { %v2006_v62 = vpop.f32.mrb[44].mxu0 }
 0x537   : > { %v4769_v0 = vadd.f32 %v4736_v26, %v2006_v62  ;;  %v3554_v12 = vpop.f32.mrb[45].mxu0 }
 0x538   : > { %v2009_v28 = vpop.f32.mrb[46].mxu0 }
 0x539   : > { %v4772_v32 = vadd.f32 %v4736_v26, %v2009_v28  ;;  %v2216_v10 = vsel %vm2197_vm4, %v4769_v0, 0.0  ;;  %v3555_v25 = vpop.f32.mrb[47].mxu0 }
 0x53a   : > { %2217 = vadd.xlane.f32.xlu0 %v2216_v10 }
 0x53b   : > { %v2219_v22 = vsel %vm2197_vm4, %v4772_v32, 0.0 }
 0x53c   : > { %2220 = vadd.xlane.f32.xlu1 %v2219_v22 }
 0x53f   : > { %v2047_v50 = vpop.f32.mrb[48].mxu0 }
 0x540   : > { %v4779_v14 = vadd.f32 %v4736_v26, %v2047_v50  ;;  %v3560_v53 = vpop.f32.mrb[49].mxu0 }
 0x541   : > { %v2050_v19 = vpop.f32.mrb[50].mxu0 }
 0x542   : > { %v4782_v31 = vadd.f32 %v4736_v26, %v2050_v19  ;;  %v2222_v7 = vsel %vm2197_vm4, %v4779_v14, 0.0  ;;  %v3561_v13 = vpop.f32.mrb[51].mxu0 }
 0x543   : > { %2223 = vadd.xlane.f32.xlu0 %v2222_v7 }
 0x544   : > { %v2225_v36 = vsel %vm2197_vm4, %v4782_v31, 0.0 }
 0x545   : > { %2226 = vadd.xlane.f32.xlu1 %v2225_v36 }
 0x547   : > { %v2088_v3 = vpop.f32.mrb[52].mxu0 }
 0x548   : > { %v4789_v49 = vadd.f32 %v4736_v26, %v2088_v3  ;;  %v3566_v30 = vpop.f32.mrb[53].mxu0 }
 0x549   : > { %v2091_v5 = vpop.f32.mrb[54].mxu0 }
 0x54a   : > { %v4792_v9 = vadd.f32 %v4736_v26, %v2091_v5  ;;  %v2228_v23 = vsel %vm2197_vm4, %v4789_v49, 0.0  ;;  %v3567_v63 = vpop.f32.mrb[55].mxu0 }
 0x54b   : > { %2229 = vadd.xlane.f32.xlu0 %v2228_v23 }
 0x54c   : > { %v2231_v21 = vsel %vm2197_vm4, %v4792_v9, 0.0 }
 0x54d   : > { %2232 = vadd.xlane.f32.xlu1 %v2231_v21 }
 0x54f   : > { %v2129_v16 = vpop.f32.mrb[56].mxu0 }
 0x550   : > { %v4799_v18 = vadd.f32 %v4736_v26, %v2129_v16  ;;  %v3572_v44 = vpop.f32.mrb[57].mxu0 }
 0x551   : > { %v2132_v59 = vpop.f32.mrb[58].mxu0 }
 0x552   : > { %v4802_v40 = vadd.f32 %v4736_v26, %v2132_v59  ;;  %v2234_v4 = vsel %vm2197_vm4, %v4799_v18, 0.0  ;;  %v3573_v55 = vpop.f32.mrb[59].mxu0 }
 0x553   : > { %2235 = vadd.xlane.f32.xlu0 %v2234_v4 }
 0x554   : > { %v2237_v57 = vsel %vm2197_vm4, %v4802_v40, 0.0 }
 0x555   : > { %2238 = vadd.xlane.f32.xlu1 %v2237_v57 }
 0x557   : > { %v2170_v61 = vpop.f32.mrb[60].mxu0 }
 0x558   : > { %v4809_v48 = vadd.f32 %v4736_v26, %v2170_v61  ;;  %v3578_v24 = vpop.f32.mrb[61].mxu0 }
 0x559   : > { %v2173_v33 = vpop.f32.mrb[62].mxu0 }
 0x55a   : > { %v4812_v35 = vadd.f32 %v4736_v26, %v2173_v33  ;;  %v2240_v34 = vsel %vm2197_vm4, %v4809_v48, 0.0  ;;  %v3579_v29 = vpop.f32.mrb[63].mxu0 }
 0x55b   : > { %2241 = vadd.xlane.f32.xlu0 %v2240_v34  ;;  %v3737_v34 = vld [vmem:[%s5263_s4] sm:$0xff]  }
 0x55c   : > { %v2243_v47 = vsel %vm2197_vm4, %v4812_v35, 0.0  ;;  %3580 = vmatprep.subr.bf16.mxu1 %v3737_v34 }
 0x55d   : > { %2244 = vadd.xlane.f32.xlu1 %v2243_v47  ;;  %3581 = vmatpush3.bf16.msra.mxu1 %v3737_v34 }
 0x5ad   : > { %v2200_v52 = vpop.xlane.xlu0 %2199 }
 0x5ae   : > { %v2247_v54 = vmul.f32 0.015625, %v2200_v52 }
 0x5af   : > { %v2203_v45 = vpop.xlane.xlu1 %2202 }
 0x5b0   : > { %v4819_v39 = vsub.f32 %v4739_v60, %v2247_v54  ;;  %v2248_v17 = vmul.f32 0.015625, %v2203_v45 }
 0x5b2   : > { %v4822_v42 = vsub.f32 %v4742_v15, %v2248_v17  ;;  %v2279_v26 = vmul.f32 %v4819_v39, %v4819_v39 }
 0x5b4   : > { %v2295_v8 = vsel %vm2197_vm4, %v2279_v26, 0.0  ;;  %v2280_v51 = vmul.f32 %v4822_v42, %v4822_v42 }
 0x5b5   : > { %2296 = vadd.xlane.f32.xlu0 %v2295_v8  ;;  %v2206_v38 = vpop.xlane.xlu0 %2205 }
 0x5b6   : > { %v2249_v1 = vmul.f32 0.015625, %v2206_v38  ;;  %v2298_v11 = vsel %vm2197_vm4, %v2280_v51, 0.0  ;;  %v3739_v38 = vld [vmem:[%s5263_s4 + $0x10] sm:$0xff]  }
 0x5b7   : > { %v2209_v27 = vpop.xlane.xlu1 %2208  ;;  %2299 = vadd.xlane.f32.xlu1 %v2298_v11 }
 0x5b8   : > { %v4831_v60 = vsub.f32 %v4749_v6, %v2249_v1  ;;  %v2250_v15 = vmul.f32 0.015625, %v2209_v27 }
 0x5ba   : > { %v4834_v58 = vsub.f32 %v4752_v37, %v2250_v15  ;;  %v2281_v41 = vmul.f32 %v4831_v60, %v4831_v60 }
 0x5bc   : > { %v2301_v43 = vsel %vm2197_vm4, %v2281_v41, 0.0  ;;  %v2282_v46 = vmul.f32 %v4834_v58, %v4834_v58 }
 0x5bd   : > { %2302 = vadd.xlane.f32.xlu0 %v2301_v43 }
 0x5be   : > { %v2304_v20 = vsel %vm2197_vm4, %v2282_v46, 0.0 }
 0x5bf   : > { %v2212_v62 = vpop.xlane.xlu0 %2211  ;;  %2305 = vadd.xlane.f32.xlu1 %v2304_v20 }
 0x5c0   : > { %v2251_v12 = vmul.f32 0.015625, %v2212_v62 }
 0x5c1   : > { %v2215_v6 = vpop.xlane.xlu1 %2214 }
 0x5c2   : > { %v4843_v28 = vsub.f32 %v4759_v56, %v2251_v12  ;;  %v2252_v37 = vmul.f32 0.015625, %v2215_v6 }
 0x5c4   : > { %v4846_v10 = vsub.f32 %v4762_v2, %v2252_v37  ;;  %v2283_v25 = vmul.f32 %v4843_v28, %v4843_v28 }
 0x5c6   : > { %v2307_v22 = vsel %vm2197_vm4, %v2283_v25, 0.0  ;;  %v2284_v50 = vmul.f32 %v4846_v10, %v4846_v10 }
 0x5c7   : > { %2308 = vadd.xlane.f32.xlu0 %v2307_v22  ;;  %v2218_v53 = vpop.xlane.xlu0 %2217 }
 0x5c8   : > { %v2253_v19 = vmul.f32 0.015625, %v2218_v53  ;;  %v2310_v7 = vsel %vm2197_vm4, %v2284_v50, 0.0 }
 0x5c9   : > { %v2221_v13 = vpop.xlane.xlu1 %2220  ;;  %2311 = vadd.xlane.f32.xlu1 %v2310_v7 }
 0x5ca   : > { %v4855_v56 = vsub.f32 %v4769_v0, %v2253_v19  ;;  %v2254_v2 = vmul.f32 0.015625, %v2221_v13 }
 0x5cc   : > { %v4858_v36 = vsub.f32 %v4772_v32, %v2254_v2  ;;  %v2285_v3 = vmul.f32 %v4855_v56, %v4855_v56 }
 0x5ce   : > { %v2313_v30 = vsel %vm2197_vm4, %v2285_v3, 0.0  ;;  %v2286_v5 = vmul.f32 %v4858_v36, %v4858_v36 }
 0x5cf   : > { %2314 = vadd.xlane.f32.xlu0 %v2313_v30 }
 0x5d0   : > { %v2224_v23 = vpop.xlane.xlu0 %2223  ;;  %v2316_v63 = vsel %vm2197_vm4, %v2286_v5, 0.0 }
 0x5d1   : > { %v2255_v21 = vmul.f32 0.015625, %v2224_v23  ;;  %2317 = vadd.xlane.f32.xlu1 %v2316_v63 }
 0x5d2   : > { %v2227_v0 = vpop.xlane.xlu1 %2226 }
 0x5d3   : > { %v4867_v16 = vsub.f32 %v4779_v14, %v2255_v21  ;;  %v2256_v32 = vmul.f32 0.015625, %v2227_v0  ;;  %v4935_v0 = vld [vmem:[%s5266_s7 + $0x1] ss:$0 sm:$0xff] }
 0x5d5   : > { %v4870_v44 = vsub.f32 %v4782_v31, %v2256_v32  ;;  %v2287_v59 = vmul.f32 %v4867_v16, %v4867_v16 }
 0x5d7   : > { %v2319_v4 = vsel %vm2197_vm4, %v2287_v59, 0.0  ;;  %v2288_v55 = vmul.f32 %v4870_v44, %v4870_v44 }
 0x5d8   : > { %2320 = vadd.xlane.f32.xlu0 %v2319_v4  ;;  %v2230_v57 = vpop.xlane.xlu0 %2229  ;;  %v4941_v4 = vld [vmem:[%s5266_s7 + $0x2] ss:$0 sm:$0xff] }
 0x5d9   : > { %v2257_v61 = vmul.f32 0.015625, %v2230_v57  ;;  %v2322_v24 = vsel %vm2197_vm4, %v2288_v55, 0.0 }
 0x5da   : > { %v2233_v33 = vpop.xlane.xlu1 %2232  ;;  %2323 = vadd.xlane.f32.xlu1 %v2322_v24 }
 0x5db   : > { %v4879_v14 = vsub.f32 %v4789_v49, %v2257_v61  ;;  %v2258_v31 = vmul.f32 0.015625, %v2233_v33  ;;  %v3738_v49 = vld [vmem:[%s5263_s4 + $0x8] sm:$0xff]  }
 0x5dc   : > { %3582 = vmatprep.subr.bf16.mxu1 %v3738_v49 }
 0x5dd   : > { %v4885_v29 = vsub.f32 %v4792_v9, %v2258_v31  ;;  %v2289_v47 = vmul.f32 %v4879_v14, %v4879_v14  ;;  %3583 = vmatpush3.bf16.msra.mxu1 %v3738_v49 }
 0x5de   : > { %3584 = vmatprep.subr.bf16.mxu1 %v3739_v38 }
 0x5df   : > { %v2325_v52 = vsel %vm2197_vm4, %v2289_v47, 0.0  ;;  %v2290_v54 = vmul.f32 %v4885_v29, %v4885_v29 }
 0x5e0   : > { %2326 = vadd.xlane.f32.xlu0 %v2325_v52  ;;  %v2236_v45 = vpop.xlane.xlu0 %2235 }
 0x5e1   : > { %v2259_v17 = vmul.f32 0.015625, %v2236_v45  ;;  %v2328_v9 = vsel %vm2197_vm4, %v2290_v54, 0.0  ;;  %3585 = vmatpush3.bf16.msra.mxu1 %v3739_v38 }
 0x5e2   : > { %v2239_v26 = vpop.xlane.xlu1 %2238  ;;  %2329 = vadd.xlane.f32.xlu1 %v2328_v9 }
 0x5e3   : > { %v4897_v8 = vsub.f32 %v4799_v18, %v2259_v17  ;;  %v2260_v51 = vmul.f32 0.015625, %v2239_v26  ;;  %v3740_v18 = vld [vmem:[%s5263_s4 + $0x18] sm:$0xff]  }
 0x5e4   : > { %3586 = vmatprep.subr.bf16.mxu1 %v3740_v18 }
 0x5e5   : > { %v4903_v1 = vsub.f32 %v4802_v40, %v2260_v51  ;;  %v2291_v11 = vmul.f32 %v4897_v8, %v4897_v8  ;;  %3587 = vmatpush3.bf16.msra.mxu1 %v3740_v18 }
 0x5e7   : > { %v2331_v27 = vsel %vm2197_vm4, %v2291_v11, 0.0  ;;  %v2292_v15 = vmul.f32 %v4903_v1, %v4903_v1 }
 0x5e8   : > { %2332 = vadd.xlane.f32.xlu0 %v2331_v27  ;;  %v2242_v41 = vpop.xlane.xlu0 %2241 }
 0x5e9   : > { %v2261_v43 = vmul.f32 0.015625, %v2242_v41  ;;  %v2334_v40 = vsel %vm2197_vm4, %v2292_v15, 0.0 }
 0x5ea   : > { %2335 = vadd.xlane.f32.xlu1 %v2334_v40  ;;  %v2245_v46 = vpop.xlane.xlu1 %2244 }
 0x5eb   : > { %v4915_v20 = vsub.f32 %v4809_v48, %v2261_v43  ;;  %v2262_v62 = vmul.f32 0.015625, %v2245_v46  ;;  %v4929_v48 = vld [vmem:[%s5267_s8] ss:$0 sm:$0xff] }
 0x5ed   : > { %v4918_v12 = vsub.f32 %v4812_v35, %v2262_v62  ;;  %v2293_v6 = vmul.f32 %v4915_v20, %v4915_v20 }
 0x5ef   : > { %v2337_v37 = vsel %vm2197_vm4, %v2293_v6, 0.0  ;;  %v2294_v25 = vmul.f32 %v4918_v12, %v4918_v12 }
 0x5f0   : > { %2338 = vadd.xlane.f32.xlu0 %v2337_v37 }
 0x5f1   : > { %v2340_v22 = vsel %vm2197_vm4, %v2294_v25, 0.0 }
 0x5f2   : > { %2341 = vadd.xlane.f32.xlu1 %v2340_v22 }
 0x606   : > { %2694 = vrot.lane.b32.xlu0 %v4929_v48, %s4006_s26 }
 0x642   : > { %v2297_v35 = vpop.xlane.xlu0 %2296 }
 0x643   : > { %v2343_v50 = vmul.f32 0.015625, %v2297_v35 }
 0x644   : > { %v2300_v53 = vpop.xlane.xlu1 %2299 }
 0x645   : > { %v2359_v19 = vadd.f32 1e-05, %v2343_v50  ;;  %v2344_v7 = vmul.f32 0.015625, %v2300_v53 }
 0x647   : > { %3774 = vrsqrt.f32 %v2359_v19  ;;  %v2360_v13 = vadd.f32 1e-05, %v2344_v7 }
 0x649   : > { %3776 = vrsqrt.f32 %v2360_v13 }
 0x64a   : > { %v2303_v2 = vpop.xlane.xlu0 %2302 }
 0x64b   : > { %v2345_v3 = vmul.f32 0.015625, %v2303_v2 }
 0x64c   : > { %v2306_v30 = vpop.xlane.xlu1 %2305 }
 0x64d   : > { %v2361_v5 = vadd.f32 1e-05, %v2345_v3  ;;  %v2346_v23 = vmul.f32 0.015625, %v2306_v30 }
 0x64f   : > { %3778 = vrsqrt.f32 %v2361_v5  ;;  %v2362_v63 = vadd.f32 1e-05, %v2346_v23 }
 0x651   : > { %v3775_v21 = vpop.eup %3774  ;;  %3780 = vrsqrt.f32 %v2362_v63 }
 0x652   : > { %v2391_v32 = vmul.f32 %v3775_v21, %v4819_v39  ;;  %v4950_v39 = vld [vmem:[%s5266_s7 + $0x3] ss:$0 sm:$0xff] }
 0x653   : > { %v3777_v59 = vpop.eup %3776 }
 0x654   : > { %v2392_v55 = vmul.f32 %v3777_v59, %v4822_v42  ;;  %v2309_v57 = vpop.xlane.xlu0 %2308  ;;  %v2411_v61 = vmul.f32 %v4935_v0, %v2391_v32 }
 0x655   : > { %v2347_v24 = vmul.f32 0.015625, %v2309_v57 }
 0x656   : > { %v2312_v33 = vpop.xlane.xlu1 %2311  ;;  %v2412_v31 = vmul.f32 %v4935_v0, %v2392_v55  ;;  %v2431_v34 = vadd.f32 %v4941_v4, %v2411_v61 }
 0x657   : > { %v2363_v47 = vadd.f32 1e-05, %v2347_v24  ;;  %v2348_v52 = vmul.f32 0.015625, %v2312_v33 }
 0x658   : > { %v2432_v54 = vadd.f32 %v4941_v4, %v2412_v31  ;;  %vm2447_vm5 = vcmp.ge.f32.partialorder %v2431_v34, 0.0  ;;  %v2463_v42 = vmul.f32 0.2, %v2431_v34 }
 0x659   : > { %v3779_v49 = vpop.eup %3778  ;;  %3782 = vrsqrt.f32 %v2363_v47  ;;  %v2364_v45 = vadd.f32 1e-05, %v2348_v52 }
 0x65a   : > { %vm2448_vm6 = vcmp.ge.f32.partialorder %v2432_v54, 0.0  ;;  %v2464_v17 = vmul.f32 0.2, %v2432_v54  ;;  %v2479_v9 = vsel %vm2447_vm5, %v2431_v34, %v2463_v42  ;;  %v2393_v26 = vmul.f32 %v3779_v49, %v4831_v60 }
 0x65b   : > { %v3781_v51 = vpop.eup %3780  ;;  %3784 = vrsqrt.f32 %v2364_v45  ;;  %v3039_v38 = vmul.f32 %v4950_v39, %v2479_v9 }
 0x65c   : > { %v2394_v11 = vmul.f32 %v3781_v51, %v4834_v58  ;;  %v2315_v27 = vpop.xlane.xlu0 %2314  ;;  %v2480_v15 = vsel %vm2448_vm6, %v2432_v54, %v2464_v17  ;;  %v2413_v18 = vmul.f32 %v4935_v0, %v2393_v26 }
 0x65d   : > { %v2349_v41 = vmul.f32 0.015625, %v2315_v27  ;;  %v3055_v43 = vsel %vm2197_vm4, %v3039_v38, 0.0  ;;  %v2495_v40 = vpack.c.bf16 %v2480_v15, %v2479_v9  ;;  %v3040_v46 = vmul.f32 %v4950_v39, %v2480_v15 }
 0x65e   : > { %v2318_v62 = vpop.xlane.xlu1 %2317  ;;  %3056 = vadd.xlane.f32.xlu1 %v3055_v43  ;;  %v2414_v60 = vmul.f32 %v4935_v0, %v2394_v11  ;;  %v2433_v6 = vadd.f32 %v4941_v4, %v2413_v18 }
 0x65f   : > { %v2365_v37 = vadd.f32 1e-05, %v2349_v41  ;;  %v2350_v25 = vmul.f32 0.015625, %v2318_v62  ;;  %3588 = vmatprep.mubr.msk.bf16.mxu1 %vm2197_vm4, %v2495_v40  ;;  %v3058_v50 = vsel %vm2197_vm4, %v3040_v46, 0.0 }
 0x660   : > { %v2434_v58 = vadd.f32 %v4941_v4, %v2414_v60  ;;  %vm2449_vm7 = vcmp.ge.f32.partialorder %v2433_v6, 0.0  ;;  %v2465_v22 = vmul.f32 0.2, %v2433_v6 }
 0x661   : > { %3786 = vrsqrt.f32 %v2365_v37  ;;  %v2366_v35 = vadd.f32 1e-05, %v2350_v25 }
 0x662   : > { %3059 = vadd.xlane.f32.xlu1 %v3058_v50  ;;  %vm2450_vm8 = vcmp.ge.f32.partialorder %v2434_v58, 0.0  ;;  %v2466_v53 = vmul.f32 0.2, %v2434_v58  ;;  %v2481_v19 = vsel %vm2449_vm7, %v2433_v6, %v2465_v22  ;;  %vm3201_vm7 = vcmask 1042434  }
 0x663   : > { %v3783_v7 = vpop.eup %3782  ;;  %3788 = vrsqrt.f32 %v2366_v35  ;;  %v3041_v13 = vmul.f32 %v4950_v39, %v2481_v19 }
 0x664   : > { %v2482_v2 = vsel %vm2450_vm8, %v2434_v58, %v2466_v53  ;;  %v2395_v3 = vmul.f32 %v3783_v7, %v4843_v28  ;;  %vm3203_vm8 = vcmask 1043459  }
 0x665   : > { %v3785_v30 = vpop.eup %3784  ;;  %v2321_v5 = vpop.xlane.xlu0 %2320  ;;  %v3061_v23 = vsel %vm2197_vm4, %v3041_v13, 0.0  ;;  %v2496_v63 = vpack.c.bf16 %v2482_v2, %v2481_v19  ;;  %v3042_v21 = vmul.f32 %v4950_v39, %v2482_v2 }
 0x666   : > { %v2396_v32 = vmul.f32 %v3785_v30, %v4846_v10  ;;  %v2351_v59 = vmul.f32 0.015625, %v2321_v5  ;;  %3062 = vadd.xlane.f32.xlu1 %v3061_v23  ;;  %v2415_v55 = vmul.f32 %v4935_v0, %v2395_v3 }
 0x667   : > { %v2324_v57 = vpop.xlane.xlu1 %2323  ;;  %3589 = vmatmul.mubr.msk.bf16.vlgmr.msra.gmra.mrb[64].mxu1 %vm2197_vm4, %v2496_v63  ;;  %v3064_v31 = vsel %vm2197_vm4, %v3042_v21, 0.0 }
 0x668   : > { %v2367_v61 = vadd.f32 1e-05, %v2351_v59  ;;  %v2352_v24 = vmul.f32 0.015625, %v2324_v57  ;;  %v2416_v28 = vmul.f32 %v4935_v0, %v2396_v32  ;;  %v2435_v33 = vadd.f32 %v4941_v4, %v2415_v55 }
 0x66a   : > { %3790 = vrsqrt.f32 %v2367_v61  ;;  %v2368_v34 = vadd.f32 1e-05, %v2352_v24  ;;  %3065 = vadd.xlane.f32.xlu1 %v3064_v31  ;;  %v2436_v10 = vadd.f32 %v4941_v4, %v2416_v28  ;;  %vm2451_vm9 = vcmp.ge.f32.partialorder %v2435_v33, 0.0 }
 0x66b   : > { %v3787_v47 = vpop.eup %3786  ;;  %v2467_v52 = vmul.f32 0.2, %v2435_v33 }
 0x66c   : > { %3792 = vrsqrt.f32 %v2368_v34  ;;  %vm2452_vm10 = vcmp.ge.f32.partialorder %v2436_v10, 0.0  ;;  %v2468_v54 = vmul.f32 0.2, %v2436_v10  ;;  %v2397_v42 = vmul.f32 %v3787_v47, %v4855_v56 }
 0x66d   : > { %v3789_v49 = vpop.eup %3788  ;;  %v2327_v45 = vpop.xlane.xlu0 %2326  ;;  %v2483_v17 = vsel %vm2451_vm9, %v2435_v33, %v2467_v52  ;;  %vm3205_vm9 = vcmask 1044484  }
 0x66e   : > { %v2398_v9 = vmul.f32 %v3789_v49, %v4858_v36  ;;  %v2353_v26 = vmul.f32 0.015625, %v2327_v45  ;;  %v2484_v51 = vsel %vm2452_vm10, %v2436_v10, %v2468_v54  ;;  %v3043_v38 = vmul.f32 %v4950_v39, %v2483_v17 }
 0x66f   : > { %v2330_v11 = vpop.xlane.xlu1 %2329  ;;  %v2497_v27 = vpack.c.bf16 %v2484_v51, %v2483_v17  ;;  %v3044_v15 = vmul.f32 %v4950_v39, %v2484_v51  ;;  %v2417_v18 = vmul.f32 %v4935_v0, %v2397_v42  ;;  %vm3207_vm10 = vcmask 1045509  }
 0x670   : > { %v2369_v41 = vadd.f32 1e-05, %v2353_v26  ;;  %v2354_v43 = vmul.f32 0.015625, %v2330_v11  ;;  %v3067_v40 = vsel %vm2197_vm4, %v3043_v38, 0.0  ;;  %v2418_v56 = vmul.f32 %v4935_v0, %v2398_v9 }
 0x671   : > { %3068 = vadd.xlane.f32.xlu1 %v3067_v40  ;;  %3592 = vmatprep.mubr.msk.bf16.mxu1 %vm2197_vm4, %v2497_v27  ;;  %v2437_v36 = vadd.f32 %v4941_v4, %v2417_v18  ;;  %v3070_v37 = vsel %vm2197_vm4, %v3044_v15, 0.0 }
 0x672   : > { %3794 = vrsqrt.f32 %v2369_v41  ;;  %v2370_v46 = vadd.f32 1e-05, %v2354_v43  ;;  %v2438_v62 = vadd.f32 %v4941_v4, %v2418_v56 }
 0x673   : > { %vm2453_vm11 = vcmp.ge.f32.partialorder %v2437_v36, 0.0  ;;  %v2469_v60 = vmul.f32 0.2, %v2437_v36 }
 0x674   : > { %v3791_v6 = vpop.eup %3790  ;;  %3796 = vrsqrt.f32 %v2370_v46  ;;  %vm2454_vm12 = vcmp.ge.f32.partialorder %v2438_v62, 0.0  ;;  %v2470_v25 = vmul.f32 0.2, %v2438_v62 }
 0x675   : > { %3071 = vadd.xlane.f32.xlu1 %v3070_v37  ;;  %v2333_v58 = vpop.xlane.xlu0 %2332  ;;  %v2485_v22 = vsel %vm2453_vm11, %v2437_v36, %v2469_v60  ;;  %v2399_v35 = vmul.f32 %v3791_v6, %v4867_v16  ;;  %vm3209_vm11 = vcmask 1046534  }
 0x676   : > { %v3793_v50 = vpop.eup %3792  ;;  %v2355_v53 = vmul.f32 0.015625, %v2333_v58  ;;  %v2486_v19 = vsel %vm2454_vm12, %v2438_v62, %v2470_v25  ;;  %v3045_v7 = vmul.f32 %v4950_v39, %v2485_v22  ;;  %vm3211_vm12 = vcmask 1047559  }
 0x677   : > { %v2400_v13 = vmul.f32 %v3793_v50, %v4870_v44  ;;  %v2336_v2 = vpop.xlane.xlu1 %2335  ;;  %v2498_v3 = vpack.c.bf16 %v2486_v19, %v2485_v22  ;;  %v3046_v30 = vmul.f32 %v4950_v39, %v2486_v19  ;;  %v2419_v5 = vmul.f32 %v4935_v0, %v2399_v35 }
 0x678   : > { %v2371_v23 = vadd.f32 1e-05, %v2355_v53  ;;  %v2356_v63 = vmul.f32 0.015625, %v2336_v2  ;;  %v3073_v21 = vsel %vm2197_vm4, %v3045_v7, 0.0 }
 0x679   : > { %3074 = vadd.xlane.f32.xlu0 %v3073_v21  ;;  %3593 = vmatmul.mubr.msk.bf16.gmra.mrb[68].mxu1 %vm2197_vm4, %v2498_v3  ;;  %v3076_v16 = vsel %vm2197_vm4, %v3046_v30, 0.0  ;;  %v2420_v32 = vmul.f32 %v4935_v0, %v2400_v13  ;;  %v2439_v59 = vadd.f32 %v4941_v4, %v2419_v5 }
 0x67a   : > { %3798 = vrsqrt.f32 %v2371_v23  ;;  %v2372_v44 = vadd.f32 1e-05, %v2356_v63  ;;  %3077 = vadd.xlane.f32.xlu1 %v3076_v16 }
 0x67b   : > { %v2440_v55 = vadd.f32 %v4941_v4, %v2420_v32  ;;  %vm2455_vm13 = vcmp.ge.f32.partialorder %v2439_v59, 0.0  ;;  %v2471_v57 = vmul.f32 0.2, %v2439_v59 }
 0x67c   : > { %v3795_v61 = vpop.eup %3794  ;;  %3800 = vrsqrt.f32 %v2372_v44 }
 0x67d   : > { %v2339_v24 = vpop.xlane.xlu0 %2338  ;;  %vm2456_vm14 = vcmp.ge.f32.partialorder %v2440_v55, 0.0  ;;  %v2472_v28 = vmul.f32 0.2, %v2440_v55  ;;  %v2487_v33 = vsel %vm2455_vm13, %v2439_v59, %v2471_v57  ;;  %v2401_v31 = vmul.f32 %v3795_v61, %v4879_v14 }
 0x67e   : > { %v3797_v34 = vpop.eup %3796  ;;  %v2357_v10 = vmul.f32 0.015625, %v2339_v24  ;;  %v3047_v47 = vmul.f32 %v4950_v39, %v2487_v33  ;;  %vm3229_vm13 = vcmask 7168  }
 0x67f   : > { %v2402_v52 = vmul.f32 %v3797_v34, %v4885_v29  ;;  %v2342_v54 = vpop.xlane.xlu1 %2341  ;;  %v2488_v42 = vsel %vm2456_vm14, %v2440_v55, %v2472_v28  ;;  %v2421_v49 = vmul.f32 %v4935_v0, %v2401_v31 }
 0x680   : > { %v2373_v45 = vadd.f32 1e-05, %v2357_v10  ;;  %v2358_v17 = vmul.f32 0.015625, %v2342_v54  ;;  %v3079_v9 = vsel %vm2197_vm4, %v3047_v47, 0.0  ;;  %v2499_v26 = vpack.c.bf16 %v2488_v42, %v2487_v33  ;;  %v3741_v33 = vld [vmem:[%s5264_s5] sm:$0xff]  }
 0x681   : > { %3080 = vadd.xlane.f32.xlu1 %v3079_v9  ;;  %v3048_v51 = vmul.f32 %v4950_v39, %v2488_v42  ;;  %v2422_v14 = vmul.f32 %v4935_v0, %v2402_v52  ;;  %v2441_v38 = vadd.f32 %v4941_v4, %v2421_v49  ;;  %3604 = vmatprep.subr.bf16.mxu0 %v3741_v33 }
 0x682   : > { %3802 = vrsqrt.f32 %v2373_v45  ;;  %v2374_v11 = vadd.f32 1e-05, %v2358_v17  ;;  %3596 = vmatprep.mubr.msk.bf16.mxu1 %vm2197_vm4, %v2499_v26  ;;  %3605 = vmatpush3.bf16.msra.mxu0 %v3741_v33 }
 0x683   : > { %v2442_v29 = vadd.f32 %v4941_v4, %v2422_v14  ;;  %vm2457_vm15 = vcmp.ge.f32.partialorder %v2441_v38, 0.0  ;;  %v2473_v27 = vmul.f32 0.2, %v2441_v38  ;;  %v3082_v18 = vsel %vm2197_vm4, %v3048_v51, 0.0 }
 0x684   : > { %v3799_v15 = vpop.eup %3798  ;;  %3804 = vrsqrt.f32 %v2374_v11 }
 0x685   : > { %3083 = vadd.xlane.f32.xlu1 %v3082_v18  ;;  %vm2458_vm1 = vcmp.ge.f32.partialorder %v2442_v29, 0.0  ;;  %v2474_v41 = vmul.f32 0.2, %v2442_v29  ;;  %v2489_v43 = vsel %vm2457_vm15, %v2441_v38, %v2473_v27  ;;  %v2403_v40 = vmul.f32 %v3799_v15, %v4897_v8 }
 0x686   : > { %v3801_v56 = vpop.eup %3800  ;;  %v3049_v36 = vmul.f32 %v4950_v39, %v2489_v43 }
 0x687   : > { %v2404_v46 = vmul.f32 %v3801_v56, %v4903_v1  ;;  %v2490_v62 = vsel %vm2458_vm1, %v2442_v29, %v2474_v41  ;;  %v2423_v60 = vmul.f32 %v4935_v0, %v2403_v40 }
 0x688   : > { %v3085_v6 = vsel %vm2197_vm4, %v3049_v36, 0.0  ;;  %v2500_v37 = vpack.c.bf16 %v2490_v62, %v2489_v43  ;;  %v3050_v25 = vmul.f32 %v4950_v39, %v2490_v62 }
 0x689   : > { %3086 = vadd.xlane.f32.xlu1 %v3085_v6  ;;  %v2424_v58 = vmul.f32 %v4935_v0, %v2404_v46  ;;  %v2443_v22 = vadd.f32 %v4941_v4, %v2423_v60 }
 0x68a   : > { %3597 = vmatmul.mubr.msk.bf16.gmra.mrb[72].mxu1 %vm2197_vm4, %v2500_v37  ;;  %v3088_v50 = vsel %vm2197_vm4, %v3050_v25, 0.0 }
 0x68b   : > { %v2444_v8 = vadd.f32 %v4941_v4, %v2424_v58  ;;  %vm2459_vm2 = vcmp.ge.f32.partialorder %v2443_v22, 0.0  ;;  %v2475_v35 = vmul.f32 0.2, %v2443_v22 }
 0x68c   : > { %v3803_v1 = vpop.eup %3802 }
 0x68d   : > { %3089 = vadd.xlane.f32.xlu1 %v3088_v50  ;;  %vm2460_vm3 = vcmp.ge.f32.partialorder %v2444_v8, 0.0  ;;  %v2476_v53 = vmul.f32 0.2, %v2444_v8  ;;  %v2491_v19 = vsel %vm2459_vm2, %v2443_v22, %v2475_v35  ;;  %v2405_v7 = vmul.f32 %v3803_v1, %v4915_v20 }
 0x68e   : > { %v3805_v13 = vpop.eup %3804  ;;  %v3051_v2 = vmul.f32 %v4950_v39, %v2491_v19 }
 0x68f   : > { %v2406_v3 = vmul.f32 %v3805_v13, %v4918_v12  ;;  %v2492_v30 = vsel %vm2460_vm3, %v2444_v8, %v2476_v53  ;;  %v2425_v5 = vmul.f32 %v4935_v0, %v2405_v7 }
 0x690   : > { %v3091_v23 = vsel %vm2197_vm4, %v3051_v2, 0.0  ;;  %v2501_v63 = vpack.c.bf16 %v2492_v30, %v2491_v19  ;;  %v3052_v21 = vmul.f32 %v4950_v39, %v2492_v30 }
 0x691   : > { %3092 = vadd.xlane.f32.xlu1 %v3091_v23  ;;  %v2426_v16 = vmul.f32 %v4935_v0, %v2406_v3  ;;  %v2445_v32 = vadd.f32 %v4941_v4, %v2425_v5 }
 0x692   : > { %3600 = vmatprep.mubr.msk.bf16.mxu1 %vm2197_vm4, %v2501_v63  ;;  %v3094_v12 = vsel %vm2197_vm4, %v3052_v21, 0.0 }
 0x693   : > { %v2446_v20 = vadd.f32 %v4941_v4, %v2426_v16  ;;  %vm2461_vm5 = vcmp.ge.f32.partialorder %v2445_v32, 0.0  ;;  %v2477_v59 = vmul.f32 0.2, %v2445_v32 }
 0x695   : > { %3095 = vadd.xlane.f32.xlu1 %v3094_v12  ;;  %vm2462_vm6 = vcmp.ge.f32.partialorder %v2446_v20, 0.0  ;;  %v2478_v44 = vmul.f32 0.2, %v2446_v20  ;;  %v2493_v55 = vsel %vm2461_vm5, %v2445_v32, %v2477_v59 }
 0x696   : > { %v3053_v57 = vmul.f32 %v4950_v39, %v2493_v55 }
 0x697   : > { %v2494_v61 = vsel %vm2462_vm6, %v2446_v20, %v2478_v44 }
 0x698   : > { %v3097_v24 = vsel %vm2197_vm4, %v3053_v57, 0.0  ;;  %v2502_v0 = vpack.c.bf16 %v2494_v61, %v2493_v55  ;;  %v3054_v28 = vmul.f32 %v4950_v39, %v2494_v61  ;;  %v5062_v57 = vpop.permute.xlu0 %2694 }
 0x699   : > { %3098 = vadd.xlane.f32.xlu1 %v3097_v24 }
 0x69a   : > { %3601 = vmatmul.mubr.msk.bf16.gmra.mrb[76].mxu1 %vm2197_vm4, %v2502_v0  ;;  %v3100_v4 = vsel %vm2197_vm4, %v3054_v28, 0.0  ;;  %vm2818_vm4 = vcmask 31744  }
 0x69b   : > { %3101 = vadd.xlane.f32.xlu0 %v3100_v4 }
 0x73a   : > { %v3590_v31 = vpop.f32.mrb[64].mxu1 }
 0x73b   : > { %v2608_v34 = vadd.f32 %v3590_v31, %v4929_v48  ;;  %v2599_v10 = vpop.f32.mrb[65].mxu1 }
 0x73c   : > { %v2600_v47 = vadd.f32 %v4929_v48, %v2599_v10  ;;  %v3591_v52 = vpop.f32.mrb[66].mxu1 }
 0x73d   : > { %3806 = vtanh.f32 %v2608_v34  ;;  %v2611_v39 = vadd.f32 %v3591_v52, %v4929_v48  ;;  %v2602_v54 = vpop.f32.mrb[67].mxu1 }
 0x73e   : > { %3808 = vtanh.f32 %v2600_v47  ;;  %v2603_v42 = vadd.f32 %v4929_v48, %v2602_v54 }
 0x73f   : > { %3810 = vtanh.f32 %v2611_v39 }
 0x740   : > { %3812 = vtanh.f32 %v2603_v42 }
 0x747   : > { %v3807_v49 = vpop.eup %3806 }
 0x748   : > { %v3809_v45 = vpop.eup %3808 }
 0x749   : > { %v3811_v17 = vpop.eup %3810 }
 0x74a   : > { %v3813_v9 = vpop.eup %3812  ;;  %v2679_v26 = vpack.c.bf16 %v3811_v17, %v3807_v49 }
 0x74b   : > { %v2678_v51 = vpack.c.bf16 %v3813_v9, %v3809_v45 }
 0x74c   : > { %v3594_v14 = vpop.f32.mrb[68].mxu1 }
 0x74d   : > { %v2624_v38 = vadd.f32 %v3594_v14, %v4929_v48  ;;  %v2615_v11 = vpop.f32.mrb[69].mxu1  ;;  %3606 = vmatprep.mubr.msk.bf16.mxu0 %vm714_vm0, %v2678_v51 }
 0x74e   : > { %v2616_v29 = vadd.f32 %v4929_v48, %v2615_v11  ;;  %v3595_v27 = vpop.f32.mrb[70].mxu1  ;;  %3607 = vmatmul.mubr.msk.bf16.vlgmr.msra.gmra.mrb[64].mxu0 %vm714_vm0, %v2679_v26 }
 0x74f   : > { %3814 = vtanh.f32 %v2624_v38  ;;  %v2627_v15 = vadd.f32 %v3595_v27, %v4929_v48  ;;  %v2618_v18 = vpop.f32.mrb[71].mxu1 }
 0x750   : > { %3816 = vtanh.f32 %v2616_v29  ;;  %v2619_v41 = vadd.f32 %v4929_v48, %v2618_v18 }
 0x751   : > { %3818 = vtanh.f32 %v2627_v15 }
 0x752   : > { %3820 = vtanh.f32 %v2619_v41 }
 0x759   : > { %v3815_v43 = vpop.eup %3814 }
 0x75a   : > { %v3817_v40 = vpop.eup %3816 }
 0x75b   : > { %v3819_v56 = vpop.eup %3818 }
 0x75c   : > { %v3821_v36 = vpop.eup %3820  ;;  %v2681_v46 = vpack.c.bf16 %v3819_v56, %v3815_v43 }
 0x75d   : > { %v3598_v62 = vpop.f32.mrb[72].mxu1  ;;  %v2680_v60 = vpack.c.bf16 %v3821_v36, %v3817_v40 }
 0x75e   : > { %v2640_v6 = vadd.f32 %v3598_v62, %v4929_v48  ;;  %v2631_v37 = vpop.f32.mrb[73].mxu1 }
 0x75f   : > { %v2632_v25 = vadd.f32 %v4929_v48, %v2631_v37  ;;  %v3599_v58 = vpop.f32.mrb[74].mxu1  ;;  %3610 = vmatprep.mubr.msk.bf16.mxu0 %vm714_vm0, %v2680_v60 }
 0x760   : > { %3822 = vtanh.f32 %v2640_v6  ;;  %v2643_v22 = vadd.f32 %v3599_v58, %v4929_v48  ;;  %v2634_v8 = vpop.f32.mrb[75].mxu1  ;;  %3611 = vmatmul.mubr.msk.bf16.gmra.mrb[68].mxu0 %vm714_vm0, %v2681_v46 }
 0x761   : > { %3824 = vtanh.f32 %v2632_v25  ;;  %v2635_v35 = vadd.f32 %v4929_v48, %v2634_v8 }
 0x762   : > { %3826 = vtanh.f32 %v2643_v22 }
 0x763   : > { %3828 = vtanh.f32 %v2635_v35 }
 0x76a   : > { %v3823_v1 = vpop.eup %3822 }
 0x76b   : > { %v3825_v50 = vpop.eup %3824 }
 0x76c   : > { %v3827_v53 = vpop.eup %3826 }
 0x76d   : > { %v3829_v19 = vpop.eup %3828  ;;  %v3602_v7 = vpop.f32.mrb[76].mxu1  ;;  %v2683_v13 = vpack.c.bf16 %v3827_v53, %v3823_v1 }
 0x76e   : > { %v2656_v2 = vadd.f32 %v3602_v7, %v4929_v48  ;;  %v2647_v3 = vpop.f32.mrb[77].mxu1  ;;  %v2682_v30 = vpack.c.bf16 %v3829_v19, %v3825_v50 }
 0x76f   : > { %v2648_v5 = vadd.f32 %v4929_v48, %v2647_v3  ;;  %v3603_v23 = vpop.f32.mrb[78].mxu1 }
 0x770   : > { %3830 = vtanh.f32 %v2656_v2  ;;  %v2659_v63 = vadd.f32 %v3603_v23, %v4929_v48  ;;  %v2650_v21 = vpop.f32.mrb[79].mxu1  ;;  %3614 = vmatprep.mubr.msk.bf16.mxu0 %vm714_vm0, %v2682_v30 }
 0x771   : > { %3832 = vtanh.f32 %v2648_v5  ;;  %v2651_v16 = vadd.f32 %v4929_v48, %v2650_v21  ;;  %3615 = vmatmul.mubr.msk.bf16.gmra.mrb[72].mxu0 %vm714_vm0, %v2683_v13 }
 0x772   : > { %3834 = vtanh.f32 %v2659_v63 }
 0x773   : > { %3836 = vtanh.f32 %v2651_v16 }
 0x77a   : > { %v3831_v32 = vpop.eup %3830 }
 0x77b   : > { %v3833_v20 = vpop.eup %3832 }
 0x77c   : > { %v3835_v59 = vpop.eup %3834 }
 0x77d   : > { %v3837_v12 = vpop.eup %3836  ;;  %v2685_v44 = vpack.c.bf16 %v3835_v59, %v3831_v32 }
 0x77e   : > { %v2684_v55 = vpack.c.bf16 %v3837_v12, %v3833_v20 }
 0x780   : > { %3618 = vmatprep.mubr.msk.bf16.mxu0 %vm714_vm0, %v2684_v55 }
 0x781   : > { %3619 = vmatmul.mubr.msk.bf16.gmra.mrb[76].mxu0 %vm714_vm0, %v2685_v44  ;;  %vm3199_vm0 = vcmask 1041409  }
 0x821   : > { %v3608_v61 = vpop.f32.mrb[64].mxu0 }
 0x822   : > { %v2764_v24 = vadd.f32 %v3608_v61, %v5062_v57  ;;  %v2755_v48 = vpop.f32.mrb[65].mxu0 }
 0x823   : > { %v2756_v0 = vadd.f32 %v2755_v48, %v5062_v57  ;;  %v3609_v28 = vpop.f32.mrb[66].mxu0 }
 0x824   : > { %v2767_v4 = vadd.f32 %v3609_v28, %v5062_v57  ;;  %v2758_v33 = vpop.f32.mrb[67].mxu0  ;;  %v2828_v34 = vsel %vm2818_vm4, %v2764_v24, -inf }
 0x825   : > { %v2759_v31 = vadd.f32 %v2758_v33, %v5062_v57  ;;  %v2819_v47 = vsel %vm2818_vm4, %v2756_v0, -inf }
 0x826   : > { %v2829_v10 = vsel %vm2818_vm4, %v2767_v4, -inf }
 0x827   : > { %v2830_v52 = vmax.f32 %v2828_v34, %v2829_v10  ;;  %v2820_v39 = vsel %vm2818_vm4, %v2759_v31, -inf }
 0x828   : > { %v2821_v54 = vmax.f32 %v2819_v47, %v2820_v39 }
 0x829   : > { %v2831_v42 = vrot.slane %v2830_v52, 4 }
 0x82a   : > { %v2822_v49 = vrot.slane %v2821_v54, 4 }
 0x82b   : > { %v2832_v45 = vmax.f32 %v2830_v52, %v2831_v42 }
 0x82c   : > { %v2823_v17 = vmax.f32 %v2821_v54, %v2822_v49 }
 0x82d   : > { %v2833_v9 = vrot.slane %v2832_v45, 2 }
 0x82e   : > { %v2824_v26 = vrot.slane %v2823_v17, 2 }
 0x82f   : > { %v2834_v51 = vmax.f32 %v2832_v45, %v2833_v9 }
 0x830   : > { %v2825_v14 = vmax.f32 %v2823_v17, %v2824_v26 }
 0x831   : > { %v2835_v38 = vrot.slane %v2834_v51, 1 }
 0x832   : > { %v2826_v11 = vrot.slane %v2825_v14, 1 }
 0x833   : > { %v2836_v29 = vmax.f32 %v2834_v51, %v2835_v38  ;;  %v3612_v27 = vpop.f32.mrb[68].mxu0 }
 0x834   : > { %v2827_v15 = vmax.f32 %v2825_v14, %v2826_v11  ;;  %v2780_v18 = vadd.f32 %v3612_v27, %v5062_v57  ;;  %v2771_v41 = vpop.f32.mrb[69].mxu0 }
 0x835   : > { %v2893_v43 = vsub.f32 %v2764_v24, %v2836_v29  ;;  %v2894_v40 = vsub.f32 %v2767_v4, %v2836_v29  ;;  %v2772_v56 = vadd.f32 %v2771_v41, %v5062_v57  ;;  %v3613_v36 = vpop.f32.mrb[70].mxu0  ;;  %v5112_v41 = vpop.xlane.xlu1 %3056 }
 0x836   : > { %v2891_v46 = vsub.f32 %v2756_v0, %v2827_v15  ;;  %v2892_v62 = vsub.f32 %v2759_v31, %v2827_v15  ;;  %v2783_v60 = vadd.f32 %v3613_v36, %v5062_v57  ;;  %v2774_v6 = vpop.f32.mrb[71].mxu0  ;;  %v2846_v35 = vsel %vm2818_vm4, %v2780_v18, -inf }
 0x837   : > { %v2911_v37 = vmul.f32 1.442695, %v2893_v43  ;;  %v2913_v25 = vmul.f32 1.442695, %v2894_v40  ;;  %v2775_v58 = vadd.f32 %v2774_v6, %v5062_v57  ;;  %v2837_v50 = vsel %vm2818_vm4, %v2772_v56, -inf }
 0x838   : > { %v2907_v22 = vmul.f32 1.442695, %v2891_v46  ;;  %v2909_v8 = vmul.f32 1.442695, %v2892_v62  ;;  %v2847_v1 = vsel %vm2818_vm4, %v2783_v60, -inf }
 0x839   : > { %3838 = vpow2.f32 %v2911_v37  ;;  %v2848_v53 = vmax.f32 %v2846_v35, %v2847_v1  ;;  %v2838_v19 = vsel %vm2818_vm4, %v2775_v58, -inf  ;;  %v5118_v35 = vpop.xlane.xlu1 %3059 }
 0x83a   : > { %3840 = vpow2.f32 %v2913_v25  ;;  %v2839_v7 = vmax.f32 %v2837_v50, %v2838_v19 }
 0x83b   : > { %3842 = vpow2.f32 %v2907_v22  ;;  %v2849_v13 = vrot.slane %v2848_v53, 4 }
 0x83c   : > { %3844 = vpow2.f32 %v2909_v8  ;;  %v2840_v2 = vrot.slane %v2839_v7, 4 }
 0x83d   : > { %v2850_v3 = vmax.f32 %v2848_v53, %v2849_v13 }
 0x83e   : > { %v2841_v30 = vmax.f32 %v2839_v7, %v2840_v2 }
 0x83f   : > { %v2851_v5 = vrot.slane %v2850_v3, 2 }
 0x840   : > { %v2842_v23 = vrot.slane %v2841_v30, 2 }
 0x841   : > { %v2852_v63 = vmax.f32 %v2850_v3, %v2851_v5 }
 0x842   : > { %v2843_v21 = vmax.f32 %v2841_v30, %v2842_v23 }
 0x843   : > { %v5080_v16 = vpop.eup %3838  ;;  %v2853_v32 = vrot.slane %v2852_v63, 1 }
 0x844   : > { %v5082_v20 = vpop.eup %3840  ;;  %v2948_v59 = vsel %vm2818_vm4, %v5080_v16, 0.0  ;;  %v2844_v12 = vrot.slane %v2843_v21, 1  ;;  %v3616_v44 = vpop.f32.mrb[72].mxu0 }
 0x845   : > { %v5086_v55 = vpop.eup %3842  ;;  %v2949_v61 = vsel %vm2818_vm4, %v5082_v20, 0.0  ;;  %v2854_v24 = vmax.f32 %v2852_v63, %v2853_v32  ;;  %v2787_v48 = vpop.f32.mrb[73].mxu0  ;;  %v5097_v52 = vadd.f32 %v3616_v44, %v5062_v57 }
 0x846   : > { %v5090_v0 = vpop.eup %3844  ;;  %v2950_v28 = vadd.f32 %v2949_v61, %v2948_v59  ;;  %v2939_v4 = vsel %vm2818_vm4, %v5086_v55, 0.0  ;;  %v2845_v33 = vmax.f32 %v2843_v21, %v2844_v12  ;;  %v3617_v31 = vpop.f32.mrb[74].mxu0  ;;  %v5100_v26 = vadd.f32 %v2787_v48, %v5062_v57 }
 0x847   : > { %v2940_v34 = vsel %vm2818_vm4, %v5090_v0, 0.0  ;;  %v2897_v10 = vsub.f32 %v2780_v18, %v2854_v24  ;;  %v2898_v47 = vsub.f32 %v2783_v60, %v2854_v24  ;;  %v2790_v39 = vpop.f32.mrb[75].mxu0  ;;  %v5103_v51 = vadd.f32 %v3617_v31, %v5062_v57 }
 0x848   : > { %v2951_v54 = vrot.slane %v2950_v28, 4  ;;  %v2941_v42 = vadd.f32 %v2940_v34, %v2939_v4  ;;  %v2895_v49 = vsub.f32 %v2772_v56, %v2845_v33  ;;  %v2896_v45 = vsub.f32 %v2775_v58, %v2845_v33  ;;  %v3063_v33 = vpop.xlane.xlu1 %3062 }
 0x849   : > { %v2919_v17 = vmul.f32 1.442695, %v2897_v10  ;;  %v2921_v9 = vmul.f32 1.442695, %v2898_v47  ;;  %v2864_v27 = vsel %vm2818_vm4, %v5097_v52, -inf  ;;  %v2865_v15 = vsel %vm2818_vm4, %v5103_v51, -inf }
 0x84a   : > { %v2952_v14 = vadd.f32 %v2951_v54, %v2950_v28  ;;  %v2942_v38 = vrot.slane %v2941_v42, 4  ;;  %v2915_v11 = vmul.f32 1.442695, %v2895_v49  ;;  %v2917_v29 = vmul.f32 1.442695, %v2896_v45 }
 0x84b   : > { %3846 = vpow2.f32 %v2919_v17  ;;  %v5110_v18 = vadd.f32 %v2790_v39, %v5062_v57  ;;  %v2866_v56 = vmax.f32 %v2864_v27, %v2865_v15  ;;  %v2855_v36 = vsel %vm2818_vm4, %v5100_v26, -inf }
 0x84c   : > { %v2953_v43 = vrot.slane %v2952_v14, 2  ;;  %v2943_v40 = vadd.f32 %v2942_v38, %v2941_v42  ;;  %3848 = vpow2.f32 %v2921_v9 }
 0x84d   : > { %3850 = vpow2.f32 %v2915_v11  ;;  %v2856_v46 = vsel %vm2818_vm4, %v5110_v18, -inf  ;;  %v2867_v6 = vrot.slane %v2866_v56, 4 }
 0x84e   : > { %v2954_v62 = vadd.f32 %v2953_v43, %v2952_v14  ;;  %v2944_v60 = vrot.slane %v2943_v40, 2  ;;  %3852 = vpow2.f32 %v2917_v29  ;;  %v2857_v37 = vmax.f32 %v2855_v36, %v2856_v46 }
 0x84f   : > { %v2868_v22 = vmax.f32 %v2866_v56, %v2867_v6 }
 0x850   : > { %v2955_v25 = vrot.slane %v2954_v62, 1  ;;  %v2945_v58 = vadd.f32 %v2944_v60, %v2943_v40  ;;  %v2858_v8 = vrot.slane %v2857_v37, 4 }
 0x851   : > { %v2869_v53 = vrot.slane %v2868_v22, 2 }
 0x852   : > { %v2956_v1 = vadd.f32 %v2955_v25, %v2954_v62  ;;  %v2946_v50 = vrot.slane %v2945_v58, 1  ;;  %v2859_v19 = vmax.f32 %v2857_v37, %v2858_v8 }
 0x853   : > { %v2870_v13 = vmax.f32 %v2868_v22, %v2869_v53 }
 0x854   : > { %3854 = vrcp.f32 %v2956_v1  ;;  %v2947_v7 = vadd.f32 %v2946_v50, %v2945_v58  ;;  %v3620_v2 = vpop.f32.mrb[76].mxu0  ;;  %v2860_v30 = vrot.slane %v2859_v19, 2 }
 0x855   : > { %v5120_v3 = vpop.eup %3846  ;;  %v5123_v5 = vadd.f32 %v3620_v2, %v5062_v57  ;;  %v2803_v23 = vpop.f32.mrb[77].mxu0  ;;  %v2871_v32 = vrot.slane %v2870_v13, 1 }
 0x856   : > { %v5125_v63 = vpop.eup %3848  ;;  %3856 = vrcp.f32 %v2947_v7  ;;  %v2966_v21 = vsel %vm2818_vm4, %v5120_v3, 0.0  ;;  %v3621_v59 = vpop.f32.mrb[78].mxu0  ;;  %v2861_v61 = vmax.f32 %v2859_v19, %v2860_v30  ;;  %v5134_v24 = vadd.f32 %v2803_v23, %v5062_v57 }
 0x857   : > { %v5129_v12 = vpop.eup %3850  ;;  %v2967_v44 = vsel %vm2818_vm4, %v5125_v63, 0.0  ;;  %v5137_v48 = vadd.f32 %v3621_v59, %v5062_v57  ;;  %v2806_v28 = vpop.f32.mrb[79].mxu0  ;;  %v2872_v10 = vmax.f32 %v2870_v13, %v2871_v32  ;;  %v2882_v47 = vsel %vm2818_vm4, %v5123_v5, -inf }
 0x858   : > { %v5139_v4 = vpop.eup %3852  ;;  %v2968_v31 = vadd.f32 %v2967_v44, %v2966_v21  ;;  %v2957_v34 = vsel %vm2818_vm4, %v5129_v12, 0.0  ;;  %v2862_v54 = vrot.slane %v2861_v61, 1  ;;  %v5150_v49 = vadd.f32 %v2806_v28, %v5062_v57 }
 0x859   : > { %v2958_v39 = vsel %vm2818_vm4, %v5139_v4, 0.0  ;;  %v2883_v42 = vsel %vm2818_vm4, %v5137_v48, -inf  ;;  %v2901_v9 = vsub.f32 %v5097_v52, %v2872_v10  ;;  %v2902_v14 = vsub.f32 %v5103_v51, %v2872_v10  ;;  %v3066_v51 = vpop.xlane.xlu1 %3065 }
 0x85a   : > { %v2969_v45 = vrot.slane %v2968_v31, 4  ;;  %v2959_v17 = vadd.f32 %v2958_v39, %v2957_v34  ;;  %v2863_v38 = vmax.f32 %v2861_v61, %v2862_v54  ;;  %v2873_v11 = vsel %vm2818_vm4, %v5134_v24, -inf }
 0x85b   : > { %v2884_v29 = vmax.f32 %v2882_v47, %v2883_v42  ;;  %v2874_v27 = vsel %vm2818_vm4, %v5150_v49, -inf  ;;  %v2927_v40 = vmul.f32 1.442695, %v2901_v9  ;;  %v2929_v56 = vmul.f32 1.442695, %v2902_v14 }
 0x85c   : > { %v2970_v15 = vadd.f32 %v2969_v45, %v2968_v31  ;;  %v2960_v43 = vrot.slane %v2959_v17, 4  ;;  %v2899_v57 = vsub.f32 %v5100_v26, %v2863_v38  ;;  %v2900_v36 = vsub.f32 %v5110_v18, %v2863_v38 }
 0x85d   : > { %v2885_v46 = vrot.slane %v2884_v29, 4  ;;  %v2875_v52 = vmax.f32 %v2873_v11, %v2874_v27  ;;  %3858 = vpow2.f32 %v2927_v40  ;;  %v5168_v32 = vpop.xlane.xlu1 %3068 }
 0x85e   : > { %v3855_v62 = vpop.eup %3854  ;;  %v2971_v60 = vrot.slane %v2970_v15, 2  ;;  %v2961_v6 = vadd.f32 %v2960_v43, %v2959_v17  ;;  %3860 = vpow2.f32 %v2929_v56  ;;  %v2923_v58 = vmul.f32 1.442695, %v2899_v57 }
 0x85f   : > { %v3021_v37 = vmul.f32 %v3855_v62, %v5080_v16  ;;  %v3022_v25 = vmul.f32 %v3855_v62, %v5082_v20  ;;  %v2925_v50 = vmul.f32 1.442695, %v2900_v36  ;;  %v2886_v26 = vmax.f32 %v2884_v29, %v2885_v46 }
 0x860   : > { %v3857_v22 = vpop.eup %3856  ;;  %v2972_v8 = vadd.f32 %v2971_v60, %v2970_v15  ;;  %v2962_v1 = vrot.slane %v2961_v6, 2  ;;  %3862 = vpow2.f32 %v2923_v58 }
 0x861   : > { %v3105_v53 = vmul.f32 %v3063_v33, %v3021_v37  ;;  %v3106_v18 = vmul.f32 %v3066_v51, %v3022_v25  ;;  %v3019_v19 = vmul.f32 %v3857_v22, %v5086_v55  ;;  %v3020_v7 = vmul.f32 %v3857_v22, %v5090_v0  ;;  %v3072_v14 = vpop.xlane.xlu1 %3071 }
 0x862   : > { %v2973_v13 = vrot.slane %v2972_v8, 1  ;;  %v2963_v2 = vadd.f32 %v2962_v1, %v2961_v6  ;;  %v2887_v30 = vrot.slane %v2886_v26, 2  ;;  %3864 = vpow2.f32 %v2925_v50 }
 0x863   : > { %v3128_v16 = vsel %vm2818_vm4, %v3105_v53, 0.0  ;;  %v3129_v20 = vsel %vm2818_vm4, %v3106_v18, 0.0  ;;  %v3103_v23 = vmul.f32 %v5112_v41, %v3019_v19  ;;  %v3104_v21 = vmul.f32 %v5118_v35, %v3020_v7 }
 0x864   : > { %v3130_v59 = vadd.f32 %v3129_v20, %v3128_v16  ;;  %v2974_v44 = vadd.f32 %v2973_v13, %v2972_v8  ;;  %v2964_v61 = vrot.slane %v2963_v2, 1  ;;  %v2888_v28 = vmax.f32 %v2886_v26, %v2887_v30  ;;  %v3075_v13 = vpop.xlane.xlu0 %3074 }
 0x865   : > { %v3119_v55 = vsel %vm2818_vm4, %v3103_v23, 0.0  ;;  %v3120_v0 = vsel %vm2818_vm4, %v3104_v21, 0.0  ;;  %v2876_v33 = vrot.slane %v2875_v52, 4  ;;  %v3078_v6 = vpop.xlane.xlu1 %3077 }
 0x866   : > { %v3131_v31 = vrot.slane %v3130_v59, 4  ;;  %v3121_v34 = vadd.f32 %v3120_v0, %v3119_v55  ;;  %3866 = vrcp.f32 %v2974_v44  ;;  %v2965_v10 = vadd.f32 %v2964_v61, %v2963_v2 }
 0x867   : > { %v2889_v47 = vrot.slane %v2888_v28, 1  ;;  %v2877_v41 = vmax.f32 %v2875_v52, %v2876_v33  ;;  %v5172_v39 = vpop.eup %3858 }
 0x868   : > { %v3132_v35 = vadd.f32 %v3131_v31, %v3130_v59  ;;  %v3122_v54 = vrot.slane %v3121_v34, 4  ;;  %3868 = vrcp.f32 %v2965_v10  ;;  %v5174_v42 = vpop.eup %3860  ;;  %v2984_v45 = vsel %vm2818_vm4, %v5172_v39, 0.0 }
 0x869   : > { %v2890_v17 = vmax.f32 %v2888_v28, %v2889_v47  ;;  %v2878_v9 = vrot.slane %v2877_v41, 2  ;;  %v2985_v11 = vsel %vm2818_vm4, %v5174_v42, 0.0  ;;  %v5192_v2 = vpop.xlane.xlu1 %3080 }
 0x86a   : > { %v3123_v38 = vadd.f32 %v3122_v54, %v3121_v34  ;;  %v3133_v29 = vrot.slane %v3132_v35, 2  ;;  %v2986_v27 = vadd.f32 %v2985_v11, %v2984_v45  ;;  %v5182_v56 = vpop.eup %3862 }
 0x86b   : > { %v2905_v15 = vsub.f32 %v5123_v5, %v2890_v17  ;;  %v2906_v43 = vsub.f32 %v5137_v48, %v2890_v17  ;;  %v2879_v40 = vmax.f32 %v2877_v41, %v2878_v9  ;;  %v2975_v52 = vsel %vm2818_vm4, %v5182_v56, 0.0 }
 0x86c   : > { %v3124_v57 = vrot.slane %v3123_v38, 2  ;;  %v3134_v36 = vadd.f32 %v3133_v29, %v3132_v35  ;;  %v2987_v46 = vrot.slane %v2986_v27, 4  ;;  %v5186_v60 = vpop.eup %3864 }
 0x86d   : > { %v2935_v62 = vmul.f32 1.442695, %v2905_v15  ;;  %v2937_v51 = vmul.f32 1.442695, %v2906_v43  ;;  %v2880_v37 = vrot.slane %v2879_v40, 1  ;;  %v2976_v48 = vsel %vm2818_vm4, %v5186_v60, 0.0  ;;  %v3084_v41 = vpop.xlane.xlu1 %3083 }
 0x86e   : > { %v3125_v25 = vadd.f32 %v3124_v57, %v3123_v38  ;;  %v3135_v58 = vrot.slane %v3134_v36, 1  ;;  %v2988_v5 = vadd.f32 %v2987_v46, %v2986_v27  ;;  %v2977_v8 = vadd.f32 %v2976_v48, %v2975_v52 }
 0x86f   : > { %3870 = vpow2.f32 %v2935_v62  ;;  %v2881_v1 = vmax.f32 %v2879_v40, %v2880_v37 }
 0x870   : > { %v3867_v22 = vpop.eup %3866  ;;  %3872 = vpow2.f32 %v2937_v51  ;;  %v3126_v50 = vrot.slane %v3125_v25, 1  ;;  %v2989_v18 = vrot.slane %v2988_v5, 2  ;;  %v3136_v19 = vadd.f32 %v3135_v58, %v3134_v36 }
 0x871   : > { %v3025_v26 = vmul.f32 %v3867_v22, %v5120_v3  ;;  %v3026_v53 = vmul.f32 %v3867_v22, %v5125_v63  ;;  %v2978_v30 = vrot.slane %v2977_v8, 4  ;;  %v2903_v16 = vsub.f32 %v5134_v24, %v2881_v1  ;;  %v3087_v36 = vpop.xlane.xlu1 %3086 }
 0x872   : > { %v3869_v7 = vpop.eup %3868  ;;  %v2904_v20 = vsub.f32 %v5150_v49, %v2881_v1  ;;  %v3127_v23 = vadd.f32 %v3126_v50, %v3125_v25  ;;  %v2990_v61 = vadd.f32 %v2989_v18, %v2988_v5 }
 0x873   : > { %v3109_v21 = vmul.f32 %v3075_v13, %v3025_v26  ;;  %v3110_v59 = vmul.f32 %v3078_v6, %v3026_v53  ;;  %v3023_v44 = vmul.f32 %v3869_v7, %v5129_v12  ;;  %v3024_v3 = vmul.f32 %v3869_v7, %v5139_v4 }
 0x874   : > { %v2979_v63 = vadd.f32 %v2978_v30, %v2977_v8  ;;  %v2931_v55 = vmul.f32 1.442695, %v2903_v16  ;;  %v2933_v0 = vmul.f32 1.442695, %v2904_v20  ;;  %v2991_v49 = vrot.slane %v2990_v61, 1 }
 0x875   : > { %v3146_v28 = vsel %vm2818_vm4, %v3109_v21, 0.0  ;;  %v3147_v33 = vsel %vm2818_vm4, %v3110_v59, 0.0  ;;  %v3107_v31 = vmul.f32 %v5168_v32, %v3023_v44  ;;  %v3108_v24 = vmul.f32 %v3072_v14, %v3024_v3  ;;  %v3090_v26 = vpop.xlane.xlu1 %3089 }
 0x876   : > { %v3148_v34 = vadd.f32 %v3147_v33, %v3146_v28  ;;  %v2980_v10 = vrot.slane %v2979_v63, 2  ;;  %3874 = vpow2.f32 %v2931_v55  ;;  %v3200_v4 = vsel %vm3199_vm0, %v3136_v19, %v3127_v23 }
 0x877   : > { %v3137_v47 = vsel %vm2818_vm4, %v3107_v31, 0.0  ;;  %v3138_v12 = vsel %vm2818_vm4, %v3108_v24, 0.0  ;;  %3876 = vpow2.f32 %v2933_v0  ;;  %v2992_v54 = vadd.f32 %v2991_v49, %v2990_v61 }
 0x878   : > { %v3139_v35 = vadd.f32 %v3138_v12, %v3137_v47  ;;  %v2981_v45 = vadd.f32 %v2980_v10, %v2979_v63  ;;  %v3149_v17 = vrot.slane %v3148_v34, 4 }
 0x879   : > { %v5204_v9 = vpop.eup %3870  ;;  %3878 = vrcp.f32 %v2992_v54 }
 0x87a   : > { %v5206_v32 = vpop.eup %3872  ;;  %v3140_v14 = vrot.slane %v3139_v35, 4  ;;  %v2982_v38 = vrot.slane %v2981_v45, 1  ;;  %v3002_v11 = vsel %vm2818_vm4, %v5204_v9, 0.0  ;;  %v3150_v27 = vadd.f32 %v3149_v17, %v3148_v34 }
 0x87b   : > { %v3003_v29 = vsel %vm2818_vm4, %v5206_v32, 0.0 }
 0x87c   : > { %v2983_v15 = vadd.f32 %v2982_v38, %v2981_v45  ;;  %v3004_v43 = vadd.f32 %v3003_v29, %v3002_v11  ;;  %v3141_v40 = vadd.f32 %v3140_v14, %v3139_v35  ;;  %v3151_v57 = vrot.slane %v3150_v27, 2 }
 0x87e   : > { %3880 = vrcp.f32 %v2983_v15  ;;  %v3005_v46 = vrot.slane %v3004_v43, 4  ;;  %v3142_v52 = vrot.slane %v3141_v40, 2  ;;  %v3152_v62 = vadd.f32 %v3151_v57, %v3150_v27  ;;  %v3102_v27 = vpop.xlane.xlu0 %3101 }
 0x880   : > { %v5212_v51 = vpop.eup %3874  ;;  %v3006_v6 = vadd.f32 %v3005_v46, %v3004_v43  ;;  %v3143_v37 = vadd.f32 %v3142_v52, %v3141_v40  ;;  %v3153_v5 = vrot.slane %v3152_v62, 1 }
 0x881   : > { %v5214_v25 = vpop.eup %3876  ;;  %v2993_v58 = vsel %vm2818_vm4, %v5212_v51, 0.0 }
 0x882   : > { %v3007_v48 = vrot.slane %v3006_v6, 2  ;;  %v2994_v22 = vsel %vm2818_vm4, %v5214_v25, 0.0  ;;  %v3144_v8 = vrot.slane %v3143_v37, 1  ;;  %v3154_v30 = vadd.f32 %v3153_v5, %v3152_v62 }
 0x883   : > { %v2995_v1 = vadd.f32 %v2994_v22, %v2993_v58  ;;  %v3879_v50 = vpop.eup %3878 }
 0x884   : > { %v3008_v53 = vadd.f32 %v3007_v48, %v3006_v6  ;;  %v3145_v18 = vadd.f32 %v3144_v8, %v3143_v37  ;;  %v3029_v19 = vmul.f32 %v3879_v50, %v5172_v39  ;;  %v3030_v7 = vmul.f32 %v3879_v50, %v5174_v42  ;;  %v3093_v39 = vpop.xlane.xlu1 %3092 }
 0x885   : > { %v2996_v13 = vrot.slane %v2995_v1, 4 }
 0x886   : > { %v3009_v16 = vrot.slane %v3008_v53, 1  ;;  %v3202_v20 = vsel %vm3201_vm7, %v3145_v18, %v3200_v4  ;;  %v3114_v23 = vmul.f32 %v3090_v26, %v3030_v7  ;;  %v3113_v59 = vmul.f32 %v3087_v36, %v3029_v19 }
 0x887   : > { %v2997_v21 = vadd.f32 %v2996_v13, %v2995_v1  ;;  %v3204_v44 = vsel %vm3203_vm8, %v3154_v30, %v3202_v20 }
 0x888   : > { %v3881_v3 = vpop.eup %3880  ;;  %v3010_v61 = vadd.f32 %v3009_v16, %v3008_v53  ;;  %v3164_v28 = vsel %vm2818_vm4, %v3113_v59, 0.0  ;;  %v3165_v42 = vsel %vm2818_vm4, %v3114_v23, 0.0  ;;  %v3096_v35 = vpop.xlane.xlu1 %3095 }
 0x889   : > { %v3027_v63 = vmul.f32 %v3881_v3, %v5182_v56  ;;  %v3028_v55 = vmul.f32 %v3881_v3, %v5186_v60  ;;  %v2998_v0 = vrot.slane %v2997_v21, 2  ;;  %v3166_v34 = vadd.f32 %v3165_v42, %v3164_v28 }
 0x88a   : > { %3882 = vrcp.f32 %v3010_v61 }
 0x88b   : > { %v3111_v33 = vmul.f32 %v5192_v2, %v3027_v63  ;;  %v3112_v31 = vmul.f32 %v3084_v41, %v3028_v55  ;;  %v2999_v24 = vadd.f32 %v2998_v0, %v2997_v21  ;;  %v3167_v56 = vrot.slane %v3166_v34, 4  ;;  %v3898_v55 = vld [vmem:[%s5267_s8] ss:$0 sm:$0xff] }
 0x88c   : > { %v3099_v29 = vpop.xlane.xlu1 %3098 }
 0x88d   : > { %v3156_v49 = vsel %vm2818_vm4, %v3112_v31, 0.0  ;;  %v3000_v10 = vrot.slane %v2999_v24, 1  ;;  %v3155_v47 = vsel %vm2818_vm4, %v3111_v33, 0.0  ;;  %v3168_v4 = vadd.f32 %v3167_v56, %v3166_v34 }
 0x88e   : > { %v3157_v12 = vadd.f32 %v3156_v49, %v3155_v47 }
 0x88f   : > { %v3001_v60 = vadd.f32 %v3000_v10, %v2999_v24  ;;  %v3169_v45 = vrot.slane %v3168_v4, 2 }
 0x890   : > { %v3158_v54 = vrot.slane %v3157_v12, 4 }
 0x891   : > { %3884 = vrcp.f32 %v3001_v60  ;;  %v3170_v14 = vadd.f32 %v3169_v45, %v3168_v4 }
 0x892   : > { %v3159_v17 = vadd.f32 %v3158_v54, %v3157_v12 }
 0x893   : > { %v3171_v57 = vrot.slane %v3170_v14, 1 }
 0x894   : > { %v3883_v38 = vpop.eup %3882  ;;  %v3160_v2 = vrot.slane %v3159_v17, 2 }
 0x895   : > { %v3034_v41 = vmul.f32 %v3883_v38, %v5206_v32  ;;  %v3033_v11 = vmul.f32 %v3883_v38, %v5204_v9  ;;  %v3172_v58 = vadd.f32 %v3171_v57, %v3170_v14 }
 0x896   : > { %v3161_v15 = vadd.f32 %v3160_v2, %v3159_v17 }
 0x897   : > { %v3117_v43 = vmul.f32 %v3099_v29, %v3033_v11  ;;  %v3118_v40 = vmul.f32 %v3102_v27, %v3034_v41 }
 0x898   : > { %v3162_v36 = vrot.slane %v3161_v15, 1 }
 0x899   : > { %v3182_v46 = vsel %vm2818_vm4, %v3117_v43, 0.0  ;;  %v3183_v52 = vsel %vm2818_vm4, %v3118_v40, 0.0 }
 0x89a   : > { %v3163_v62 = vadd.f32 %v3162_v36, %v3161_v15  ;;  %v3184_v6 = vadd.f32 %v3183_v52, %v3182_v46 }
 0x89b   : > { %v3885_v37 = vpop.eup %3884 }
 0x89c   : > { %v3031_v32 = vmul.f32 %v3885_v37, %v5212_v51  ;;  %v3032_v9 = vmul.f32 %v3885_v37, %v5214_v25  ;;  %v3185_v5 = vrot.slane %v3184_v6, 4  ;;  %v3206_v48 = vsel %vm3205_vm9, %v3163_v62, %v3204_v44 }
 0x89d   : > { %v3208_v22 = vsel %vm3207_vm10, %v3172_v58, %v3206_v48 }
 0x89e   : > { %v3116_v8 = vmul.f32 %v3096_v35, %v3032_v9  ;;  %v3115_v1 = vmul.f32 %v3093_v39, %v3031_v32  ;;  %v3186_v50 = vadd.f32 %v3185_v5, %v3184_v6 }
 0x8a0   : > { %v3173_v26 = vsel %vm2818_vm4, %v3115_v1, 0.0  ;;  %v3174_v53 = vsel %vm2818_vm4, %v3116_v8, 0.0  ;;  %v3187_v19 = vrot.slane %v3186_v50, 2 }
 0x8a1   : > { %v3175_v18 = vadd.f32 %v3174_v53, %v3173_v26 }
 0x8a2   : > { %v3188_v30 = vadd.f32 %v3187_v19, %v3186_v50 }
 0x8a3   : > { %v3176_v7 = vrot.slane %v3175_v18, 4 }
 0x8a4   : > { %v3189_v51 = vrot.slane %v3188_v30, 1 }
 0x8a5   : > { %v3177_v13 = vadd.f32 %v3176_v7, %v3175_v18 }
 0x8a6   : > { %v3190_v21 = vadd.f32 %v3189_v51, %v3188_v30 }
 0x8a7   : > { %v3178_v16 = vrot.slane %v3177_v13, 2 }
 0x8a9   : > { %v3179_v20 = vadd.f32 %v3178_v16, %v3177_v13 }
 0x8ab   : > { %v3180_v23 = vrot.slane %v3179_v20, 1 }
 0x8ad   : > { %v3181_v25 = vadd.f32 %v3180_v23, %v3179_v20 }
 0x8af   : > { %v3210_v59 = vsel %vm3209_vm11, %v3181_v25, %v3208_v22 }
 0x8b0   : > { %v3212_v44 = vsel %vm3211_vm12, %v3190_v21, %v3210_v59 }
 0x8b1   : > { %v3214_v3 = vsel %vm2818_vm4, %v3212_v44, 0.0 }
 0x8b2   : > { %3215 = vadd.xlane.f32.xlu1 %v3214_v3 }
 0x93f   : > { %v3216_v61 = vpop.xlane.xlu1 %3215 }
 0x940   : > { %v3217_v63 = vmul.f32 0.25, %v3216_v61 }
 0x942   : > { %v3218_v0 = vadd.f32 %v3898_v55, %v3217_v63 }
 0x944   : > { %v3425_v28 = vmul.f32 -1.442695, %v3218_v0 }
 0x946   : > { %3886 = vpow2.f32 %v3425_v28 }
 0x950   : > { %v3887_v39 = vpop.eup %3886 }
 0x951   : > { %v3222_v42 = vadd.f32 1.0, %v3887_v39 }
 0x953   : > { %3888 = vrcp.f32 %v3222_v42 }
 0x95d   : > { %v3889_v33 = vpop.eup %3888 }
 0x95e   : > { %3226 = vrot.lane.b32.xlu0 %v3889_v33, %s4007_s15 }
 0x9d0   : > { %v3227_v31 = vpop.permute.xlu0 %3226 }
 0x9d1   : > { %3230 = vst.msk [vmem:[%s392_s20] sm:$0xff] %vm3229_vm13, %v3227_v31 }
 0x9d2 PF: > { %s5283_s12 = sld [smem:[#allocation8_spill]]  ;;  %s5284_s30 = smov %s3987_s10 }
 0x9d3   : > { %s5285_s10 = smov %s3991_s11  ;;  %s5286_s11 = smov %s4128_s24 }
 0x9d8   : > { %p20_p9 = scmp.ge.s32.totalorder %s5283_s12, 4  }
 0x9da   :  { %22 = sbr.rel (!%p20_p9) target bundleno = 4 (0x4), region = 105 }
 0x9e1   :  { %3250 = vsyncpa [#allocation3], 1 }
 0x9e2   :  { %3252 = vsyncpa [#allocation3 + $0x1], 1 }
 0x9e3   :  { %3253 = vsyncpa [#allocation5], 1 }

</bundles_post_ra>
